<compile_context>
chip_gen: v7x
topology: tpu7x:2x2x1
jax: 0.10.0
libtpu: 0.0.40
codegen_flags: <defaults>
</compile_context>

<pallas_src>
import functools

import jax
import jax.numpy as jnp
import numpy as np
from jax.experimental import pallas as pl
from jax.experimental.pallas import tpu as pltpu


# ----------------------------- Pallas kernel ------------------------------- #

def _convlstm_kernel(xp_ref, hp_ref, c_ref, wx_ref, wh_ref, b_ref,
                     h_out_ref, c_out_ref, *, k, wp):
    """Fused ConvLSTM cell: conv(cat[x, h]) + bias + gates + state update.

    xp_ref: [Mp, Cin]    zero-padded, flattened input image (+k//2 rows each end)
    hp_ref: [Mp, Chid]   zero-padded, flattened hidden state
    c_ref : [Mi, Chid]   W-padded, flattened cell state (rows aligned to output)
    wx_ref: [k*k*Cin,  4*Chid]  conv weight, x part (tap-major, channel-minor)
    wh_ref: [k*k*Chid, 4*Chid]  conv weight, h part
    b_ref : [1, 4*Chid]
    """
    mi, chid = c_ref.shape
    cin = xp_ref.shape[-1]
    n = b_ref.shape[-1]                               # 4 * Chid

    # f32 accumulator, initialized with the broadcast bias.
    acc = jnp.zeros((mi, n), jnp.float32) + b_ref[...].astype(jnp.float32)

    # K*K conv taps as shifted contiguous row-slices; two accumulating matmuls
    # per tap (x part + h part) replace concat + im2col entirely.
    t = 0
    for dy in range(k):
        for dx in range(k):
            off = dy * wp + dx                        # static per-tap offset
            acc += jnp.dot(xp_ref[off:off + mi, :],
                           wx_ref[t * cin:(t + 1) * cin, :],
                           preferred_element_type=jnp.float32)
            acc += jnp.dot(hp_ref[off:off + mi, :],
                           wh_ref[t * chid:(t + 1) * chid, :],
                           preferred_element_type=jnp.float32)
            t += 1

    i_g = jax.nn.sigmoid(acc[:, 0 * chid:1 * chid])
    f_g = jax.nn.sigmoid(acc[:, 1 * chid:2 * chid])
    o_g = jax.nn.sigmoid(acc[:, 2 * chid:3 * chid])
    g_g = jnp.tanh(acc[:, 3 * chid:4 * chid])

    c_next = f_g * c_ref[...].astype(jnp.float32) + i_g * g_g
    h_next = o_g * jnp.tanh(c_next)

    c_out_ref[...] = c_next.astype(c_out_ref.dtype)
    h_out_ref[...] = h_next.astype(h_out_ref.dtype)


# ------------------------------- JAX wrapper -------------------------------- #

def conv_lstm_cell_forward(x_nhwc, h_nhwc, c_nhwc, params):
    """x: [B,H,W,Cin], h/c: [B,H,W,Chid].  params in PyTorch Conv2d layout."""
    B, H, W, Cin = x_nhwc.shape
    Chid = h_nhwc.shape[-1]
    w = params["conv_w"]                              # [4*Chid, Cin+Chid, K, K]
    b = params["conv_b"]                              # [4*Chid]
    N, _, K, _ = w.shape
    P = K // 2
    Hp, Wp = H + 2 * P, W + 2 * P
    Mi = H * Wp                                       # output rows (incl. W-pad cols)
    Mp = Hp * Wp + 2 * P                              # input rows (+-P halo rows)

    # Split the conv weight: conv(cat[x, h]) == conv_x(x) + conv_h(h).
    wx = jnp.transpose(w[:, :Cin], (2, 3, 1, 0)).reshape(K * K * Cin, N)
    wh = jnp.transpose(w[:, Cin:], (2, 3, 1, 0)).reshape(K * K * Chid, N)
    b2 = b.reshape(1, N)

    def pad_flatten(a):                               # [B,H,W,C] -> [B, Mp, C]
        ap = jnp.pad(a, ((0, 0), (P, P), (P, P), (0, 0)))
        ap = ap.reshape(B, Hp * Wp, a.shape[-1])
        return jnp.pad(ap, ((0, 0), (P, P), (0, 0)))

    xp = pad_flatten(x_nhwc)                                      # [B, Mp, Cin]
    hp = pad_flatten(h_nhwc)                                      # [B, Mp, Chid]
    cp = jnp.pad(c_nhwc, ((0, 0), (0, 0), (P, P), (0, 0)))
    cp = cp.reshape(B, Mi, Chid)                                  # [B, Mi, Chid]

    kernel = functools.partial(_convlstm_kernel, k=K, wp=Wp)
    h_flat, c_flat = pl.pallas_call(
        kernel,
        out_shape=(jax.ShapeDtypeStruct((B, Mi, Chid), x_nhwc.dtype),
                   jax.ShapeDtypeStruct((B, Mi, Chid), x_nhwc.dtype)),
        grid=(B,),
        in_specs=[
            pl.BlockSpec((None, Mp, Cin), lambda i: (i, 0, 0)),
            pl.BlockSpec((None, Mp, Chid), lambda i: (i, 0, 0)),
            pl.BlockSpec((None, Mi, Chid), lambda i: (i, 0, 0)),
            pl.BlockSpec((K * K * Cin, N), lambda i: (0, 0)),
            pl.BlockSpec((K * K * Chid, N), lambda i: (0, 0)),
            pl.BlockSpec((1, N), lambda i: (0, 0)),
        ],
        out_specs=(
            pl.BlockSpec((None, Mi, Chid), lambda i: (i, 0, 0)),
            pl.BlockSpec((None, Mi, Chid), lambda i: (i, 0, 0)),
        ),
        compiler_params=pltpu.CompilerParams(
            dimension_semantics=("parallel",)),
    )(xp, hp, cp, wx, wh, b2)

    # Drop the W-pad columns that were computed alongside the valid ones.
    h_next = h_flat.reshape(B, H, Wp, Chid)[:, :, P:P + W, :]
    c_next = c_flat.reshape(B, H, Wp, Chid)[:, :, P:P + W, :]
    return h_next, c_next


# --------------------------- pure-JAX reference ----------------------------- #

def ref_forward(x_nchw, h_nchw, c_nchw, params):
    hid = h_nchw.shape[1]
    w, b = params["conv_w"], params["conv_b"]
    pad = w.shape[2] // 2
    combined = jnp.concatenate([x_nchw, h_nchw], axis=1)
    conv = jax.lax.conv_general_dilated(
        combined, w, (1, 1), [(pad, pad), (pad, pad)],
        dimension_numbers=("NCHW", "OIHW", "NCHW")) + b[None, :, None, None]
    i = jax.nn.sigmoid(conv[:, 0 * hid:1 * hid])
    f = jax.nn.sigmoid(conv[:, 1 * hid:2 * hid])
    o = jax.nn.sigmoid(conv[:, 2 * hid:3 * hid])
    g = jnp.tanh(conv[:, 3 * hid:4 * hid])
    c_next = f * c_nchw + i * g
    h_next = o * jnp.tanh(c_next)
    return h_next, c_next


# ---------------------------------- main ------------------------------------ #

if __name__ == "__main__":
    B, H, W = 2, 16, 16
    input_dim, hidden_dim, ksz = 4, 32, 3             # 4*hidden = 128 -> lane-dense N

    key = jax.random.PRNGKey(0)
    k1, k2, k3, k4, k5 = jax.random.split(key, 5)
    params = {
        "conv_w": 0.1 * jax.random.normal(
            k1, (4 * hidden_dim, input_dim + hidden_dim, ksz, ksz), jnp.float32),
        "conv_b": 0.1 * jax.random.normal(k2, (4 * hidden_dim,), jnp.float32),
    }
    x_nchw = jax.random.normal(k3, (B, input_dim, H, W), jnp.float32)
    h_nchw = jax.random.normal(k4, (B, hidden_dim, H, W), jnp.float32)
    c_nchw = jax.random.normal(k5, (B, hidden_dim, H, W), jnp.float32)

    to_nhwc = lambda a: jnp.transpose(a, (0, 2, 3, 1))
    to_nchw = lambda a: jnp.transpose(a, (0, 3, 1, 2))

    h_next_nhwc, c_next_nhwc = jax.jit(conv_lstm_cell_forward)(
        to_nhwc(x_nchw), to_nhwc(h_nchw), to_nhwc(c_nchw), params)
    h_next_nhwc = jax.block_until_ready(h_next_nhwc)
    c_next_nhwc = jax.block_until_ready(c_next_nhwc)

    h_ref, c_ref_out = ref_forward(x_nchw, h_nchw, c_nchw, params)
    h_ref = jax.block_until_ready(h_ref)
    c_ref_out = jax.block_until_ready(c_ref_out)

    np.testing.assert_allclose(np.asarray(to_nchw(h_next_nhwc)),
                               np.asarray(h_ref), rtol=1e-2, atol=1e-2)
    np.testing.assert_allclose(np.asarray(to_nchw(c_next_nhwc)),
                               np.asarray(c_ref_out), rtol=1e-2, atol=1e-2)
    print("KERNEL_OK")
</pallas_src>

<mosaic_0001>
module attributes {stable_mosaic.version = 11 : i64} {
  func.func @_convlstm_kernel(%arg0: i32, %arg1: memref<1x326x4xf32, #tpu.memory_space<vmem>>, %arg2: memref<1x326x32xf32, #tpu.memory_space<vmem>>, %arg3: memref<1x288x32xf32, #tpu.memory_space<vmem>>, %arg4: memref<36x128xf32, #tpu.memory_space<vmem>>, %arg5: memref<288x128xf32, #tpu.memory_space<vmem>>, %arg6: memref<1x128xf32, #tpu.memory_space<vmem>>, %arg7: memref<1x288x32xf32, #tpu.memory_space<vmem>>, %arg8: memref<1x288x32xf32, #tpu.memory_space<vmem>>) attributes {dimension_semantics = [#tpu.dimension_semantics<parallel>], iteration_bounds = array<i64: 2>, scalar_prefetch = 0 : i64, scratch_operands = 0 : i64, tpu.core_type = #tpu.core_type<tc>, window_params = [{transform_indices = @transform_0, window_bounds = array<i64: 1, 326, 4>}, {transform_indices = @transform_1, window_bounds = array<i64: 1, 326, 32>}, {transform_indices = @transform_2, window_bounds = array<i64: 1, 288, 32>}, {pipeline_mode = #tpu.pipeline_mode<synchronous>, transform_indices = @transform_3, window_bounds = array<i64: 36, 128>}, {pipeline_mode = #tpu.pipeline_mode<synchronous>, transform_indices = @transform_4, window_bounds = array<i64: 288, 128>}, {pipeline_mode = #tpu.pipeline_mode<synchronous>, transform_indices = @transform_5, window_bounds = array<i64: 1, 128>}, {transform_indices = @transform_6, window_bounds = array<i64: 1, 288, 32>}, {transform_indices = @transform_7, window_bounds = array<i64: 1, 288, 32>}]} {
    %cst = arith.constant 0.000000e+00 : f32
    %0 = vector.broadcast %cst : f32 to vector<288x128xf32>
    %c0 = arith.constant 0 : index
    %c0_0 = arith.constant 0 : index
    %1 = vector.load %arg6[%c0, %c0_0] : memref<1x128xf32, #tpu.memory_space<vmem>>, vector<1x128xf32>
    %2 = vector.broadcast %1 : vector<1x128xf32> to vector<288x128xf32>
    %3 = arith.addf %0, %2 : vector<288x128xf32>
    %c0_1 = arith.constant 0 : index
    %c0_2 = arith.constant 0 : index
    %c0_3 = arith.constant 0 : index
    %4 = vector.load %arg1[%c0_1, %c0_2, %c0_3] : memref<1x326x4xf32, #tpu.memory_space<vmem>>, vector<1x288x4xf32>
    %5 = vector.shape_cast %4 : vector<1x288x4xf32> to vector<288x4xf32>
    %c0_4 = arith.constant 0 : index
    %c0_5 = arith.constant 0 : index
    %6 = vector.load %arg4[%c0_4, %c0_5] : memref<36x128xf32, #tpu.memory_space<vmem>>, vector<4x128xf32>
    %cst_6 = arith.constant dense<0.000000e+00> : vector<288x128xf32>
    %7 = tpu.matmul %5, %6, %cst_6 {dimension_numbers = #tpu.dot_dimension_numbers<[1], [0], [0], [1], [0, 0, 1, 1], [], []>} : vector<288x4xf32>, vector<4x128xf32>, vector<288x128xf32> -> vector<288x128xf32>
    %8 = arith.addf %3, %7 : vector<288x128xf32>
    %c0_7 = arith.constant 0 : index
    %c0_8 = arith.constant 0 : index
    %c0_9 = arith.constant 0 : index
    %9 = vector.load %arg2[%c0_7, %c0_8, %c0_9] : memref<1x326x32xf32, #tpu.memory_space<vmem>>, vector<1x288x32xf32>
    %10 = vector.shape_cast %9 : vector<1x288x32xf32> to vector<288x32xf32>
    %c0_10 = arith.constant 0 : index
    %c0_11 = arith.constant 0 : index
    %11 = vector.load %arg5[%c0_10, %c0_11] : memref<288x128xf32, #tpu.memory_space<vmem>>, vector<32x128xf32>
    %cst_12 = arith.constant dense<0.000000e+00> : vector<288x128xf32>
    %12 = tpu.matmul %10, %11, %cst_12 {dimension_numbers = #tpu.dot_dimension_numbers<[1], [0], [0], [1], [0, 0, 1, 1], [], []>} : vector<288x32xf32>, vector<32x128xf32>, vector<288x128xf32> -> vector<288x128xf32>
    %13 = arith.addf %8, %12 : vector<288x128xf32>
    %c0_13 = arith.constant 0 : index
    %c1 = arith.constant 1 : index
    %c0_14 = arith.constant 0 : index
    %14 = vector.load %arg1[%c0_13, %c1, %c0_14] : memref<1x326x4xf32, #tpu.memory_space<vmem>>, vector<1x288x4xf32>
    %15 = vector.shape_cast %14 : vector<1x288x4xf32> to vector<288x4xf32>
    %c4 = arith.constant 4 : index
    %c0_15 = arith.constant 0 : index
    %16 = vector.load %arg4[%c4, %c0_15] : memref<36x128xf32, #tpu.memory_space<vmem>>, vector<4x128xf32>
    %cst_16 = arith.constant dense<0.000000e+00> : vector<288x128xf32>
    %17 = tpu.matmul %15, %16, %cst_16 {dimension_numbers = #tpu.dot_dimension_numbers<[1], [0], [0], [1], [0, 0, 1, 1], [], []>} : vector<288x4xf32>, vector<4x128xf32>, vector<288x128xf32> -> vector<288x128xf32>
    %18 = arith.addf %13, %17 : vector<288x128xf32>
    %c0_17 = arith.constant 0 : index
    %c1_18 = arith.constant 1 : index
    %c0_19 = arith.constant 0 : index
    %19 = vector.load %arg2[%c0_17, %c1_18, %c0_19] : memref<1x326x32xf32, #tpu.memory_space<vmem>>, vector<1x288x32xf32>
    %20 = vector.shape_cast %19 : vector<1x288x32xf32> to vector<288x32xf32>
    %c32 = arith.constant 32 : index
    %c0_20 = arith.constant 0 : index
    %21 = vector.load %arg5[%c32, %c0_20] : memref<288x128xf32, #tpu.memory_space<vmem>>, vector<32x128xf32>
    %cst_21 = arith.constant dense<0.000000e+00> : vector<288x128xf32>
    %22 = tpu.matmul %20, %21, %cst_21 {dimension_numbers = #tpu.dot_dimension_numbers<[1], [0], [0], [1], [0, 0, 1, 1], [], []>} : vector<288x32xf32>, vector<32x128xf32>, vector<288x128xf32> -> vector<288x128xf32>
    %23 = arith.addf %18, %22 : vector<288x128xf32>
    %c0_22 = arith.constant 0 : index
    %c2 = arith.constant 2 : index
    %c0_23 = arith.constant 0 : index
    %24 = vector.load %arg1[%c0_22, %c2, %c0_23] : memref<1x326x4xf32, #tpu.memory_space<vmem>>, vector<1x288x4xf32>
    %25 = vector.shape_cast %24 : vector<1x288x4xf32> to vector<288x4xf32>
    %c8 = arith.constant 8 : index
    %c0_24 = arith.constant 0 : index
    %26 = vector.load %arg4[%c8, %c0_24] : memref<36x128xf32, #tpu.memory_space<vmem>>, vector<4x128xf32>
    %cst_25 = arith.constant dense<0.000000e+00> : vector<288x128xf32>
    %27 = tpu.matmul %25, %26, %cst_25 {dimension_numbers = #tpu.dot_dimension_numbers<[1], [0], [0], [1], [0, 0, 1, 1], [], []>} : vector<288x4xf32>, vector<4x128xf32>, vector<288x128xf32> -> vector<288x128xf32>
    %28 = arith.addf %23, %27 : vector<288x128xf32>
    %c0_26 = arith.constant 0 : index
    %c2_27 = arith.constant 2 : index
    %c0_28 = arith.constant 0 : index
    %29 = vector.load %arg2[%c0_26, %c2_27, %c0_28] : memref<1x326x32xf32, #tpu.memory_space<vmem>>, vector<1x288x32xf32>
    %30 = vector.shape_cast %29 : vector<1x288x32xf32> to vector<288x32xf32>
    %c64 = arith.constant 64 : index
    %c0_29 = arith.constant 0 : index
    %31 = vector.load %arg5[%c64, %c0_29] : memref<288x128xf32, #tpu.memory_space<vmem>>, vector<32x128xf32>
    %cst_30 = arith.constant dense<0.000000e+00> : vector<288x128xf32>
    %32 = tpu.matmul %30, %31, %cst_30 {dimension_numbers = #tpu.dot_dimension_numbers<[1], [0], [0], [1], [0, 0, 1, 1], [], []>} : vector<288x32xf32>, vector<32x128xf32>, vector<288x128xf32> -> vector<288x128xf32>
    %33 = arith.addf %28, %32 : vector<288x128xf32>
    %c0_31 = arith.constant 0 : index
    %c18 = arith.constant 18 : index
    %c0_32 = arith.constant 0 : index
    %34 = vector.load %arg1[%c0_31, %c18, %c0_32] : memref<1x326x4xf32, #tpu.memory_space<vmem>>, vector<1x288x4xf32>
    %35 = vector.shape_cast %34 : vector<1x288x4xf32> to vector<288x4xf32>
    %c12 = arith.constant 12 : index
    %c0_33 = arith.constant 0 : index
    %36 = vector.load %arg4[%c12, %c0_33] : memref<36x128xf32, #tpu.memory_space<vmem>>, vector<4x128xf32>
    %cst_34 = arith.constant dense<0.000000e+00> : vector<288x128xf32>
    %37 = tpu.matmul %35, %36, %cst_34 {dimension_numbers = #tpu.dot_dimension_numbers<[1], [0], [0], [1], [0, 0, 1, 1], [], []>} : vector<288x4xf32>, vector<4x128xf32>, vector<288x128xf32> -> vector<288x128xf32>
    %38 = arith.addf %33, %37 : vector<288x128xf32>
    %c0_35 = arith.constant 0 : index
    %c18_36 = arith.constant 18 : index
    %c0_37 = arith.constant 0 : index
    %39 = vector.load %arg2[%c0_35, %c18_36, %c0_37] : memref<1x326x32xf32, #tpu.memory_space<vmem>>, vector<1x288x32xf32>
    %40 = vector.shape_cast %39 : vector<1x288x32xf32> to vector<288x32xf32>
    %c96 = arith.constant 96 : index
    %c0_38 = arith.constant 0 : index
    %41 = vector.load %arg5[%c96, %c0_38] : memref<288x128xf32, #tpu.memory_space<vmem>>, vector<32x128xf32>
    %cst_39 = arith.constant dense<0.000000e+00> : vector<288x128xf32>
    %42 = tpu.matmul %40, %41, %cst_39 {dimension_numbers = #tpu.dot_dimension_numbers<[1], [0], [0], [1], [0, 0, 1, 1], [], []>} : vector<288x32xf32>, vector<32x128xf32>, vector<288x128xf32> -> vector<288x128xf32>
    %43 = arith.addf %38, %42 : vector<288x128xf32>
    %c0_40 = arith.constant 0 : index
    %c19 = arith.constant 19 : index
    %c0_41 = arith.constant 0 : index
    %44 = vector.load %arg1[%c0_40, %c19, %c0_41] : memref<1x326x4xf32, #tpu.memory_space<vmem>>, vector<1x288x4xf32>
    %45 = vector.shape_cast %44 : vector<1x288x4xf32> to vector<288x4xf32>
    %c16 = arith.constant 16 : index
    %c0_42 = arith.constant 0 : index
    %46 = vector.load %arg4[%c16, %c0_42] : memref<36x128xf32, #tpu.memory_space<vmem>>, vector<4x128xf32>
    %cst_43 = arith.constant dense<0.000000e+00> : vector<288x128xf32>
    %47 = tpu.matmul %45, %46, %cst_43 {dimension_numbers = #tpu.dot_dimension_numbers<[1], [0], [0], [1], [0, 0, 1, 1], [], []>} : vector<288x4xf32>, vector<4x128xf32>, vector<288x128xf32> -> vector<288x128xf32>
    %48 = arith.addf %43, %47 : vector<288x128xf32>
    %c0_44 = arith.constant 0 : index
    %c19_45 = arith.constant 19 : index
    %c0_46 = arith.constant 0 : index
    %49 = vector.load %arg2[%c0_44, %c19_45, %c0_46] : memref<1x326x32xf32, #tpu.memory_space<vmem>>, vector<1x288x32xf32>
    %50 = vector.shape_cast %49 : vector<1x288x32xf32> to vector<288x32xf32>
    %c128 = arith.constant 128 : index
    %c0_47 = arith.constant 0 : index
    %51 = vector.load %arg5[%c128, %c0_47] : memref<288x128xf32, #tpu.memory_space<vmem>>, vector<32x128xf32>
    %cst_48 = arith.constant dense<0.000000e+00> : vector<288x128xf32>
    %52 = tpu.matmul %50, %51, %cst_48 {dimension_numbers = #tpu.dot_dimension_numbers<[1], [0], [0], [1], [0, 0, 1, 1], [], []>} : vector<288x32xf32>, vector<32x128xf32>, vector<288x128xf32> -> vector<288x128xf32>
    %53 = arith.addf %48, %52 : vector<288x128xf32>
    %c0_49 = arith.constant 0 : index
    %c20 = arith.constant 20 : index
    %c0_50 = arith.constant 0 : index
    %54 = vector.load %arg1[%c0_49, %c20, %c0_50] : memref<1x326x4xf32, #tpu.memory_space<vmem>>, vector<1x288x4xf32>
    %55 = vector.shape_cast %54 : vector<1x288x4xf32> to vector<288x4xf32>
    %c20_51 = arith.constant 20 : index
    %c0_52 = arith.constant 0 : index
    %56 = vector.load %arg4[%c20_51, %c0_52] : memref<36x128xf32, #tpu.memory_space<vmem>>, vector<4x128xf32>
    %cst_53 = arith.constant dense<0.000000e+00> : vector<288x128xf32>
    %57 = tpu.matmul %55, %56, %cst_53 {dimension_numbers = #tpu.dot_dimension_numbers<[1], [0], [0], [1], [0, 0, 1, 1], [], []>} : vector<288x4xf32>, vector<4x128xf32>, vector<288x128xf32> -> vector<288x128xf32>
    %58 = arith.addf %53, %57 : vector<288x128xf32>
    %c0_54 = arith.constant 0 : index
    %c20_55 = arith.constant 20 : index
    %c0_56 = arith.constant 0 : index
    %59 = vector.load %arg2[%c0_54, %c20_55, %c0_56] : memref<1x326x32xf32, #tpu.memory_space<vmem>>, vector<1x288x32xf32>
    %60 = vector.shape_cast %59 : vector<1x288x32xf32> to vector<288x32xf32>
    %c160 = arith.constant 160 : index
    %c0_57 = arith.constant 0 : index
    %61 = vector.load %arg5[%c160, %c0_57] : memref<288x128xf32, #tpu.memory_space<vmem>>, vector<32x128xf32>
    %cst_58 = arith.constant dense<0.000000e+00> : vector<288x128xf32>
    %62 = tpu.matmul %60, %61, %cst_58 {dimension_numbers = #tpu.dot_dimension_numbers<[1], [0], [0], [1], [0, 0, 1, 1], [], []>} : vector<288x32xf32>, vector<32x128xf32>, vector<288x128xf32> -> vector<288x128xf32>
    %63 = arith.addf %58, %62 : vector<288x128xf32>
    %c0_59 = arith.constant 0 : index
    %c36 = arith.constant 36 : index
    %c0_60 = arith.constant 0 : index
    %64 = vector.load %arg1[%c0_59, %c36, %c0_60] : memref<1x326x4xf32, #tpu.memory_space<vmem>>, vector<1x288x4xf32>
    %65 = vector.shape_cast %64 : vector<1x288x4xf32> to vector<288x4xf32>
    %c24 = arith.constant 24 : index
    %c0_61 = arith.constant 0 : index
    %66 = vector.load %arg4[%c24, %c0_61] : memref<36x128xf32, #tpu.memory_space<vmem>>, vector<4x128xf32>
    %cst_62 = arith.constant dense<0.000000e+00> : vector<288x128xf32>
    %67 = tpu.matmul %65, %66, %cst_62 {dimension_numbers = #tpu.dot_dimension_numbers<[1], [0], [0], [1], [0, 0, 1, 1], [], []>} : vector<288x4xf32>, vector<4x128xf32>, vector<288x128xf32> -> vector<288x128xf32>
    %68 = arith.addf %63, %67 : vector<288x128xf32>
    %c0_63 = arith.constant 0 : index
    %c36_64 = arith.constant 36 : index
    %c0_65 = arith.constant 0 : index
    %69 = vector.load %arg2[%c0_63, %c36_64, %c0_65] : memref<1x326x32xf32, #tpu.memory_space<vmem>>, vector<1x288x32xf32>
    %70 = vector.shape_cast %69 : vector<1x288x32xf32> to vector<288x32xf32>
    %c192 = arith.constant 192 : index
    %c0_66 = arith.constant 0 : index
    %71 = vector.load %arg5[%c192, %c0_66] : memref<288x128xf32, #tpu.memory_space<vmem>>, vector<32x128xf32>
    %cst_67 = arith.constant dense<0.000000e+00> : vector<288x128xf32>
    %72 = tpu.matmul %70, %71, %cst_67 {dimension_numbers = #tpu.dot_dimension_numbers<[1], [0], [0], [1], [0, 0, 1, 1], [], []>} : vector<288x32xf32>, vector<32x128xf32>, vector<288x128xf32> -> vector<288x128xf32>
    %73 = arith.addf %68, %72 : vector<288x128xf32>
    %c0_68 = arith.constant 0 : index
    %c37 = arith.constant 37 : index
    %c0_69 = arith.constant 0 : index
    %74 = vector.load %arg1[%c0_68, %c37, %c0_69] : memref<1x326x4xf32, #tpu.memory_space<vmem>>, vector<1x288x4xf32>
    %75 = vector.shape_cast %74 : vector<1x288x4xf32> to vector<288x4xf32>
    %c28 = arith.constant 28 : index
    %c0_70 = arith.constant 0 : index
    %76 = vector.load %arg4[%c28, %c0_70] : memref<36x128xf32, #tpu.memory_space<vmem>>, vector<4x128xf32>
    %cst_71 = arith.constant dense<0.000000e+00> : vector<288x128xf32>
    %77 = tpu.matmul %75, %76, %cst_71 {dimension_numbers = #tpu.dot_dimension_numbers<[1], [0], [0], [1], [0, 0, 1, 1], [], []>} : vector<288x4xf32>, vector<4x128xf32>, vector<288x128xf32> -> vector<288x128xf32>
    %78 = arith.addf %73, %77 : vector<288x128xf32>
    %c0_72 = arith.constant 0 : index
    %c37_73 = arith.constant 37 : index
    %c0_74 = arith.constant 0 : index
    %79 = vector.load %arg2[%c0_72, %c37_73, %c0_74] : memref<1x326x32xf32, #tpu.memory_space<vmem>>, vector<1x288x32xf32>
    %80 = vector.shape_cast %79 : vector<1x288x32xf32> to vector<288x32xf32>
    %c224 = arith.constant 224 : index
    %c0_75 = arith.constant 0 : index
    %81 = vector.load %arg5[%c224, %c0_75] : memref<288x128xf32, #tpu.memory_space<vmem>>, vector<32x128xf32>
    %cst_76 = arith.constant dense<0.000000e+00> : vector<288x128xf32>
    %82 = tpu.matmul %80, %81, %cst_76 {dimension_numbers = #tpu.dot_dimension_numbers<[1], [0], [0], [1], [0, 0, 1, 1], [], []>} : vector<288x32xf32>, vector<32x128xf32>, vector<288x128xf32> -> vector<288x128xf32>
    %83 = arith.addf %78, %82 : vector<288x128xf32>
    %c0_77 = arith.constant 0 : index
    %c38 = arith.constant 38 : index
    %c0_78 = arith.constant 0 : index
    %84 = vector.load %arg1[%c0_77, %c38, %c0_78] : memref<1x326x4xf32, #tpu.memory_space<vmem>>, vector<1x288x4xf32>
    %85 = vector.shape_cast %84 : vector<1x288x4xf32> to vector<288x4xf32>
    %c32_79 = arith.constant 32 : index
    %c0_80 = arith.constant 0 : index
    %86 = vector.load %arg4[%c32_79, %c0_80] : memref<36x128xf32, #tpu.memory_space<vmem>>, vector<4x128xf32>
    %cst_81 = arith.constant dense<0.000000e+00> : vector<288x128xf32>
    %87 = tpu.matmul %85, %86, %cst_81 {dimension_numbers = #tpu.dot_dimension_numbers<[1], [0], [0], [1], [0, 0, 1, 1], [], []>} : vector<288x4xf32>, vector<4x128xf32>, vector<288x128xf32> -> vector<288x128xf32>
    %88 = arith.addf %83, %87 : vector<288x128xf32>
    %c0_82 = arith.constant 0 : index
    %c38_83 = arith.constant 38 : index
    %c0_84 = arith.constant 0 : index
    %89 = vector.load %arg2[%c0_82, %c38_83, %c0_84] : memref<1x326x32xf32, #tpu.memory_space<vmem>>, vector<1x288x32xf32>
    %90 = vector.shape_cast %89 : vector<1x288x32xf32> to vector<288x32xf32>
    %c256 = arith.constant 256 : index
    %c0_85 = arith.constant 0 : index
    %91 = vector.load %arg5[%c256, %c0_85] : memref<288x128xf32, #tpu.memory_space<vmem>>, vector<32x128xf32>
    %cst_86 = arith.constant dense<0.000000e+00> : vector<288x128xf32>
    %92 = tpu.matmul %90, %91, %cst_86 {dimension_numbers = #tpu.dot_dimension_numbers<[1], [0], [0], [1], [0, 0, 1, 1], [], []>} : vector<288x32xf32>, vector<32x128xf32>, vector<288x128xf32> -> vector<288x128xf32>
    %93 = arith.addf %88, %92 : vector<288x128xf32>
    %94 = vector.extract_strided_slice %93 {offsets = [0, 0], sizes = [288, 32], strides = [1, 1]} : vector<288x128xf32> to vector<288x32xf32>
    %95 = arith.negf %94 : vector<288x32xf32>
    %96 = math.exp %95 : vector<288x32xf32>
    %cst_87 = arith.constant 1.000000e+00 : f32
    %97 = vector.broadcast %cst_87 : f32 to vector<288x32xf32>
    %98 = arith.addf %97, %96 : vector<288x32xf32>
    %99 = arith.divf %97, %98 : vector<288x32xf32>
    %100 = vector.extract_strided_slice %93 {offsets = [0, 32], sizes = [288, 32], strides = [1, 1]} : vector<288x128xf32> to vector<288x32xf32>
    %101 = arith.negf %100 : vector<288x32xf32>
    %102 = math.exp %101 : vector<288x32xf32>
    %cst_88 = arith.constant 1.000000e+00 : f32
    %103 = vector.broadcast %cst_88 : f32 to vector<288x32xf32>
    %104 = arith.addf %103, %102 : vector<288x32xf32>
    %105 = arith.divf %103, %104 : vector<288x32xf32>
    %106 = vector.extract_strided_slice %93 {offsets = [0, 64], sizes = [288, 32], strides = [1, 1]} : vector<288x128xf32> to vector<288x32xf32>
    %107 = arith.negf %106 : vector<288x32xf32>
    %108 = math.exp %107 : vector<288x32xf32>
    %cst_89 = arith.constant 1.000000e+00 : f32
    %109 = vector.broadcast %cst_89 : f32 to vector<288x32xf32>
    %110 = arith.addf %109, %108 : vector<288x32xf32>
    %111 = arith.divf %109, %110 : vector<288x32xf32>
    %112 = vector.extract_strided_slice %93 {offsets = [0, 96], sizes = [288, 32], strides = [1, 1]} : vector<288x128xf32> to vector<288x32xf32>
    %113 = math.tanh %112 : vector<288x32xf32>
    %c0_90 = arith.constant 0 : index
    %c0_91 = arith.constant 0 : index
    %c0_92 = arith.constant 0 : index
    %114 = vector.load %arg3[%c0_90, %c0_91, %c0_92] : memref<1x288x32xf32, #tpu.memory_space<vmem>>, vector<1x288x32xf32>
    %115 = vector.shape_cast %114 : vector<1x288x32xf32> to vector<288x32xf32>
    %116 = arith.mulf %105, %115 : vector<288x32xf32>
    %117 = arith.mulf %99, %113 : vector<288x32xf32>
    %118 = arith.addf %116, %117 : vector<288x32xf32>
    %119 = math.tanh %118 : vector<288x32xf32>
    %120 = arith.mulf %111, %119 : vector<288x32xf32>
    %c0_93 = arith.constant 0 : index
    %c0_94 = arith.constant 0 : index
    %c0_95 = arith.constant 0 : index
    %121 = vector.load %arg8[%c0_93, %c0_94, %c0_95] : memref<1x288x32xf32, #tpu.memory_space<vmem>>, vector<1x288x32xf32>
    %122 = vector.shape_cast %121 : vector<1x288x32xf32> to vector<288x32xf32>
    %123 = vector.shape_cast %118 : vector<288x32xf32> to vector<1x288x32xf32>
    tpu.vector_store %arg8[%c0_93, %c0_94, %c0_95], %123 {strides = array<i32>} : memref<1x288x32xf32, #tpu.memory_space<vmem>>, vector<1x288x32xf32>,
    %c0_96 = arith.constant 0 : index
    %c0_97 = arith.constant 0 : index
    %c0_98 = arith.constant 0 : index
    %124 = vector.load %arg7[%c0_96, %c0_97, %c0_98] : memref<1x288x32xf32, #tpu.memory_space<vmem>>, vector<1x288x32xf32>
    %125 = vector.shape_cast %124 : vector<1x288x32xf32> to vector<288x32xf32>
    %126 = vector.shape_cast %120 : vector<288x32xf32> to vector<1x288x32xf32>
    tpu.vector_store %arg7[%c0_96, %c0_97, %c0_98], %126 {strides = array<i32>} : memref<1x288x32xf32, #tpu.memory_space<vmem>>, vector<1x288x32xf32>,
    return
  }
  func.func @transform_0(%arg0: i32) -> (i32, i32, i32) {
    %c0_i32 = arith.constant 0 : i32
    %c0_i32_0 = arith.constant 0 : i32
    %c0_i32_1 = arith.constant 0 : i32
    return %arg0, %c0_i32, %c0_i32_0 : i32, i32, i32
  }
  func.func @transform_1(%arg0: i32) -> (i32, i32, i32) {
    %c0_i32 = arith.constant 0 : i32
    %c0_i32_0 = arith.constant 0 : i32
    %c0_i32_1 = arith.constant 0 : i32
    return %arg0, %c0_i32, %c0_i32_0 : i32, i32, i32
  }
  func.func @transform_2(%arg0: i32) -> (i32, i32, i32) {
    %c0_i32 = arith.constant 0 : i32
    %c0_i32_0 = arith.constant 0 : i32
    %c0_i32_1 = arith.constant 0 : i32
    return %arg0, %c0_i32, %c0_i32_0 : i32, i32, i32
  }
  func.func @transform_3(%arg0: i32) -> (i32, i32) {
    %c0_i32 = arith.constant 0 : i32
    %c0_i32_0 = arith.constant 0 : i32
    %c0_i32_1 = arith.constant 0 : i32
    return %c0_i32, %c0_i32_0 : i32, i32
  }
  func.func @transform_4(%arg0: i32) -> (i32, i32) {
    %c0_i32 = arith.constant 0 : i32
    %c0_i32_0 = arith.constant 0 : i32
    %c0_i32_1 = arith.constant 0 : i32
    return %c0_i32, %c0_i32_0 : i32, i32
  }
  func.func @transform_5(%arg0: i32) -> (i32, i32) {
    %c0_i32 = arith.constant 0 : i32
    %c0_i32_0 = arith.constant 0 : i32
    %c0_i32_1 = arith.constant 0 : i32
    return %c0_i32, %c0_i32_0 : i32, i32
  }
  func.func @transform_6(%arg0: i32) -> (i32, i32, i32) {
    %c0_i32 = arith.constant 0 : i32
    %c0_i32_0 = arith.constant 0 : i32
    %c0_i32_1 = arith.constant 0 : i32
    return %arg0, %c0_i32, %c0_i32_0 : i32, i32, i32
  }
  func.func @transform_7(%arg0: i32) -> (i32, i32, i32) {
    %c0_i32 = arith.constant 0 : i32
    %c0_i32_0 = arith.constant 0 : i32
    %c0_i32_1 = arith.constant 0 : i32
    return %arg0, %c0_i32, %c0_i32_0 : i32, i32, i32
  }
}

</mosaic_0001>

<bundles_post_ra>
// kernel: conv_lstm_cell_forward.1
= control target key start
LH: loop header
LB: loop body
LE: loop exit
PB: predicated region body
PF: predicated region fallthrough
CT: control target
= control target key end

     0   :  { %s13114_s24 = smov 0   ;;  %s16161_s0 = inlined_call_operand.vmem [shape: f32[2,326,4], index: 0, kind: input, shape index: {}]   ;;  %s16162_s1 = inlined_call_operand.vmem [shape: f32[2,326,32], index: 1, kind: input, shape index: {}]   ;;  %s16163_s2 = inlined_call_operand.vmem [shape: f32[2,288,32], index: 2, kind: input, shape index: {}]   ;;  %s16164_s3 = inlined_call_operand.vmem [shape: f32[36,128], index: 3, kind: input, shape index: {}]   ;;  %s16165_s4 = inlined_call_operand.vmem [shape: f32[288,128], index: 4, kind: input, shape index: {}]   ;;  %s16166_s5 = inlined_call_operand.vmem [shape: f32[1,128], index: 5, kind: input, shape index: {}]   ;;  %s16167_s6 = inlined_call_operand.vmem [shape: f32[2,288,32], index: 6, kind: output, shape index: {0}]   ;;  %s16168_s7 = inlined_call_operand.vmem [shape: f32[2,288,32], index: 7, kind: output, shape index: {1}]  }
   0x1 LB: > { %s9581_s25 = sadd.s32 4294967295, %s13069_s24   ;;  %p9585_p0 = scmp.ge.s32.totalorder %s13069_s24, 1  ;;  %s13069_s24 = sphi %s13114_s24, %s18_s24  }
   0x2   : > { %p260_p1 = scmp.lt.s32.totalorder %s13069_s24, 3 }
   0x4   : > { %p261_p2 = pnand %p9585_p0, %p260_p1 }
   0x6   : > { %264 = sbr.rel (%p261_p2) target bundleno = 1432 (0x598), region = 44 }
   0xd   : > { %v376_v0 = vld [vmem:[%s16164_s3] sm:$0xf]  ;;  %vm486_vm0 = vcmask 1043456   ;;  %v3811_v1 = vld [vmem:[%s16164_s3 + $0x10] sm:$0xf]  ;;  %p307_p3 = scmp.lt.s32.totalorder %s9581_s25, 1 }
   0xe   : > { %10980 = vmatprep.subr.msk.mxu1 %vm486_vm0, %v376_v0  ;;  %11452 = vmatprep.subr.msk.mxu0 %vm486_vm0, %v3811_v1  ;;  %v807_v2 = vld [vmem:[%s16165_s4] sm:$0xff]  ;;  %v808_v3 = vld [vmem:[%s16165_s4 + $0x8] sm:$0xff]  ;;  %v4669_v4 = vld [vmem:[%s16164_s3 + $0x14] sm:$0xf]  ;;  %vm377_vm1 = vcmask 31744   ;;  %vm811_vm2 = vcmask 261120  }
   0xf   : > { %10981 = vmatpush3.msk.msra.mxu1 %vm486_vm0, %v376_v0  ;;  %s16381_s25 = smov (!%p307_p3, %s9581_s25), 1  ;;  %v12042_v5 = vpack.c.bf16 %v808_v3, %v807_v2  ;;  %11453 = vmatpush3.msk.msra.mxu0 %vm486_vm0, %v3811_v1  ;;  %v809_v6 = vld [vmem:[%s16165_s4 + $0x10] sm:$0xff]  ;;  %v810_v7 = vld [vmem:[%s16165_s4 + $0x18] sm:$0xff]  ;;  %v5098_v8 = vld [vmem:[%s16165_s4 + $0xa0] sm:$0xff]  ;;  %s13073_s11 = smov 64  }
  0x10   : > { %11570 = vmatprep.subr.msk.mxu0 %vm486_vm0, %v4669_v4  ;;  %s12762_s13 = smul.u32 328, %s16381_s25  ;;  %v5099_v9 = vld [vmem:[%s16165_s4 + $0xa8] sm:$0xff]  ;;  %v12046_v16 = vpack.c.bf16 %v810_v7, %v809_v6  ;;  %v13189_v22 = vld [vmem:[%s16164_s3 + $0x4] sm:$0xf] }
  0x11   : > { %12043 = vmatprep.subr.bf16.mxu1 %v12042_v5  ;;  %v13172_v17 = vpack.c.bf16 %v5099_v9, %v5098_v8  ;;  %s14870_s22 = smul.u32 288, %s16381_s25  ;;  %s13071_s25 = smov 32  }
  0x12   : > { %s13162_s26 = scalar_lea.vmem %s16161_s0, %s12762_s13  ;;  %s13316_s8 = scalar_lea.vmem %s16162_s1, %s12762_s13 }
  0x13   : > { %v340_v10 = vld [vmem:[%s13162_s26] sm:$0xff]  ;;  %v3775_v11 = vld [vmem:[%s13162_s26 + $0x13] sm:$0xff]  ;;  %v341_v12 = vld [vmem:[%s13162_s26 + $0x8] sm:$0xff]  ;;  %s14881_s28 = scalar_lea.vmem %s16163_s2, %s14870_s22  ;;  %s15911_s10 = scalar_lea.vmem %s16168_s7, %s14870_s22 }
  0x14   : > { %10982 = vmatprep.mubr.msk.f32.mxu1 %vm377_vm1, %v340_v10  ;;  %11454 = vmatprep.mubr.msk.f32.mxu0 %vm377_vm1, %v3775_v11  ;;  %v3776_v13 = vld [vmem:[%s13162_s26 + $0x1b] sm:$0xff]  ;;  %v342_v14 = vld [vmem:[%s13162_s26 + $0x10] sm:$0xff]  ;;  %v3777_v15 = vld [vmem:[%s13162_s26 + $0x23] sm:$0xff]  ;;  %s16082_s14 = scalar_lea.vmem %s16167_s6, %s14870_s22 }
  0x15   : > { %10983 = vmatmul.mubr.msk.f32.vlgmr.msra.gmra.mrb[0].mxu1 %vm377_vm1, %v341_v12  ;;  %11455 = vmatmul.mubr.msk.f32.vlgmr.msra.gmra.mrb[0].mxu0 %vm377_vm1, %v3776_v13  ;;  %v343_v18 = vld [vmem:[%s13162_s26 + $0x18] sm:$0xff]  ;;  %v3778_v19 = vld [vmem:[%s13162_s26 + $0x2b] sm:$0xff]  ;;  %v344_v20 = vld [vmem:[%s13162_s26 + $0x20] sm:$0xff] }
  0x16   : > { %12045 = vmatpush3.bf16.msra.mxu1 %v12042_v5  ;;  %11571 = vmatpush3.msk.msra.mxu0 %vm486_vm0, %v4669_v4  ;;  %v3779_v21 = vld [vmem:[%s13162_s26 + $0x33] sm:$0xff]  ;;  %v345_v23 = vld [vmem:[%s13162_s26 + $0x28] sm:$0xff]  ;;  %v3780_v24 = vld [vmem:[%s13162_s26 + $0x3b] sm:$0xff] }
  0x17   : > { %10985 = vmatprep.mubr.msk.f32.mxu1 %vm377_vm1, %v342_v14  ;;  %11457 = vmatprep.mubr.msk.f32.mxu0 %vm377_vm1, %v3777_v15  ;;  %v346_v25 = vld [vmem:[%s13162_s26 + $0x30] sm:$0xff]  ;;  %v3781_v26 = vld [vmem:[%s13162_s26 + $0x43] sm:$0xff]  ;;  %v347_v27 = vld [vmem:[%s13162_s26 + $0x38] sm:$0xff] }
  0x18   : > { %12047 = vmatprep.subr.bf16.mxu1 %v12046_v16  ;;  %12083 = vmatprep.subr.bf16.mxu0 %v13172_v17  ;;  %v3782_v28 = vld [vmem:[%s13162_s26 + $0x4b] sm:$0xff]  ;;  %v348_v29 = vld [vmem:[%s13162_s26 + $0x40] sm:$0xff]  ;;  %v3783_v30 = vld [vmem:[%s13162_s26 + $0x53] sm:$0xff] }
  0x19   : > { %10986 = vmatmul.mubr.msk.f32.gmra.mrb[2].mxu1 %vm377_vm1, %v343_v18  ;;  %11458 = vmatmul.mubr.msk.f32.gmra.mrb[2].mxu0 %vm377_vm1, %v3778_v19  ;;  %v349_v31 = vld [vmem:[%s13162_s26 + $0x48] sm:$0xff]  ;;  %v3784_v32 = vld [vmem:[%s13162_s26 + $0x5b] sm:$0xff]  ;;  %v350_v33 = vld [vmem:[%s13162_s26 + $0x50] sm:$0xff] }
  0x1a   : > { %10988 = vmatprep.mubr.msk.f32.mxu1 %vm377_vm1, %v344_v20  ;;  %11460 = vmatprep.mubr.msk.f32.mxu0 %vm377_vm1, %v3779_v21  ;;  %v3785_v34 = vld [vmem:[%s13162_s26 + $0x63] sm:$0xff]  ;;  %v351_v35 = vld [vmem:[%s13162_s26 + $0x58] sm:$0xff]  ;;  %v3786_v36 = vld [vmem:[%s13162_s26 + $0x6b] sm:$0xff] }
  0x1b   : > { %12049 = vmatpush3.bf16.msra.mxu1 %v12046_v16  ;;  %v352_v37 = vld [vmem:[%s13162_s26 + $0x60] sm:$0xff]  ;;  %v3787_v38 = vld [vmem:[%s13162_s26 + $0x73] sm:$0xff]  ;;  %v353_v39 = vld [vmem:[%s13162_s26 + $0x68] sm:$0xff] }
  0x1c   : > { %11098 = vmatprep.subr.msk.mxu1 %vm486_vm0, %v13189_v22  ;;  %v3788_v40 = vld [vmem:[%s13162_s26 + $0x7b] sm:$0xff]  ;;  %v354_v41 = vld [vmem:[%s13162_s26 + $0x70] sm:$0xff]  ;;  %v3789_v42 = vld [vmem:[%s13162_s26 + $0x83] sm:$0xff] }
  0x1d   : > { %10989 = vmatmul.mubr.msk.f32.gmra.mrb[4].mxu1 %vm377_vm1, %v345_v23  ;;  %11461 = vmatmul.mubr.msk.f32.gmra.mrb[4].mxu0 %vm377_vm1, %v3780_v24  ;;  %v355_v43 = vld [vmem:[%s13162_s26 + $0x78] sm:$0xff]  ;;  %v3790_v44 = vld [vmem:[%s13162_s26 + $0x8b] sm:$0xff]  ;;  %v356_v45 = vld [vmem:[%s13162_s26 + $0x80] sm:$0xff] }
  0x1e   : > { %10991 = vmatprep.mubr.msk.f32.mxu1 %vm377_vm1, %v346_v25  ;;  %11463 = vmatprep.mubr.msk.f32.mxu0 %vm377_vm1, %v3781_v26  ;;  %v3791_v46 = vld [vmem:[%s13162_s26 + $0x93] sm:$0xff]  ;;  %v357_v47 = vld [vmem:[%s13162_s26 + $0x88] sm:$0xff]  ;;  %v3792_v48 = vld [vmem:[%s13162_s26 + $0x9b] sm:$0xff] }
  0x1f   : > { %v358_v49 = vld [vmem:[%s13162_s26 + $0x90] sm:$0xff]  ;;  %v3793_v50 = vld [vmem:[%s13162_s26 + $0xa3] sm:$0xff]  ;;  %v359_v51 = vld [vmem:[%s13162_s26 + $0x98] sm:$0xff] }
  0x20   : > { %v3794_v52 = vld [vmem:[%s13162_s26 + $0xab] sm:$0xff]  ;;  %v360_v53 = vld [vmem:[%s13162_s26 + $0xa0] sm:$0xff]  ;;  %v3795_v54 = vld [vmem:[%s13162_s26 + $0xb3] sm:$0xff] }
  0x21   : > { %10992 = vmatmul.mubr.msk.f32.gmra.mrb[6].mxu1 %vm377_vm1, %v347_v27  ;;  %11464 = vmatmul.mubr.msk.f32.gmra.mrb[6].mxu0 %vm377_vm1, %v3782_v28  ;;  %v361_v55 = vld [vmem:[%s13162_s26 + $0xa8] sm:$0xff]  ;;  %v3796_v56 = vld [vmem:[%s13162_s26 + $0xbb] sm:$0xff]  ;;  %v362_v57 = vld [vmem:[%s13162_s26 + $0xb0] sm:$0xff] }
  0x22   : > { %10994 = vmatprep.mubr.msk.f32.mxu1 %vm377_vm1, %v348_v29  ;;  %11466 = vmatprep.mubr.msk.f32.mxu0 %vm377_vm1, %v3783_v30  ;;  %v3797_v58 = vld [vmem:[%s13162_s26 + $0xc3] sm:$0xff]  ;;  %v363_v59 = vld [vmem:[%s13162_s26 + $0xb8] sm:$0xff]  ;;  %v3798_v60 = vld [vmem:[%s13162_s26 + $0xcb] sm:$0xff] }
  0x23   : > { %v364_v61 = vld [vmem:[%s13162_s26 + $0xc0] sm:$0xff]  ;;  %v3799_v62 = vld [vmem:[%s13162_s26 + $0xd3] sm:$0xff]  ;;  %v365_v63 = vld [vmem:[%s13162_s26 + $0xc8] sm:$0xff] }
  0x24   : > { %v3800_v0 = vld [vmem:[%s13162_s26 + $0xdb] sm:$0xff]  ;;  %v366_v1 = vld [vmem:[%s13162_s26 + $0xd0] sm:$0xff]  ;;  %v3801_v2 = vld [vmem:[%s13162_s26 + $0xe3] sm:$0xff] }
  0x25   : > { %10995 = vmatmul.mubr.msk.f32.gmra.mrb[8].mxu1 %vm377_vm1, %v349_v31  ;;  %11467 = vmatmul.mubr.msk.f32.gmra.mrb[8].mxu0 %vm377_vm1, %v3784_v32  ;;  %v367_v3 = vld [vmem:[%s13162_s26 + $0xd8] sm:$0xff]  ;;  %v3802_v4 = vld [vmem:[%s13162_s26 + $0xeb] sm:$0xff]  ;;  %v368_v5 = vld [vmem:[%s13162_s26 + $0xe0] sm:$0xff] }
  0x26   : > { %10997 = vmatprep.mubr.msk.f32.mxu1 %vm377_vm1, %v350_v33  ;;  %11469 = vmatprep.mubr.msk.f32.mxu0 %vm377_vm1, %v3785_v34  ;;  %v3803_v6 = vld [vmem:[%s13162_s26 + $0xf3] sm:$0xff]  ;;  %v369_v7 = vld [vmem:[%s13162_s26 + $0xe8] sm:$0xff]  ;;  %v3804_v8 = vld [vmem:[%s13162_s26 + $0xfb] sm:$0xff] }
  0x27   : > { %v370_v9 = vld [vmem:[%s13162_s26 + $0xf0] sm:$0xff]  ;;  %v3805_v10 = vld [vmem:[%s13162_s26 + $0x103] sm:$0xff]  ;;  %v371_v11 = vld [vmem:[%s13162_s26 + $0xf8] sm:$0xff] }
  0x28   : > { %v3806_v12 = vld [vmem:[%s13162_s26 + $0x10b] sm:$0xff]  ;;  %v372_v13 = vld [vmem:[%s13162_s26 + $0x100] sm:$0xff]  ;;  %v3807_v14 = vld [vmem:[%s13162_s26 + $0x113] sm:$0xff] }
  0x29   : > { %10998 = vmatmul.mubr.msk.f32.gmra.mrb[10].mxu1 %vm377_vm1, %v351_v35  ;;  %11470 = vmatmul.mubr.msk.f32.gmra.mrb[10].mxu0 %vm377_vm1, %v3786_v36  ;;  %v373_v15 = vld [vmem:[%s13162_s26 + $0x108] sm:$0xff]  ;;  %v3808_v16 = vld [vmem:[%s13162_s26 + $0x11b] sm:$0xff]  ;;  %v374_v18 = vld [vmem:[%s13162_s26 + $0x110] sm:$0xff] }
  0x2a   : > { %11000 = vmatprep.mubr.msk.f32.mxu1 %vm377_vm1, %v352_v37  ;;  %11472 = vmatprep.mubr.msk.f32.mxu0 %vm377_vm1, %v3787_v38  ;;  %v3809_v19 = vld [vmem:[%s13162_s26 + $0x123] sm:$0xff]  ;;  %v375_v20 = vld [vmem:[%s13162_s26 + $0x118] sm:$0xff]  ;;  %v3810_v21 = vld [vmem:[%s13162_s26 + $0x12b] sm:$0xff] }
  0x2b   : > { %v771_v23 = vld [vmem:[%s13316_s8] sm:$0xff]  ;;  %v4633_v24 = vld [vmem:[%s13162_s26 + $0x14] sm:$0xff]  ;;  %v1667_v28 = vld [vmem:[%s16165_s4 + $0x28] sm:$0xff] }
  0x2c   : > { %v5100_v25 = vld [vmem:[%s16165_s4 + $0xb0] sm:$0xff]  ;;  %v5101_v26 = vld [vmem:[%s16165_s4 + $0xb8] sm:$0xff]  ;;  %v1666_v27 = vld [vmem:[%s16165_s4 + $0x20] sm:$0xff] }
  0x2d   : > { %11001 = vmatmul.mubr.msk.f32.gmra.mrb[12].mxu1 %vm377_vm1, %v353_v39  ;;  %11473 = vmatmul.mubr.msk.f32.gmra.mrb[12].mxu0 %vm377_vm1, %v3788_v40  ;;  %v772_v29 = vld [vmem:[%s13316_s8 + $0x8] sm:$0xff]  ;;  %v4634_v30 = vld [vmem:[%s13162_s26 + $0x1c] sm:$0xff]  ;;  %v773_v31 = vld [vmem:[%s13316_s8 + $0x10] sm:$0xff]  ;;  %v12086_v33 = vpack.c.bf16 %v5101_v26, %v5100_v25  ;;  %v13348_v34 = vpack.c.bf16 %v1667_v28, %v1666_v27 }
  0x2e   : > { %11003 = vmatprep.mubr.msk.f32.mxu1 %vm377_vm1, %v354_v41  ;;  %11475 = vmatprep.mubr.msk.f32.mxu0 %vm377_vm1, %v3789_v42  ;;  %v13346_v32 = vld [vmem:[%s13162_s26 + $0x24] sm:$0xff]  ;;  %v774_v35 = vld [vmem:[%s13316_s8 + $0x18] sm:$0xff]  ;;  %v13357_v36 = vld [vmem:[%s13162_s26 + $0x2c] sm:$0xff] }
  0x2f   : > { %v775_v37 = vld [vmem:[%s13316_s8 + $0x20] sm:$0xff]  ;;  %v13364_v38 = vld [vmem:[%s13162_s26 + $0x34] sm:$0xff] }
  0x30   : > { %v13380_v39 = vld [vmem:[%s13162_s26 + $0x3c] sm:$0xff]  ;;  %v777_v40 = vld [vmem:[%s13316_s8 + $0x30] sm:$0xff]  ;;  %v13384_v41 = vld [vmem:[%s13162_s26 + $0x44] sm:$0xff] }
  0x31   : > { %11004 = vmatmul.mubr.msk.f32.gmra.mrb[14].mxu1 %vm377_vm1, %v355_v43  ;;  %11476 = vmatmul.mubr.msk.f32.gmra.mrb[14].mxu0 %vm377_vm1, %v3790_v44  ;;  %v778_v42 = vld [vmem:[%s13316_s8 + $0x38] sm:$0xff]  ;;  %v13396_v43 = vld [vmem:[%s13162_s26 + $0x4c] sm:$0xff]  ;;  %v779_v44 = vld [vmem:[%s13316_s8 + $0x40] sm:$0xff] }
  0x32   : > { %11006 = vmatprep.mubr.msk.f32.mxu1 %vm377_vm1, %v356_v45  ;;  %11478 = vmatprep.mubr.msk.f32.mxu0 %vm377_vm1, %v3791_v46  ;;  %v13400_v45 = vld [vmem:[%s13162_s26 + $0x54] sm:$0xff]  ;;  %v780_v46 = vld [vmem:[%s13316_s8 + $0x48] sm:$0xff]  ;;  %v13550_v25 = vld [vmem:[%s13162_s26 + $0xfc] sm:$0xff] }
  0x33   : > { %v801_v26 = vld [vmem:[%s13316_s8 + $0xf0] sm:$0xff]  ;;  %v13554_v27 = vld [vmem:[%s13162_s26 + $0x104] sm:$0xff]  ;;  %v802_v28 = vld [vmem:[%s13316_s8 + $0xf8] sm:$0xff] }
  0x35   : > { %11007 = vmatmul.mubr.msk.f32.gmra.mrb[16].mxu1 %vm377_vm1, %v357_v47  ;;  %11479 = vmatmul.mubr.msk.f32.gmra.mrb[16].mxu0 %vm377_vm1, %v3792_v48  ;;  %v13410_v47 = vld [vmem:[%s13162_s26 + $0x5c] sm:$0xff]  ;;  %v781_v48 = vld [vmem:[%s13316_s8 + $0x50] sm:$0xff] }
  0x36   : > { %11009 = vmatprep.mubr.msk.f32.mxu1 %vm377_vm1, %v358_v49  ;;  %11481 = vmatprep.mubr.msk.f32.mxu0 %vm377_vm1, %v3793_v50  ;;  %v13414_v49 = vld [vmem:[%s13162_s26 + $0x64] sm:$0xff]  ;;  %v782_v50 = vld [vmem:[%s13316_s8 + $0x58] sm:$0xff] }
  0x39   : > { %11010 = vmatmul.mubr.msk.f32.gmra.mrb[18].mxu1 %vm377_vm1, %v359_v51  ;;  %11482 = vmatmul.mubr.msk.f32.gmra.mrb[18].mxu0 %vm377_vm1, %v3794_v52  ;;  %v13424_v51 = vld [vmem:[%s13162_s26 + $0x6c] sm:$0xff]  ;;  %v783_v52 = vld [vmem:[%s13316_s8 + $0x60] sm:$0xff] }
  0x3a   : > { %11012 = vmatprep.mubr.msk.f32.mxu1 %vm377_vm1, %v360_v53  ;;  %11484 = vmatprep.mubr.msk.f32.mxu0 %vm377_vm1, %v3795_v54  ;;  %v13428_v53 = vld [vmem:[%s13162_s26 + $0x74] sm:$0xff]  ;;  %v784_v54 = vld [vmem:[%s13316_s8 + $0x68] sm:$0xff] }
  0x3d   : > { %11013 = vmatmul.mubr.msk.f32.gmra.mrb[20].mxu1 %vm377_vm1, %v361_v55  ;;  %11485 = vmatmul.mubr.msk.f32.gmra.mrb[20].mxu0 %vm377_vm1, %v3796_v56  ;;  %v13438_v55 = vld [vmem:[%s13162_s26 + $0x7c] sm:$0xff]  ;;  %v785_v56 = vld [vmem:[%s13316_s8 + $0x70] sm:$0xff] }
  0x3e   : > { %11015 = vmatprep.mubr.msk.f32.mxu1 %vm377_vm1, %v362_v57  ;;  %11487 = vmatprep.mubr.msk.f32.mxu0 %vm377_vm1, %v3797_v58  ;;  %v13442_v57 = vld [vmem:[%s13162_s26 + $0x84] sm:$0xff]  ;;  %v786_v58 = vld [vmem:[%s13316_s8 + $0x78] sm:$0xff] }
  0x41   : > { %11016 = vmatmul.mubr.msk.f32.gmra.mrb[22].mxu1 %vm377_vm1, %v363_v59  ;;  %11488 = vmatmul.mubr.msk.f32.gmra.mrb[22].mxu0 %vm377_vm1, %v3798_v60  ;;  %v13452_v59 = vld [vmem:[%s13162_s26 + $0x8c] sm:$0xff]  ;;  %v787_v60 = vld [vmem:[%s13316_s8 + $0x80] sm:$0xff] }
  0x42   : > { %11018 = vmatprep.mubr.msk.f32.mxu1 %vm377_vm1, %v364_v61  ;;  %11490 = vmatprep.mubr.msk.f32.mxu0 %vm377_vm1, %v3799_v62  ;;  %v13456_v61 = vld [vmem:[%s13162_s26 + $0x94] sm:$0xff]  ;;  %v788_v62 = vld [vmem:[%s13316_s8 + $0x88] sm:$0xff] }
  0x45   : > { %11019 = vmatmul.mubr.msk.f32.gmra.mrb[24].mxu1 %vm377_vm1, %v365_v63  ;;  %11491 = vmatmul.mubr.msk.f32.gmra.mrb[24].mxu0 %vm377_vm1, %v3800_v0  ;;  %v13466_v63 = vld [vmem:[%s13162_s26 + $0x9c] sm:$0xff]  ;;  %v789_v0 = vld [vmem:[%s13316_s8 + $0x90] sm:$0xff] }
  0x46   : > { %11021 = vmatprep.mubr.msk.f32.mxu1 %vm377_vm1, %v366_v1  ;;  %11493 = vmatprep.mubr.msk.f32.mxu0 %vm377_vm1, %v3801_v2  ;;  %v13470_v1 = vld [vmem:[%s13162_s26 + $0xa4] sm:$0xff]  ;;  %v790_v2 = vld [vmem:[%s13316_s8 + $0x98] sm:$0xff] }
  0x49   : > { %11022 = vmatmul.mubr.msk.f32.gmra.mrb[26].mxu1 %vm377_vm1, %v367_v3  ;;  %11494 = vmatmul.mubr.msk.f32.gmra.mrb[26].mxu0 %vm377_vm1, %v3802_v4  ;;  %v13480_v3 = vld [vmem:[%s13162_s26 + $0xac] sm:$0xff]  ;;  %v791_v4 = vld [vmem:[%s13316_s8 + $0xa0] sm:$0xff] }
  0x4a   : > { %11024 = vmatprep.mubr.msk.f32.mxu1 %vm377_vm1, %v368_v5  ;;  %11496 = vmatprep.mubr.msk.f32.mxu0 %vm377_vm1, %v3803_v6  ;;  %v13484_v5 = vld [vmem:[%s13162_s26 + $0xb4] sm:$0xff]  ;;  %v792_v6 = vld [vmem:[%s13316_s8 + $0xa8] sm:$0xff] }
  0x4d   : > { %11025 = vmatmul.mubr.msk.f32.gmra.mrb[28].mxu1 %vm377_vm1, %v369_v7  ;;  %11497 = vmatmul.mubr.msk.f32.gmra.mrb[28].mxu0 %vm377_vm1, %v3804_v8  ;;  %v13494_v7 = vld [vmem:[%s13162_s26 + $0xbc] sm:$0xff]  ;;  %v793_v8 = vld [vmem:[%s13316_s8 + $0xb0] sm:$0xff] }
  0x4e   : > { %11027 = vmatprep.mubr.msk.f32.mxu1 %vm377_vm1, %v370_v9  ;;  %11499 = vmatprep.mubr.msk.f32.mxu0 %vm377_vm1, %v3805_v10  ;;  %v13498_v9 = vld [vmem:[%s13162_s26 + $0xc4] sm:$0xff]  ;;  %v794_v10 = vld [vmem:[%s13316_s8 + $0xb8] sm:$0xff] }
  0x51   : > { %11028 = vmatmul.mubr.msk.f32.gmra.mrb[30].mxu1 %vm377_vm1, %v371_v11  ;;  %11500 = vmatmul.mubr.msk.f32.gmra.mrb[30].mxu0 %vm377_vm1, %v3806_v12  ;;  %v13508_v11 = vld [vmem:[%s13162_s26 + $0xcc] sm:$0xff]  ;;  %v795_v12 = vld [vmem:[%s13316_s8 + $0xc0] sm:$0xff] }
  0x52   : > { %11030 = vmatprep.mubr.msk.f32.mxu1 %vm377_vm1, %v372_v13  ;;  %11502 = vmatprep.mubr.msk.f32.mxu0 %vm377_vm1, %v3807_v14  ;;  %v13512_v13 = vld [vmem:[%s13162_s26 + $0xd4] sm:$0xff]  ;;  %v796_v14 = vld [vmem:[%s13316_s8 + $0xc8] sm:$0xff] }
  0x55   : > { %11031 = vmatmul.mubr.msk.f32.gmra.mrb[32].mxu1 %vm377_vm1, %v373_v15  ;;  %11503 = vmatmul.mubr.msk.f32.gmra.mrb[32].mxu0 %vm377_vm1, %v3808_v16  ;;  %v13522_v15 = vld [vmem:[%s13162_s26 + $0xdc] sm:$0xff]  ;;  %v797_v16 = vld [vmem:[%s13316_s8 + $0xd0] sm:$0xff] }
  0x56   : > { %11033 = vmatprep.mubr.msk.f32.mxu1 %vm377_vm1, %v374_v18  ;;  %11505 = vmatprep.mubr.msk.f32.mxu0 %vm377_vm1, %v3809_v19  ;;  %v13526_v18 = vld [vmem:[%s13162_s26 + $0xe4] sm:$0xff]  ;;  %v798_v19 = vld [vmem:[%s13316_s8 + $0xd8] sm:$0xff] }
  0x59   : > { %11034 = vmatmul.mubr.msk.f32.gmra.mrb[34].mxu1 %vm377_vm1, %v375_v20  ;;  %11506 = vmatmul.mubr.msk.f32.gmra.mrb[34].mxu0 %vm377_vm1, %v3810_v21  ;;  %v13536_v20 = vld [vmem:[%s13162_s26 + $0xec] sm:$0xff]  ;;  %v799_v21 = vld [vmem:[%s13316_s8 + $0xe0] sm:$0xff] }
  0x5a   : > { %11044 = vmatprep.mubr.msk.f32.mxu1 %vm811_vm2, %v771_v23  ;;  %11572 = vmatprep.mubr.msk.f32.mxu0 %vm377_vm1, %v4633_v24  ;;  %v13540_v23 = vld [vmem:[%s13162_s26 + $0xf4] sm:$0xff]  ;;  %v800_v24 = vld [vmem:[%s13316_s8 + $0xe8] sm:$0xff] }
  0x5d   : > { %11045 = vmatmul.mubr.msk.f32.vlgmr.msra.gmra.mrb[0].mxu1 %vm811_vm2, %v772_v29  ;;  %11573 = vmatmul.mubr.msk.f32.vlgmr.msra.gmra.mrb[36].mxu0 %vm377_vm1, %v4634_v30  ;;  %v13564_v29 = vld [vmem:[%s13162_s26 + $0x10c] sm:$0xff]  ;;  %v803_v30 = vld [vmem:[%s13316_s8 + $0x100] sm:$0xff] }
  0x5e   : > { %11099 = vmatpush3.msk.msra.mxu1 %vm486_vm0, %v13189_v22  ;;  %12085 = vmatpush3.bf16.msra.mxu0 %v13172_v17  ;;  %v13373_v17 = vld [vmem:[%s16164_s3 + $0x18] sm:$0xf]  ;;  %v776_v22 = vld [vmem:[%s13316_s8 + $0x28] sm:$0xff] }
  0x5f   : > { %11047 = vmatprep.mubr.msk.f32.mxu1 %vm811_vm2, %v773_v31  ;;  %11575 = vmatprep.mubr.msk.f32.mxu0 %vm377_vm1, %v13346_v32  ;;  %v13568_v31 = vld [vmem:[%s13162_s26 + $0x114] sm:$0xff] }
  0x60   : > { %12087 = vmatprep.subr.bf16.mxu0 %v12086_v33  ;;  %12051 = vmatprep.subr.bf16.mxu1 %v13348_v34 }
  0x61   : > { %11048 = vmatmul.mubr.msk.f32.gmra.mrb[2].mxu1 %vm811_vm2, %v774_v35  ;;  %11576 = vmatmul.mubr.msk.f32.gmra.mrb[38].mxu0 %vm377_vm1, %v13357_v36  ;;  %v13578_v35 = vld [vmem:[%s13162_s26 + $0x11c] sm:$0xff] }
  0x62   : > { %11050 = vmatprep.mubr.msk.f32.mxu1 %vm811_vm2, %v775_v37  ;;  %11578 = vmatprep.mubr.msk.f32.mxu0 %vm377_vm1, %v13364_v38  ;;  %v805_v37 = vld [vmem:[%s13316_s8 + $0x110] sm:$0xff] }
  0x63   : > { %12089 = vmatpush3.bf16.msra.mxu0 %v12086_v33  ;;  %v804_v33 = vld [vmem:[%s13316_s8 + $0x108] sm:$0xff] }
  0x64   : > { %11688 = vmatprep.subr.msk.mxu0 %vm486_vm0, %v13373_v17 }
  0x65   : > { %11051 = vmatmul.mubr.msk.f32.gmra.mrb[4].mxu1 %vm811_vm2, %v776_v22  ;;  %11579 = vmatmul.mubr.msk.f32.gmra.mrb[40].mxu0 %vm377_vm1, %v13380_v39  ;;  %v13582_v22 = vld [vmem:[%s13162_s26 + $0x124] sm:$0xff] }
  0x66   : > { %11053 = vmatprep.mubr.msk.f32.mxu1 %vm811_vm2, %v777_v40  ;;  %11581 = vmatprep.mubr.msk.f32.mxu0 %vm377_vm1, %v13384_v41  ;;  %v806_v40 = vld [vmem:[%s13316_s8 + $0x118] sm:$0xff] }
  0x69   : > { %11054 = vmatmul.mubr.msk.f32.gmra.mrb[6].mxu1 %vm811_vm2, %v778_v42  ;;  %11582 = vmatmul.mubr.msk.f32.gmra.mrb[42].mxu0 %vm377_vm1, %v13396_v43  ;;  %v13592_v42 = vld [vmem:[%s13162_s26 + $0x12c] sm:$0xff] }
  0x6a   : > { %11056 = vmatprep.mubr.msk.f32.mxu1 %vm811_vm2, %v779_v44  ;;  %11584 = vmatprep.mubr.msk.f32.mxu0 %vm377_vm1, %v13400_v45  ;;  %v1201_v44 = vld [vmem:[%s13162_s26 + $0x1] sm:$0xff] }
  0x6d   : > { %11057 = vmatmul.mubr.msk.f32.gmra.mrb[8].mxu1 %vm811_vm2, %v780_v46  ;;  %11585 = vmatmul.mubr.msk.f32.gmra.mrb[44].mxu0 %vm377_vm1, %v13410_v47  ;;  %v5062_v46 = vld [vmem:[%s13316_s8 + $0x14] sm:$0xff] }
  0x6e   : > { %11059 = vmatprep.mubr.msk.f32.mxu1 %vm811_vm2, %v781_v48  ;;  %11587 = vmatprep.mubr.msk.f32.mxu0 %vm377_vm1, %v13414_v49  ;;  %v1668_v48 = vld [vmem:[%s16165_s4 + $0x30] sm:$0xff] }
  0x71   : > { %11060 = vmatmul.mubr.msk.f32.gmra.mrb[10].mxu1 %vm811_vm2, %v782_v50  ;;  %11588 = vmatmul.mubr.msk.f32.gmra.mrb[46].mxu0 %vm377_vm1, %v13424_v51  ;;  %v1669_v50 = vld [vmem:[%s16165_s4 + $0x38] sm:$0xff] }
  0x72   : > { %11062 = vmatprep.mubr.msk.f32.mxu1 %vm811_vm2, %v783_v52  ;;  %11590 = vmatprep.mubr.msk.f32.mxu0 %vm377_vm1, %v13428_v53  ;;  %v5956_v52 = vld [vmem:[%s16165_s4 + $0xc0] sm:$0xff] }
  0x75   : > { %11063 = vmatmul.mubr.msk.f32.gmra.mrb[12].mxu1 %vm811_vm2, %v784_v54  ;;  %11591 = vmatmul.mubr.msk.f32.gmra.mrb[48].mxu0 %vm377_vm1, %v13438_v55  ;;  %v5957_v54 = vld [vmem:[%s16165_s4 + $0xc8] sm:$0xff] }
  0x76   : > { %11065 = vmatprep.mubr.msk.f32.mxu1 %vm811_vm2, %v785_v56  ;;  %11593 = vmatprep.mubr.msk.f32.mxu0 %vm377_vm1, %v13442_v57  ;;  %v1202_v56 = vld [vmem:[%s13162_s26 + $0x9] sm:$0xff] }
  0x79   : > { %11066 = vmatmul.mubr.msk.f32.gmra.mrb[14].mxu1 %vm811_vm2, %v786_v58  ;;  %11594 = vmatmul.mubr.msk.f32.gmra.mrb[50].mxu0 %vm377_vm1, %v13452_v59  ;;  %v5063_v58 = vld [vmem:[%s13316_s8 + $0x1c] sm:$0xff] }
  0x7a   : > { %11068 = vmatprep.mubr.msk.f32.mxu1 %vm811_vm2, %v787_v60  ;;  %11596 = vmatprep.mubr.msk.f32.mxu0 %vm377_vm1, %v13456_v61  ;;  %v1203_v60 = vld [vmem:[%s13162_s26 + $0x11] sm:$0xff] }
  0x7d   : > { %11069 = vmatmul.mubr.msk.f32.gmra.mrb[16].mxu1 %vm811_vm2, %v788_v62  ;;  %11597 = vmatmul.mubr.msk.f32.gmra.mrb[52].mxu0 %vm377_vm1, %v13466_v63  ;;  %v13617_v62 = vld [vmem:[%s13316_s8 + $0x24] sm:$0xff] }
  0x7e   : > { %11071 = vmatprep.mubr.msk.f32.mxu1 %vm811_vm2, %v789_v0  ;;  %11599 = vmatprep.mubr.msk.f32.mxu0 %vm377_vm1, %v13470_v1  ;;  %v12054_v0 = vpack.c.bf16 %v1669_v50, %v1668_v48  ;;  %v13699_v48 = vld [vmem:[%s13316_s8 + $0x74] sm:$0xff]  ;;  %v1214_v50 = vld [vmem:[%s13162_s26 + $0x69] sm:$0xff] }
  0x81   : > { %11072 = vmatmul.mubr.msk.f32.gmra.mrb[18].mxu1 %vm811_vm2, %v790_v2  ;;  %11600 = vmatmul.mubr.msk.f32.gmra.mrb[54].mxu0 %vm377_vm1, %v13480_v3  ;;  %v13619_v2 = vpack.c.bf16 %v5957_v54, %v5956_v52  ;;  %v13709_v52 = vld [vmem:[%s13316_s8 + $0x7c] sm:$0xff]  ;;  %v1215_v54 = vld [vmem:[%s13162_s26 + $0x71] sm:$0xff] }
  0x82   : > { %11074 = vmatprep.mubr.msk.f32.mxu1 %vm811_vm2, %v791_v4  ;;  %11602 = vmatprep.mubr.msk.f32.mxu0 %vm377_vm1, %v13484_v5  ;;  %v1204_v4 = vld [vmem:[%s13162_s26 + $0x19] sm:$0xff] }
  0x85   : > { %11075 = vmatmul.mubr.msk.f32.gmra.mrb[20].mxu1 %vm811_vm2, %v792_v6  ;;  %11603 = vmatmul.mubr.msk.f32.gmra.mrb[56].mxu0 %vm377_vm1, %v13494_v7  ;;  %v13628_v6 = vld [vmem:[%s13316_s8 + $0x2c] sm:$0xff] }
  0x86   : > { %11077 = vmatprep.mubr.msk.f32.mxu1 %vm811_vm2, %v793_v8  ;;  %11605 = vmatprep.mubr.msk.f32.mxu0 %vm377_vm1, %v13498_v9  ;;  %v1205_v8 = vld [vmem:[%s13162_s26 + $0x21] sm:$0xff] }
  0x89   : > { %11078 = vmatmul.mubr.msk.f32.gmra.mrb[22].mxu1 %vm811_vm2, %v794_v10  ;;  %11606 = vmatmul.mubr.msk.f32.gmra.mrb[58].mxu0 %vm377_vm1, %v13508_v11  ;;  %v13635_v10 = vld [vmem:[%s13316_s8 + $0x34] sm:$0xff] }
  0x8a   : > { %11080 = vmatprep.mubr.msk.f32.mxu1 %vm811_vm2, %v795_v12  ;;  %11608 = vmatprep.mubr.msk.f32.mxu0 %vm377_vm1, %v13512_v13  ;;  %v13651_v12 = vld [vmem:[%s13316_s8 + $0x3c] sm:$0xff] }
  0x8d   : > { %11081 = vmatmul.mubr.msk.f32.gmra.mrb[24].mxu1 %vm811_vm2, %v796_v14  ;;  %11609 = vmatmul.mubr.msk.f32.gmra.mrb[60].mxu0 %vm377_vm1, %v13522_v15  ;;  %v1207_v14 = vld [vmem:[%s13162_s26 + $0x31] sm:$0xff] }
  0x8e   : > { %11083 = vmatprep.mubr.msk.f32.mxu1 %vm811_vm2, %v797_v16  ;;  %11611 = vmatprep.mubr.msk.f32.mxu0 %vm377_vm1, %v13526_v18  ;;  %v13655_v16 = vld [vmem:[%s13316_s8 + $0x44] sm:$0xff] }
  0x91   : > { %11084 = vmatmul.mubr.msk.f32.gmra.mrb[26].mxu1 %vm811_vm2, %v798_v19  ;;  %11612 = vmatmul.mubr.msk.f32.gmra.mrb[62].mxu0 %vm377_vm1, %v13536_v20  ;;  %v1208_v19 = vld [vmem:[%s13162_s26 + $0x39] sm:$0xff] }
  0x92   : > { %11086 = vmatprep.mubr.msk.f32.mxu1 %vm811_vm2, %v799_v21  ;;  %11614 = vmatprep.mubr.msk.f32.mxu0 %vm377_vm1, %v13540_v23  ;;  %v13667_v21 = vld [vmem:[%s13316_s8 + $0x4c] sm:$0xff] }
  0x95   : > { %11087 = vmatmul.mubr.msk.f32.gmra.mrb[28].mxu1 %vm811_vm2, %v800_v24  ;;  %11615 = vmatmul.mubr.msk.f32.gmra.mrb[64].mxu0 %vm377_vm1, %v13550_v25  ;;  %v1209_v24 = vld [vmem:[%s13162_s26 + $0x41] sm:$0xff] }
  0x96   : > { %11089 = vmatprep.mubr.msk.f32.mxu1 %vm811_vm2, %v801_v26  ;;  %11617 = vmatprep.mubr.msk.f32.mxu0 %vm377_vm1, %v13554_v27  ;;  %v13671_v26 = vld [vmem:[%s13316_s8 + $0x54] sm:$0xff] }
  0x99   : > { %11090 = vmatmul.mubr.msk.f32.gmra.mrb[30].mxu1 %vm811_vm2, %v802_v28  ;;  %11618 = vmatmul.mubr.msk.f32.gmra.mrb[66].mxu0 %vm377_vm1, %v13564_v29  ;;  %v1210_v28 = vld [vmem:[%s13162_s26 + $0x49] sm:$0xff] }
  0x9a   : > { %11092 = vmatprep.mubr.msk.f32.mxu1 %vm811_vm2, %v803_v30  ;;  %11620 = vmatprep.mubr.msk.f32.mxu0 %vm377_vm1, %v13568_v31  ;;  %v13681_v30 = vld [vmem:[%s13316_s8 + $0x5c] sm:$0xff] }
  0x9d   : > { %11093 = vmatmul.mubr.msk.f32.gmra.mrb[32].mxu1 %vm811_vm2, %v804_v33  ;;  %11621 = vmatmul.mubr.msk.f32.gmra.mrb[68].mxu0 %vm377_vm1, %v13578_v35  ;;  %v1211_v33 = vld [vmem:[%s13162_s26 + $0x51] sm:$0xff] }
  0x9e   : > { %11095 = vmatprep.mubr.msk.f32.mxu1 %vm811_vm2, %v805_v37  ;;  %11623 = vmatprep.mubr.msk.f32.mxu0 %vm377_vm1, %v13582_v22  ;;  %v13685_v37 = vld [vmem:[%s13316_s8 + $0x64] sm:$0xff] }
  0xa1   : > { %11096 = vmatmul.mubr.msk.f32.gmra.mrb[34].mxu1 %vm811_vm2, %v806_v40  ;;  %11624 = vmatmul.mubr.msk.f32.gmra.mrb[70].mxu0 %vm377_vm1, %v13592_v42  ;;  %v1212_v40 = vld [vmem:[%s13162_s26 + $0x59] sm:$0xff] }
  0xa2   : > { %11100 = vmatprep.mubr.msk.f32.mxu1 %vm377_vm1, %v1201_v44  ;;  %11634 = vmatprep.mubr.msk.f32.mxu0 %vm811_vm2, %v5062_v46  ;;  %v13695_v44 = vld [vmem:[%s13316_s8 + $0x6c] sm:$0xff]  ;;  %v1213_v46 = vld [vmem:[%s13162_s26 + $0x61] sm:$0xff] }
  0xa5   : > { %11101 = vmatmul.mubr.msk.f32.vlgmr.msra.gmra.mrb[0].mxu1 %vm377_vm1, %v1202_v56  ;;  %11635 = vmatmul.mubr.msk.f32.vlgmr.msra.gmra.mrb[36].mxu0 %vm811_vm2, %v5063_v58  ;;  %v13713_v56 = vld [vmem:[%s13316_s8 + $0x84] sm:$0xff]  ;;  %v1216_v58 = vld [vmem:[%s13162_s26 + $0x79] sm:$0xff] }
  0xa6   : > { %12053 = vmatpush3.bf16.msra.mxu1 %v13348_v34  ;;  %11689 = vmatpush3.msk.msra.mxu0 %vm486_vm0, %v13373_v17  ;;  %v13644_v34 = vld [vmem:[%s16164_s3 + $0x8] sm:$0xf] }
  0xa7   : > { %11103 = vmatprep.mubr.msk.f32.mxu1 %vm377_vm1, %v1203_v60  ;;  %11637 = vmatprep.mubr.msk.f32.mxu0 %vm811_vm2, %v13617_v62  ;;  %v1206_v17 = vld [vmem:[%s13162_s26 + $0x29] sm:$0xff] }
  0xa8   : > { %12055 = vmatprep.subr.bf16.mxu1 %v12054_v0  ;;  %12091 = vmatprep.subr.bf16.mxu0 %v13619_v2  ;;  %v13723_v60 = vld [vmem:[%s13316_s8 + $0x8c] sm:$0xff] }
  0xa9   : > { %11104 = vmatmul.mubr.msk.f32.gmra.mrb[2].mxu1 %vm377_vm1, %v1204_v4  ;;  %11638 = vmatmul.mubr.msk.f32.gmra.mrb[38].mxu0 %vm811_vm2, %v13628_v6  ;;  %v13727_v4 = vld [vmem:[%s13316_s8 + $0x94] sm:$0xff] }
  0xaa   : > { %11106 = vmatprep.mubr.msk.f32.mxu1 %vm377_vm1, %v1205_v8  ;;  %11640 = vmatprep.mubr.msk.f32.mxu0 %vm811_vm2, %v13635_v10  ;;  %v1218_v8 = vld [vmem:[%s13162_s26 + $0x89] sm:$0xff] }
  0xab   : > { %12057 = vmatpush3.bf16.msra.mxu1 %v12054_v0  ;;  %v1217_v0 = vld [vmem:[%s13162_s26 + $0x81] sm:$0xff] }
  0xac   : > { %11216 = vmatprep.subr.msk.mxu1 %vm486_vm0, %v13644_v34 }
  0xad   : > { %11107 = vmatmul.mubr.msk.f32.gmra.mrb[4].mxu1 %vm377_vm1, %v1206_v17  ;;  %11641 = vmatmul.mubr.msk.f32.gmra.mrb[40].mxu0 %vm811_vm2, %v13651_v12  ;;  %v13737_v17 = vld [vmem:[%s13316_s8 + $0x9c] sm:$0xff] }
  0xae   : > { %11109 = vmatprep.mubr.msk.f32.mxu1 %vm377_vm1, %v1207_v14  ;;  %11643 = vmatprep.mubr.msk.f32.mxu0 %vm811_vm2, %v13655_v16  ;;  %v1219_v14 = vld [vmem:[%s13162_s26 + $0x91] sm:$0xff] }
  0xb1   : > { %11110 = vmatmul.mubr.msk.f32.gmra.mrb[6].mxu1 %vm377_vm1, %v1208_v19  ;;  %11644 = vmatmul.mubr.msk.f32.gmra.mrb[42].mxu0 %vm811_vm2, %v13667_v21  ;;  %v13741_v19 = vld [vmem:[%s13316_s8 + $0xa4] sm:$0xff] }
  0xb2   : > { %11112 = vmatprep.mubr.msk.f32.mxu1 %vm377_vm1, %v1209_v24  ;;  %11646 = vmatprep.mubr.msk.f32.mxu0 %vm811_vm2, %v13671_v26  ;;  %v1220_v24 = vld [vmem:[%s13162_s26 + $0x99] sm:$0xff] }
  0xb5   : > { %11113 = vmatmul.mubr.msk.f32.gmra.mrb[8].mxu1 %vm377_vm1, %v1210_v28  ;;  %11647 = vmatmul.mubr.msk.f32.gmra.mrb[44].mxu0 %vm811_vm2, %v13681_v30  ;;  %v13751_v28 = vld [vmem:[%s13316_s8 + $0xac] sm:$0xff] }
  0xb6   : > { %11115 = vmatprep.mubr.msk.f32.mxu1 %vm377_vm1, %v1211_v33  ;;  %11649 = vmatprep.mubr.msk.f32.mxu0 %vm811_vm2, %v13685_v37  ;;  %16206 = vst [vmem:[#allocation2_spill] sm:$0xff] %v13751_v28  ;;  %v1221_v33 = vld [vmem:[%s13162_s26 + $0xa1] sm:$0xff] }
  0xb9   : > { %11116 = vmatmul.mubr.msk.f32.gmra.mrb[10].mxu1 %vm377_vm1, %v1212_v40  ;;  %11650 = vmatmul.mubr.msk.f32.gmra.mrb[46].mxu0 %vm811_vm2, %v13695_v44  ;;  %v13755_v40 = vld [vmem:[%s13316_s8 + $0xb4] sm:$0xff] }
  0xba   : > { %11118 = vmatprep.mubr.msk.f32.mxu1 %vm377_vm1, %v1213_v46  ;;  %11652 = vmatprep.mubr.msk.f32.mxu0 %vm811_vm2, %v13699_v48  ;;  %16207 = vst [vmem:[#allocation3_spill] sm:$0xff] %v13755_v40  ;;  %v1222_v46 = vld [vmem:[%s13162_s26 + $0xa9] sm:$0xff] }
  0xbd   : > { %11119 = vmatmul.mubr.msk.f32.gmra.mrb[12].mxu1 %vm377_vm1, %v1214_v50  ;;  %11653 = vmatmul.mubr.msk.f32.gmra.mrb[48].mxu0 %vm811_vm2, %v13709_v52  ;;  %v13765_v50 = vld [vmem:[%s13316_s8 + $0xbc] sm:$0xff] }
  0xbe   : > { %11121 = vmatprep.mubr.msk.f32.mxu1 %vm377_vm1, %v1215_v54  ;;  %11655 = vmatprep.mubr.msk.f32.mxu0 %vm811_vm2, %v13713_v56  ;;  %16208 = vst [vmem:[#allocation4_spill] sm:$0xff] %v13765_v50  ;;  %v1223_v54 = vld [vmem:[%s13162_s26 + $0xb1] sm:$0xff] }
  0xc1   : > { %11122 = vmatmul.mubr.msk.f32.gmra.mrb[14].mxu1 %vm377_vm1, %v1216_v58  ;;  %11656 = vmatmul.mubr.msk.f32.gmra.mrb[50].mxu0 %vm811_vm2, %v13723_v60  ;;  %v13769_v58 = vld [vmem:[%s13316_s8 + $0xc4] sm:$0xff] }
  0xc2   : > { %11124 = vmatprep.mubr.msk.f32.mxu1 %vm377_vm1, %v1217_v0  ;;  %11658 = vmatprep.mubr.msk.f32.mxu0 %vm811_vm2, %v13727_v4  ;;  %16209 = vst [vmem:[#allocation5_spill] sm:$0xff] %v13769_v58  ;;  %v1224_v0 = vld [vmem:[%s13162_s26 + $0xb9] sm:$0xff] }
  0xc5   : > { %11125 = vmatmul.mubr.msk.f32.gmra.mrb[16].mxu1 %vm377_vm1, %v1218_v8  ;;  %11659 = vmatmul.mubr.msk.f32.gmra.mrb[52].mxu0 %vm811_vm2, %v13737_v17  ;;  %v13779_v8 = vld [vmem:[%s13316_s8 + $0xcc] sm:$0xff] }
  0xc6   : > { %11127 = vmatprep.mubr.msk.f32.mxu1 %vm377_vm1, %v1219_v14  ;;  %11661 = vmatprep.mubr.msk.f32.mxu0 %vm811_vm2, %v13741_v19  ;;  %16210 = vst [vmem:[#allocation6_spill] sm:$0xff] %v13779_v8  ;;  %v1225_v14 = vld [vmem:[%s13162_s26 + $0xc1] sm:$0xff] }
  0xc9   : > { %11128 = vmatmul.mubr.msk.f32.gmra.mrb[18].mxu1 %vm377_vm1, %v1220_v24  ;;  %11662 = vmatmul.mubr.msk.f32.gmra.mrb[54].mxu0 %vm811_vm2, %v13751_v28  ;;  %v13783_v24 = vld [vmem:[%s13316_s8 + $0xd4] sm:$0xff] }
  0xca   : > { %11130 = vmatprep.mubr.msk.f32.mxu1 %vm377_vm1, %v1221_v33  ;;  %11664 = vmatprep.mubr.msk.f32.mxu0 %vm811_vm2, %v13755_v40  ;;  %16211 = vst [vmem:[#allocation7_spill] sm:$0xff] %v13783_v24  ;;  %v1226_v33 = vld [vmem:[%s13162_s26 + $0xc9] sm:$0xff] }
  0xcd   : > { %11131 = vmatmul.mubr.msk.f32.gmra.mrb[20].mxu1 %vm377_vm1, %v1222_v46  ;;  %11665 = vmatmul.mubr.msk.f32.gmra.mrb[56].mxu0 %vm811_vm2, %v13765_v50  ;;  %v13793_v46 = vld [vmem:[%s13316_s8 + $0xdc] sm:$0xff] }
  0xce   : > { %11133 = vmatprep.mubr.msk.f32.mxu1 %vm377_vm1, %v1223_v54  ;;  %11667 = vmatprep.mubr.msk.f32.mxu0 %vm811_vm2, %v13769_v58  ;;  %16212 = vst [vmem:[#allocation8_spill] sm:$0xff] %v13793_v46  ;;  %v1227_v54 = vld [vmem:[%s13162_s26 + $0xd1] sm:$0xff]  ;;  %v13797_v58 = vld [vmem:[%s13316_s8 + $0xe4] sm:$0xff] }
  0xcf   : > { %16213 = vst [vmem:[#allocation9_spill] sm:$0xff] %v13797_v58 }
  0xd1   : > { %11134 = vmatmul.mubr.msk.f32.gmra.mrb[22].mxu1 %vm377_vm1, %v1224_v0  ;;  %11668 = vmatmul.mubr.msk.f32.gmra.mrb[58].mxu0 %vm811_vm2, %v13779_v8  ;;  %v1228_v0 = vld [vmem:[%s13162_s26 + $0xd9] sm:$0xff] }
  0xd2   : > { %11136 = vmatprep.mubr.msk.f32.mxu1 %vm377_vm1, %v1225_v14  ;;  %11670 = vmatprep.mubr.msk.f32.mxu0 %vm811_vm2, %v13783_v24  ;;  %v13807_v14 = vld [vmem:[%s13316_s8 + $0xec] sm:$0xff]  ;;  %v1229_v24 = vld [vmem:[%s13162_s26 + $0xe1] sm:$0xff]  ;;  %v13811_v8 = vld [vmem:[%s13316_s8 + $0xf4] sm:$0xff] }
  0xd3   : > { %16214 = vst [vmem:[#allocation10_spill] sm:$0xff] %v13807_v14  ;;  %16215 = vst [vmem:[#allocation11_spill] sm:$0xff] %v13811_v8 }
  0xd5   : > { %11137 = vmatmul.mubr.msk.f32.gmra.mrb[24].mxu1 %vm377_vm1, %v1226_v33  ;;  %11671 = vmatmul.mubr.msk.f32.gmra.mrb[60].mxu0 %vm811_vm2, %v13793_v46  ;;  %v1230_v33 = vld [vmem:[%s13162_s26 + $0xe9] sm:$0xff] }
  0xd6   : > { %11139 = vmatprep.mubr.msk.f32.mxu1 %vm377_vm1, %v1227_v54  ;;  %11673 = vmatprep.mubr.msk.f32.mxu0 %vm811_vm2, %v13797_v58  ;;  %v13821_v54 = vld [vmem:[%s13316_s8 + $0xfc] sm:$0xff]  ;;  %v1231_v58 = vld [vmem:[%s13162_s26 + $0xf1] sm:$0xff]  ;;  %v13825_v46 = vld [vmem:[%s13316_s8 + $0x104] sm:$0xff] }
  0xd7   : > { %16216 = vst [vmem:[#allocation12_spill] sm:$0xff] %v13821_v54  ;;  %16217 = vst [vmem:[#allocation13_spill] sm:$0xff] %v13825_v46 }
  0xd9   : > { %11140 = vmatmul.mubr.msk.f32.gmra.mrb[26].mxu1 %vm377_vm1, %v1228_v0  ;;  %11674 = vmatmul.mubr.msk.f32.gmra.mrb[62].mxu0 %vm811_vm2, %v13807_v14  ;;  %v13835_v0 = vld [vmem:[%s13316_s8 + $0x10c] sm:$0xff]  ;;  %v13839_v14 = vld [vmem:[%s13316_s8 + $0x114] sm:$0xff] }
  0xda   : > { %11142 = vmatprep.mubr.msk.f32.mxu1 %vm377_vm1, %v1229_v24  ;;  %11676 = vmatprep.mubr.msk.f32.mxu0 %vm811_vm2, %v13811_v8  ;;  %v1232_v24 = vld [vmem:[%s13162_s26 + $0xf9] sm:$0xff]  ;;  %16218 = vst [vmem:[#allocation14_spill] sm:$0xff] %v13835_v0  ;;  %v1233_v8 = vld [vmem:[%s13162_s26 + $0x101] sm:$0xff]  ;;  %16219 = vst [vmem:[#allocation15_spill] sm:$0xff] %v13839_v14 }
  0xdd   : > { %11143 = vmatmul.mubr.msk.f32.gmra.mrb[28].mxu1 %vm377_vm1, %v1230_v33  ;;  %11677 = vmatmul.mubr.msk.f32.gmra.mrb[64].mxu0 %vm811_vm2, %v13821_v54  ;;  %v13849_v33 = vld [vmem:[%s13316_s8 + $0x11c] sm:$0xff]  ;;  %v13853_v54 = vld [vmem:[%s13316_s8 + $0x124] sm:$0xff] }
  0xde   : > { %11145 = vmatprep.mubr.msk.f32.mxu1 %vm377_vm1, %v1231_v58  ;;  %11679 = vmatprep.mubr.msk.f32.mxu0 %vm811_vm2, %v13825_v46  ;;  %v1234_v58 = vld [vmem:[%s13162_s26 + $0x109] sm:$0xff]  ;;  %16220 = vst [vmem:[#allocation16_spill] sm:$0xff] %v13849_v33  ;;  %v1235_v46 = vld [vmem:[%s13162_s26 + $0x111] sm:$0xff]  ;;  %16221 = vst [vmem:[#allocation17_spill] sm:$0xff] %v13853_v54 }
  0xe1   : > { %11146 = vmatmul.mubr.msk.f32.gmra.mrb[30].mxu1 %vm377_vm1, %v1232_v24  ;;  %11680 = vmatmul.mubr.msk.f32.gmra.mrb[66].mxu0 %vm811_vm2, %v13835_v0  ;;  %v13863_v24 = vld [vmem:[%s13316_s8 + $0x12c] sm:$0xff] }
  0xe2   : > { %11148 = vmatprep.mubr.msk.f32.mxu1 %vm377_vm1, %v1233_v8  ;;  %11682 = vmatprep.mubr.msk.f32.mxu0 %vm811_vm2, %v13839_v14  ;;  %v1236_v8 = vld [vmem:[%s13162_s26 + $0x119] sm:$0xff]  ;;  %16222 = vst [vmem:[#allocation18_spill] sm:$0xff] %v13863_v24  ;;  %v1630_v14 = vld [vmem:[%s13316_s8 + $0x1] sm:$0xff] }
  0xe5   : > { %11149 = vmatmul.mubr.msk.f32.gmra.mrb[32].mxu1 %vm377_vm1, %v1234_v58  ;;  %11683 = vmatmul.mubr.msk.f32.gmra.mrb[68].mxu0 %vm811_vm2, %v13849_v33  ;;  %v5958_v58 = vld [vmem:[%s16165_s4 + $0xd0] sm:$0xff]  ;;  %v2525_v33 = vld [vmem:[%s16165_s4 + $0x48] sm:$0xff] }
  0xe6   : > { %11151 = vmatprep.mubr.msk.f32.mxu1 %vm377_vm1, %v1235_v46  ;;  %11685 = vmatprep.mubr.msk.f32.mxu0 %vm811_vm2, %v13853_v54  ;;  %v5959_v54 = vld [vmem:[%s16165_s4 + $0xd8] sm:$0xff] }
  0xe7   : > { %v12094_v50 = vpack.c.bf16 %v5959_v54, %v5958_v58 }
  0xe8   : > { %v13866_v0 = vpop.f32.mrb[0].mxu0 }
  0xe9   : > { %16223 = vst [vmem:[#allocation19_spill] sm:$0xff] %v13866_v0  ;;  %11152 = vmatmul.mubr.msk.f32.gmra.mrb[34].mxu1 %vm377_vm1, %v1236_v8  ;;  %11686 = vmatmul.mubr.msk.f32.gmra.mrb[70].mxu0 %vm811_vm2, %v13863_v24  ;;  %v13874_v46 = vpop.f32.mrb[1].mxu0  ;;  %v2524_v0 = vld [vmem:[%s16165_s4 + $0x40] sm:$0xff]  ;;  %v1631_v8 = vld [vmem:[%s13316_s8 + $0x9] sm:$0xff]  ;;  %v1632_v24 = vld [vmem:[%s13316_s8 + $0x11] sm:$0xff] }
  0xea   : > { %16224 = vst [vmem:[#allocation20_spill] sm:$0xff] %v13874_v46  ;;  %11162 = vmatprep.mubr.msk.f32.mxu1 %vm811_vm2, %v1630_v14  ;;  %11690 = vmatprep.mubr.msk.f32.mxu0 %vm377_vm1, %v13346_v32  ;;  %v13892_v40 = vpack.c.bf16 %v2525_v33, %v2524_v0  ;;  %v1633_v32 = vld [vmem:[%s13316_s8 + $0x19] sm:$0xff]  ;;  %v1634_v14 = vld [vmem:[%s13316_s8 + $0x21] sm:$0xff] }
  0xec   : > { %v13889_v46 = vpop.f32.mrb[2].mxu0 }
  0xed   : > { %16225 = vst [vmem:[#allocation21_spill] sm:$0xff] %v13889_v46  ;;  %11163 = vmatmul.mubr.msk.f32.vlgmr.msra.gmra.mrb[0].mxu1 %vm811_vm2, %v1631_v8  ;;  %11691 = vmatmul.mubr.msk.f32.vlgmr.msra.gmra.mrb[36].mxu0 %vm377_vm1, %v13357_v36  ;;  %v13897_v28 = vpop.f32.mrb[3].mxu0  ;;  %v14579_v46 = vld [vmem:[%s13316_s8 + $0xd2] sm:$0xff] }
  0xee   : > { %16226 = vst [vmem:[#allocation22_spill] sm:$0xff] %v13897_v28  ;;  %11217 = vmatpush3.msk.msra.mxu1 %vm486_vm0, %v13644_v34  ;;  %12093 = vmatpush3.bf16.msra.mxu0 %v13619_v2  ;;  %v13918_v2 = vld [vmem:[%s16164_s3 + $0x1c] sm:$0xf]  ;;  %v1636_v34 = vld [vmem:[%s13316_s8 + $0x31] sm:$0xff]  ;;  %v6373_v28 = vld [vmem:[%s13162_s26 + $0xe5] sm:$0xff] }
  0xef   : > { %11165 = vmatprep.mubr.msk.f32.mxu1 %vm811_vm2, %v1632_v24  ;;  %11693 = vmatprep.mubr.msk.f32.mxu0 %vm377_vm1, %v13364_v38  ;;  %v1635_v38 = vld [vmem:[%s13316_s8 + $0x29] sm:$0xff] }
  0xf0   : > { %v13907_v54 = vpop.f32.mrb[4].mxu0  ;;  %12095 = vmatprep.subr.bf16.mxu0 %v12094_v50  ;;  %12059 = vmatprep.subr.bf16.mxu1 %v13892_v40 }
  0xf1   : > { %16227 = vst [vmem:[#allocation23_spill] sm:$0xff] %v13907_v54  ;;  %11166 = vmatmul.mubr.msk.f32.gmra.mrb[2].mxu1 %vm811_vm2, %v1633_v32  ;;  %11694 = vmatmul.mubr.msk.f32.gmra.mrb[38].mxu0 %vm377_vm1, %v13380_v39  ;;  %v13913_v36 = vpop.f32.mrb[5].mxu0  ;;  %v14565_v54 = vld [vmem:[%s13316_s8 + $0xc2] sm:$0xff] }
  0xf2   : > { %16228 = vst [vmem:[#allocation24_spill] sm:$0xff] %v13913_v36  ;;  %11168 = vmatprep.mubr.msk.f32.mxu1 %vm811_vm2, %v1634_v14  ;;  %11696 = vmatprep.mubr.msk.f32.mxu0 %vm377_vm1, %v13384_v41  ;;  %v1637_v41 = vld [vmem:[%s13316_s8 + $0x39] sm:$0xff] }
  0xf3   : > { %12097 = vmatpush3.bf16.msra.mxu0 %v12094_v50  ;;  %v1638_v50 = vld [vmem:[%s13316_s8 + $0x41] sm:$0xff]  ;;  %v6371_v36 = vld [vmem:[%s13162_s26 + $0xd5] sm:$0xff] }
  0xf4   : > { %v13925_v0 = vpop.f32.mrb[6].mxu0  ;;  %11806 = vmatprep.subr.msk.mxu0 %vm486_vm0, %v13918_v2 }
  0xf5   : > { %16229 = vst [vmem:[#allocation25_spill] sm:$0xff] %v13925_v0  ;;  %11169 = vmatmul.mubr.msk.f32.gmra.mrb[4].mxu1 %vm811_vm2, %v1635_v38  ;;  %11697 = vmatmul.mubr.msk.f32.gmra.mrb[40].mxu0 %vm377_vm1, %v13396_v43  ;;  %v13932_v39 = vpop.f32.mrb[7].mxu0  ;;  %v1639_v43 = vld [vmem:[%s13316_s8 + $0x49] sm:$0xff]  ;;  %v14551_v0 = vld [vmem:[%s13316_s8 + $0xb2] sm:$0xff] }
  0xf6   : > { %16230 = vst [vmem:[#allocation26_spill] sm:$0xff] %v13932_v39  ;;  %11171 = vmatprep.mubr.msk.f32.mxu1 %vm811_vm2, %v1636_v34  ;;  %11699 = vmatprep.mubr.msk.f32.mxu0 %vm377_vm1, %v13400_v45  ;;  %v1640_v45 = vld [vmem:[%s13316_s8 + $0x51] sm:$0xff]  ;;  %v6369_v39 = vld [vmem:[%s13162_s26 + $0xc5] sm:$0xff] }
  0xf8   : > { %v13939_v33 = vpop.f32.mrb[8].mxu0 }
  0xf9   : > { %16231 = vst [vmem:[#allocation27_spill] sm:$0xff] %v13939_v33  ;;  %11172 = vmatmul.mubr.msk.f32.gmra.mrb[6].mxu1 %vm811_vm2, %v1637_v41  ;;  %11700 = vmatmul.mubr.msk.f32.gmra.mrb[42].mxu0 %vm377_vm1, %v13410_v47  ;;  %v13944_v24 = vpop.f32.mrb[9].mxu0  ;;  %v1641_v47 = vld [vmem:[%s13316_s8 + $0x59] sm:$0xff]  ;;  %v14537_v33 = vld [vmem:[%s13316_s8 + $0xa2] sm:$0xff] }
  0xfa   : > { %16232 = vst [vmem:[#allocation28_spill] sm:$0xff] %v13944_v24  ;;  %11174 = vmatprep.mubr.msk.f32.mxu1 %vm811_vm2, %v1638_v50  ;;  %11702 = vmatprep.mubr.msk.f32.mxu0 %vm377_vm1, %v13414_v49  ;;  %v1642_v49 = vld [vmem:[%s13316_s8 + $0x61] sm:$0xff]  ;;  %v6367_v24 = vld [vmem:[%s13162_s26 + $0xb5] sm:$0xff] }
  0xfc   : > { %v13951_v58 = vpop.f32.mrb[10].mxu0 }
  0xfd   : > { %16233 = vst [vmem:[#allocation29_spill] sm:$0xff] %v13951_v58  ;;  %11175 = vmatmul.mubr.msk.f32.gmra.mrb[8].mxu1 %vm811_vm2, %v1639_v43  ;;  %11703 = vmatmul.mubr.msk.f32.gmra.mrb[44].mxu0 %vm377_vm1, %v13424_v51  ;;  %v13956_v8 = vpop.f32.mrb[11].mxu0  ;;  %v1643_v51 = vld [vmem:[%s13316_s8 + $0x69] sm:$0xff]  ;;  %v14523_v58 = vld [vmem:[%s13316_s8 + $0x92] sm:$0xff] }
  0xfe   : > { %16234 = vst [vmem:[#allocation30_spill] sm:$0xff] %v13956_v8  ;;  %11177 = vmatprep.mubr.msk.f32.mxu1 %vm811_vm2, %v1640_v45  ;;  %11705 = vmatprep.mubr.msk.f32.mxu0 %vm377_vm1, %v13428_v53  ;;  %v1644_v53 = vld [vmem:[%s13316_s8 + $0x71] sm:$0xff]  ;;  %v6365_v8 = vld [vmem:[%s13162_s26 + $0xa5] sm:$0xff] }
 0x100   : > { %v13963_v32 = vpop.f32.mrb[12].mxu0 }
 0x101   : > { %16235 = vst [vmem:[#allocation31_spill] sm:$0xff] %v13963_v32  ;;  %11178 = vmatmul.mubr.msk.f32.gmra.mrb[10].mxu1 %vm811_vm2, %v1641_v47  ;;  %11706 = vmatmul.mubr.msk.f32.gmra.mrb[46].mxu0 %vm377_vm1, %v13438_v55  ;;  %v13968_v14 = vpop.f32.mrb[13].mxu0  ;;  %v1645_v55 = vld [vmem:[%s13316_s8 + $0x79] sm:$0xff]  ;;  %v14509_v32 = vld [vmem:[%s13316_s8 + $0x82] sm:$0xff] }
 0x102   : > { %16236 = vst [vmem:[#allocation32_spill] sm:$0xff] %v13968_v14  ;;  %11180 = vmatprep.mubr.msk.f32.mxu1 %vm811_vm2, %v1642_v49  ;;  %11708 = vmatprep.mubr.msk.f32.mxu0 %vm377_vm1, %v13442_v57  ;;  %v1646_v57 = vld [vmem:[%s13316_s8 + $0x81] sm:$0xff]  ;;  %v6363_v14 = vld [vmem:[%s13162_s26 + $0x95] sm:$0xff] }
 0x104   : > { %v13975_v38 = vpop.f32.mrb[14].mxu0 }
 0x105   : > { %16237 = vst [vmem:[#allocation33_spill] sm:$0xff] %v13975_v38  ;;  %11181 = vmatmul.mubr.msk.f32.gmra.mrb[12].mxu1 %vm811_vm2, %v1643_v51  ;;  %11709 = vmatmul.mubr.msk.f32.gmra.mrb[48].mxu0 %vm377_vm1, %v13452_v59  ;;  %v13980_v34 = vpop.f32.mrb[15].mxu0  ;;  %v1647_v59 = vld [vmem:[%s13316_s8 + $0x89] sm:$0xff]  ;;  %v14495_v38 = vld [vmem:[%s13316_s8 + $0x72] sm:$0xff] }
 0x106   : > { %16238 = vst [vmem:[#allocation34_spill] sm:$0xff] %v13980_v34  ;;  %11183 = vmatprep.mubr.msk.f32.mxu1 %vm811_vm2, %v1644_v53  ;;  %11711 = vmatprep.mubr.msk.f32.mxu0 %vm377_vm1, %v13456_v61  ;;  %v1648_v61 = vld [vmem:[%s13316_s8 + $0x91] sm:$0xff]  ;;  %v6361_v34 = vld [vmem:[%s13162_s26 + $0x85] sm:$0xff] }
 0x108   : > { %v13987_v41 = vpop.f32.mrb[16].mxu0 }
 0x109   : > { %16239 = vst [vmem:[#allocation35_spill] sm:$0xff] %v13987_v41  ;;  %11184 = vmatmul.mubr.msk.f32.gmra.mrb[14].mxu1 %vm811_vm2, %v1645_v55  ;;  %11712 = vmatmul.mubr.msk.f32.gmra.mrb[50].mxu0 %vm377_vm1, %v13466_v63  ;;  %v13992_v50 = vpop.f32.mrb[17].mxu0  ;;  %v1649_v63 = vld [vmem:[%s13316_s8 + $0x99] sm:$0xff]  ;;  %v14481_v41 = vld [vmem:[%s13316_s8 + $0x62] sm:$0xff] }
 0x10a   : > { %16240 = vst [vmem:[#allocation36_spill] sm:$0xff] %v13992_v50  ;;  %11186 = vmatprep.mubr.msk.f32.mxu1 %vm811_vm2, %v1646_v57  ;;  %11714 = vmatprep.mubr.msk.f32.mxu0 %vm377_vm1, %v13470_v1  ;;  %v1650_v1 = vld [vmem:[%s13316_s8 + $0xa1] sm:$0xff]  ;;  %v6359_v50 = vld [vmem:[%s13162_s26 + $0x75] sm:$0xff] }
 0x10c   : > { %v13999_v43 = vpop.f32.mrb[18].mxu0 }
 0x10d   : > { %16241 = vst [vmem:[#allocation37_spill] sm:$0xff] %v13999_v43  ;;  %11187 = vmatmul.mubr.msk.f32.gmra.mrb[16].mxu1 %vm811_vm2, %v1647_v59  ;;  %11715 = vmatmul.mubr.msk.f32.gmra.mrb[52].mxu0 %vm377_vm1, %v13480_v3  ;;  %v14004_v45 = vpop.f32.mrb[19].mxu0  ;;  %v1651_v3 = vld [vmem:[%s13316_s8 + $0xa9] sm:$0xff] }
 0x10e   : > { %16242 = vst [vmem:[#allocation38_spill] sm:$0xff] %v14004_v45  ;;  %11189 = vmatprep.mubr.msk.f32.mxu1 %vm811_vm2, %v1648_v61  ;;  %11717 = vmatprep.mubr.msk.f32.mxu0 %vm377_vm1, %v13484_v5  ;;  %v1652_v5 = vld [vmem:[%s13316_s8 + $0xb1] sm:$0xff] }
 0x110   : > { %v14011_v47 = vpop.f32.mrb[20].mxu0 }
 0x111   : > { %16243 = vst [vmem:[#allocation39_spill] sm:$0xff] %v14011_v47  ;;  %11190 = vmatmul.mubr.msk.f32.gmra.mrb[18].mxu1 %vm811_vm2, %v1649_v63  ;;  %11718 = vmatmul.mubr.msk.f32.gmra.mrb[54].mxu0 %vm377_vm1, %v13494_v7  ;;  %v14016_v49 = vpop.f32.mrb[21].mxu0  ;;  %v1653_v7 = vld [vmem:[%s13316_s8 + $0xb9] sm:$0xff] }
 0x112   : > { %16244 = vst [vmem:[#allocation40_spill] sm:$0xff] %v14016_v49  ;;  %11192 = vmatprep.mubr.msk.f32.mxu1 %vm811_vm2, %v1650_v1  ;;  %11720 = vmatprep.mubr.msk.f32.mxu0 %vm377_vm1, %v13498_v9  ;;  %v1654_v9 = vld [vmem:[%s13316_s8 + $0xc1] sm:$0xff]  ;;  %v14399_v49 = vld [vmem:[%s13316_s8 + $0x12] sm:$0xff] }
 0x113   : > { %v6351_v47 = vld [vmem:[%s13162_s26 + $0x35] sm:$0xff] }
 0x114   : > { %v14023_v51 = vpop.f32.mrb[22].mxu0 }
 0x115   : > { %16245 = vst [vmem:[#allocation41_spill] sm:$0xff] %v14023_v51  ;;  %11193 = vmatmul.mubr.msk.f32.gmra.mrb[20].mxu1 %vm811_vm2, %v1651_v3  ;;  %11721 = vmatmul.mubr.msk.f32.gmra.mrb[56].mxu0 %vm377_vm1, %v13508_v11  ;;  %v14028_v53 = vpop.f32.mrb[23].mxu0  ;;  %v1655_v11 = vld [vmem:[%s13316_s8 + $0xc9] sm:$0xff] }
 0x116   : > { %16246 = vst [vmem:[#allocation42_spill] sm:$0xff] %v14028_v53  ;;  %11195 = vmatprep.mubr.msk.f32.mxu1 %vm811_vm2, %v1652_v5  ;;  %11723 = vmatprep.mubr.msk.f32.mxu0 %vm377_vm1, %v13512_v13  ;;  %v1656_v13 = vld [vmem:[%s13316_s8 + $0xd1] sm:$0xff]  ;;  %v1662_v5 = vld [vmem:[%s13316_s8 + $0x101] sm:$0xff] }
 0x117   : > { %v3383_v53 = vld [vmem:[%s16165_s4 + $0x68] sm:$0xff] }
 0x118   : > { %v14035_v55 = vpop.f32.mrb[24].mxu0  ;;  %v6350_v51 = vld [vmem:[%s13162_s26 + $0x2d] sm:$0xff] }
 0x119   : > { %16247 = vst [vmem:[#allocation43_spill] sm:$0xff] %v14035_v55  ;;  %11196 = vmatmul.mubr.msk.f32.gmra.mrb[22].mxu1 %vm811_vm2, %v1653_v7  ;;  %11724 = vmatmul.mubr.msk.f32.gmra.mrb[58].mxu0 %vm377_vm1, %v13522_v15  ;;  %v14040_v57 = vpop.f32.mrb[25].mxu0  ;;  %v1657_v15 = vld [vmem:[%s13316_s8 + $0xd9] sm:$0xff]  ;;  %v6816_v55 = vld [vmem:[%s16165_s4 + $0xf0] sm:$0xff] }
 0x11a   : > { %16248 = vst [vmem:[#allocation44_spill] sm:$0xff] %v14040_v57  ;;  %11198 = vmatprep.mubr.msk.f32.mxu1 %vm811_vm2, %v1654_v9  ;;  %11726 = vmatprep.mubr.msk.f32.mxu0 %vm377_vm1, %v13526_v18  ;;  %v1658_v18 = vld [vmem:[%s13316_s8 + $0xe1] sm:$0xff]  ;;  %v1664_v9 = vld [vmem:[%s13316_s8 + $0x111] sm:$0xff] }
 0x11b   : > { %v6349_v57 = vld [vmem:[%s13162_s26 + $0x25] sm:$0xff] }
 0x11c   : > { %v14047_v59 = vpop.f32.mrb[26].mxu0 }
 0x11d   : > { %16249 = vst [vmem:[#allocation45_spill] sm:$0xff] %v14047_v59  ;;  %11199 = vmatmul.mubr.msk.f32.gmra.mrb[24].mxu1 %vm811_vm2, %v1655_v11  ;;  %11727 = vmatmul.mubr.msk.f32.gmra.mrb[60].mxu0 %vm377_vm1, %v13536_v20  ;;  %v14052_v61 = vpop.f32.mrb[27].mxu0  ;;  %v1659_v20 = vld [vmem:[%s13316_s8 + $0xe9] sm:$0xff]  ;;  %v5525_v11 = vld [vmem:[%s13162_s26 + $0x134] sm:$0xff] }
 0x11e   : > { %16250 = vst [vmem:[#allocation46_spill] sm:$0xff] %v14052_v61  ;;  %11201 = vmatprep.mubr.msk.f32.mxu1 %vm811_vm2, %v1656_v13  ;;  %11729 = vmatprep.mubr.msk.f32.mxu0 %vm377_vm1, %v13540_v23  ;;  %v1660_v23 = vld [vmem:[%s13316_s8 + $0xf1] sm:$0xff]  ;;  %v16275_v61 = vld [vmem:[#allocation18_spill] sm:$0xff] }
 0x11f   : > { %v2488_v59 = vld [vmem:[%s13316_s8 + $0x2] sm:$0xff] }
 0x120   : > { %v14059_v63 = vpop.f32.mrb[28].mxu0 }
 0x121   : > { %16251 = vst [vmem:[#allocation47_spill] sm:$0xff] %v14059_v63  ;;  %11202 = vmatmul.mubr.msk.f32.gmra.mrb[26].mxu1 %vm811_vm2, %v1657_v15  ;;  %11730 = vmatmul.mubr.msk.f32.gmra.mrb[62].mxu0 %vm377_vm1, %v13550_v25  ;;  %v14064_v1 = vpop.f32.mrb[29].mxu0  ;;  %v1665_v15 = vld [vmem:[%s13316_s8 + $0x119] sm:$0xff] }
 0x122   : > { %16252 = vst [vmem:[#allocation48_spill] sm:$0xff] %v14064_v1  ;;  %11204 = vmatprep.mubr.msk.f32.mxu1 %vm811_vm2, %v1658_v18  ;;  %11732 = vmatprep.mubr.msk.f32.mxu0 %vm377_vm1, %v13554_v27  ;;  %v1661_v27 = vld [vmem:[%s13316_s8 + $0xf9] sm:$0xff]  ;;  %v2059_v18 = vld [vmem:[%s13162_s26 + $0x2] sm:$0xff]  ;;  %v14360_v1 = vld [vmem:[%s13162_s26 + $0x10a] sm:$0xff] }
 0x123   : > { %v5954_v63 = vld [vmem:[%s13316_s8 + $0x134] sm:$0xff] }
 0x124   : > { %v14071_v3 = vpop.f32.mrb[30].mxu0 }
 0x125   : > { %16253 = vst [vmem:[#allocation49_spill] sm:$0xff] %v14071_v3  ;;  %11205 = vmatmul.mubr.msk.f32.gmra.mrb[28].mxu1 %vm811_vm2, %v1659_v20  ;;  %11733 = vmatmul.mubr.msk.f32.gmra.mrb[64].mxu0 %vm377_vm1, %v13564_v29  ;;  %v14076_v25 = vpop.f32.mrb[31].mxu0  ;;  %v2526_v20 = vld [vmem:[%s16165_s4 + $0x50] sm:$0xff] }
 0x126   : > { %16254 = vst [vmem:[#allocation50_spill] sm:$0xff] %v14076_v25  ;;  %11207 = vmatprep.mubr.msk.f32.mxu1 %vm811_vm2, %v1660_v23  ;;  %11735 = vmatprep.mubr.msk.f32.mxu0 %vm377_vm1, %v13568_v31  ;;  %v1663_v31 = vld [vmem:[%s13316_s8 + $0x109] sm:$0xff]  ;;  %v6814_v23 = vld [vmem:[%s16165_s4 + $0xe0] sm:$0xff] }
 0x127   : > { %v14349_v25 = vld [vmem:[%s13162_s26 + $0x102] sm:$0xff]  ;;  %v16273_v3 = vld [vmem:[#allocation16_spill] sm:$0xff] }
 0x128   : > { %v14083_v7 = vpop.f32.mrb[32].mxu0 }
 0x129   : > { %16255 = vst [vmem:[#allocation51_spill] sm:$0xff] %v14083_v7  ;;  %11208 = vmatmul.mubr.msk.f32.gmra.mrb[30].mxu1 %vm811_vm2, %v1661_v27  ;;  %11736 = vmatmul.mubr.msk.f32.gmra.mrb[66].mxu0 %vm377_vm1, %v13578_v35  ;;  %v14088_v29 = vpop.f32.mrb[33].mxu0  ;;  %v6815_v27 = vld [vmem:[%s16165_s4 + $0xe8] sm:$0xff]  ;;  %v16271_v7 = vld [vmem:[#allocation14_spill] sm:$0xff] }
 0x12a   : > { %16256 = vst [vmem:[#allocation52_spill] sm:$0xff] %v14088_v29  ;;  %11210 = vmatprep.mubr.msk.f32.mxu1 %vm811_vm2, %v1662_v5  ;;  %11738 = vmatprep.mubr.msk.f32.mxu0 %vm377_vm1, %v13582_v22  ;;  %v5526_v22 = vld [vmem:[%s13162_s26 + $0x13c] sm:$0xff]  ;;  %v2060_v5 = vld [vmem:[%s13162_s26 + $0xa] sm:$0xff]  ;;  %v14335_v29 = vld [vmem:[%s13162_s26 + $0xf2] sm:$0xff] }
 0x12c   : > { %v14096_v13 = vpop.f32.mrb[34].mxu0 }
 0x12d   : > { %16257 = vst [vmem:[#allocation53_spill] sm:$0xff] %v14096_v13  ;;  %11211 = vmatmul.mubr.msk.f32.gmra.mrb[32].mxu1 %vm811_vm2, %v1663_v31  ;;  %11739 = vmatmul.mubr.msk.f32.gmra.mrb[68].mxu0 %vm377_vm1, %v13592_v42  ;;  %v14101_v35 = vpop.f32.mrb[35].mxu0  ;;  %v2527_v42 = vld [vmem:[%s16165_s4 + $0x58] sm:$0xff]  ;;  %v16269_v13 = vld [vmem:[#allocation12_spill] sm:$0xff] }
 0x12e   : > { %16258 = vst [vmem:[#allocation54_spill] sm:$0xff] %v14101_v35  ;;  %11213 = vmatprep.mubr.msk.f32.mxu1 %vm811_vm2, %v1664_v9  ;;  %11741 = vmatprep.mubr.msk.f32.mxu0 %vm377_vm1, %v5525_v11  ;;  %v14127_v31 = vld [vmem:[%s13162_s26 + $0x12] sm:$0xff]  ;;  %v12062_v9 = vpack.c.bf16 %v2527_v42, %v2526_v20  ;;  %v14129_v11 = vpack.c.bf16 %v6815_v27, %v6814_v23  ;;  %v14276_v42 = vld [vmem:[%s13162_s26 + $0xaa] sm:$0xff]  ;;  %v16263_v27 = vld [vmem:[#allocation6_spill] sm:$0xff] }
 0x12f   : > { %v16262_v20 = vld [vmem:[#allocation5_spill] sm:$0xff]  ;;  %16280 = vst [vmem:[#allocation6_spill] sm:$0xff] %v14565_v54 }
 0x130   : > { %v14279_v23 = vld [vmem:[%s13162_s26 + $0xb2] sm:$0xff]  ;;  %v14318_v35 = vld [vmem:[%s13162_s26 + $0xda] sm:$0xff] }
 0x131   : > { %11214 = vmatmul.mubr.msk.f32.gmra.mrb[34].mxu1 %vm811_vm2, %v1665_v15  ;;  %11742 = vmatmul.mubr.msk.f32.gmra.mrb[70].mxu0 %vm377_vm1, %v5526_v22  ;;  %v14138_v15 = vld [vmem:[%s13162_s26 + $0x1a] sm:$0xff] }
 0x132   : > { %11218 = vmatprep.mubr.msk.f32.mxu1 %vm377_vm1, %v2059_v18  ;;  %11752 = vmatprep.mubr.msk.f32.mxu0 %vm811_vm2, %v13617_v62  ;;  %v14145_v62 = vld [vmem:[%s13162_s26 + $0x22] sm:$0xff]  ;;  %v14262_v22 = vld [vmem:[%s13162_s26 + $0x9a] sm:$0xff]  ;;  %v16261_v18 = vld [vmem:[#allocation4_spill] sm:$0xff] }
 0x133   : > { %16278 = vst [vmem:[#allocation4_spill] sm:$0xff] %v14551_v0 }
 0x135   : > { %11219 = vmatmul.mubr.msk.f32.vlgmr.msra.gmra.mrb[0].mxu1 %vm377_vm1, %v2060_v5  ;;  %11753 = vmatmul.mubr.msk.f32.vlgmr.msra.gmra.mrb[36].mxu0 %vm811_vm2, %v13628_v6  ;;  %v14155_v6 = vld [vmem:[%s16164_s3 + $0xc] sm:$0xf] }
 0x136   : > { %12061 = vmatpush3.bf16.msra.mxu1 %v13892_v40  ;;  %11807 = vmatpush3.msk.msra.mxu0 %vm486_vm0, %v13918_v2  ;;  %v14165_v40 = vld [vmem:[%s13162_s26 + $0x32] sm:$0xff]  ;;  %v16259_v2 = vld [vmem:[#allocation2_spill] sm:$0xff]  ;;  %v16264_v5 = vld [vmem:[#allocation7_spill] sm:$0xff] }
 0x137   : > { %11221 = vmatprep.mubr.msk.f32.mxu1 %vm377_vm1, %v14127_v31  ;;  %11755 = vmatprep.mubr.msk.f32.mxu0 %vm811_vm2, %v13635_v10  ;;  %v14162_v10 = vld [vmem:[%s13162_s26 + $0x2a] sm:$0xff]  ;;  %16276 = vst [vmem:[#allocation2_spill] sm:$0xff] %v14537_v33 }
 0x138   : > { %12063 = vmatprep.subr.bf16.mxu1 %v12062_v9  ;;  %12099 = vmatprep.subr.bf16.mxu0 %v14129_v11 }
 0x139   : > { %11222 = vmatmul.mubr.msk.f32.gmra.mrb[2].mxu1 %vm377_vm1, %v14138_v15  ;;  %11756 = vmatmul.mubr.msk.f32.gmra.mrb[38].mxu0 %vm811_vm2, %v13651_v12  ;;  %v14178_v12 = vld [vmem:[%s13162_s26 + $0x3a] sm:$0xff] }
 0x13a   : > { %11224 = vmatprep.mubr.msk.f32.mxu1 %vm377_vm1, %v14145_v62  ;;  %11758 = vmatprep.mubr.msk.f32.mxu0 %vm811_vm2, %v13655_v16  ;;  %v14181_v16 = vld [vmem:[%s13162_s26 + $0x42] sm:$0xff] }
 0x13b   : > { %12065 = vmatpush3.bf16.msra.mxu1 %v12062_v9  ;;  %v14290_v9 = vld [vmem:[%s13162_s26 + $0xba] sm:$0xff] }
 0x13c   : > { %11334 = vmatprep.subr.msk.mxu1 %vm486_vm0, %v14155_v6 }
 0x13d   : > { %11225 = vmatmul.mubr.msk.f32.gmra.mrb[4].mxu1 %vm377_vm1, %v14162_v10  ;;  %11759 = vmatmul.mubr.msk.f32.gmra.mrb[40].mxu0 %vm811_vm2, %v13667_v21  ;;  %v14192_v21 = vld [vmem:[%s13162_s26 + $0x4a] sm:$0xff] }
 0x13e   : > { %11227 = vmatprep.mubr.msk.f32.mxu1 %vm377_vm1, %v14165_v40  ;;  %11761 = vmatprep.mubr.msk.f32.mxu0 %vm811_vm2, %v13671_v26  ;;  %v14195_v26 = vld [vmem:[%s13162_s26 + $0x52] sm:$0xff] }
 0x141   : > { %11228 = vmatmul.mubr.msk.f32.gmra.mrb[6].mxu1 %vm377_vm1, %v14178_v12  ;;  %11762 = vmatmul.mubr.msk.f32.gmra.mrb[42].mxu0 %vm811_vm2, %v13681_v30  ;;  %v14206_v30 = vld [vmem:[%s13162_s26 + $0x5a] sm:$0xff] }
 0x142   : > { %11230 = vmatprep.mubr.msk.f32.mxu1 %vm377_vm1, %v14181_v16  ;;  %11764 = vmatprep.mubr.msk.f32.mxu0 %vm811_vm2, %v13685_v37  ;;  %v14209_v37 = vld [vmem:[%s13162_s26 + $0x62] sm:$0xff] }
 0x145   : > { %11231 = vmatmul.mubr.msk.f32.gmra.mrb[8].mxu1 %vm377_vm1, %v14192_v21  ;;  %11765 = vmatmul.mubr.msk.f32.gmra.mrb[44].mxu0 %vm811_vm2, %v13695_v44  ;;  %v14220_v44 = vld [vmem:[%s13162_s26 + $0x6a] sm:$0xff] }
 0x146   : > { %11233 = vmatprep.mubr.msk.f32.mxu1 %vm377_vm1, %v14195_v26  ;;  %11767 = vmatprep.mubr.msk.f32.mxu0 %vm811_vm2, %v13699_v48  ;;  %v14223_v48 = vld [vmem:[%s13162_s26 + $0x72] sm:$0xff] }
 0x149   : > { %11234 = vmatmul.mubr.msk.f32.gmra.mrb[10].mxu1 %vm377_vm1, %v14206_v30  ;;  %11768 = vmatmul.mubr.msk.f32.gmra.mrb[46].mxu0 %vm811_vm2, %v13709_v52  ;;  %v14234_v52 = vld [vmem:[%s13162_s26 + $0x7a] sm:$0xff] }
 0x14a   : > { %11236 = vmatprep.mubr.msk.f32.mxu1 %vm377_vm1, %v14209_v37  ;;  %11770 = vmatprep.mubr.msk.f32.mxu0 %vm811_vm2, %v13713_v56  ;;  %v14237_v56 = vld [vmem:[%s13162_s26 + $0x82] sm:$0xff] }
 0x14d   : > { %11237 = vmatmul.mubr.msk.f32.gmra.mrb[12].mxu1 %vm377_vm1, %v14220_v44  ;;  %11771 = vmatmul.mubr.msk.f32.gmra.mrb[48].mxu0 %vm811_vm2, %v13723_v60  ;;  %v14248_v60 = vld [vmem:[%s13162_s26 + $0x8a] sm:$0xff] }
 0x14e   : > { %11239 = vmatprep.mubr.msk.f32.mxu1 %vm377_vm1, %v14223_v48  ;;  %11773 = vmatprep.mubr.msk.f32.mxu0 %vm811_vm2, %v13727_v4  ;;  %v14251_v4 = vld [vmem:[%s13162_s26 + $0x92] sm:$0xff] }
 0x151   : > { %11240 = vmatmul.mubr.msk.f32.gmra.mrb[14].mxu1 %vm377_vm1, %v14234_v52  ;;  %11774 = vmatmul.mubr.msk.f32.gmra.mrb[50].mxu0 %vm811_vm2, %v13737_v17  ;;  %v16260_v17 = vld [vmem:[#allocation3_spill] sm:$0xff] }
 0x152   : > { %11242 = vmatprep.mubr.msk.f32.mxu1 %vm377_vm1, %v14237_v56  ;;  %11776 = vmatprep.mubr.msk.f32.mxu0 %vm811_vm2, %v13741_v19  ;;  %v14265_v19 = vld [vmem:[%s13162_s26 + $0xa2] sm:$0xff] }
 0x155   : > { %11243 = vmatmul.mubr.msk.f32.gmra.mrb[16].mxu1 %vm377_vm1, %v14248_v60  ;;  %11777 = vmatmul.mubr.msk.f32.gmra.mrb[52].mxu0 %vm811_vm2, %v16259_v2  ;;  %v14293_v2 = vld [vmem:[%s13162_s26 + $0xc2] sm:$0xff] }
 0x156   : > { %11245 = vmatprep.mubr.msk.f32.mxu1 %vm377_vm1, %v14251_v4  ;;  %11779 = vmatprep.mubr.msk.f32.mxu0 %vm811_vm2, %v16260_v17  ;;  %v16265_v17 = vld [vmem:[#allocation8_spill] sm:$0xff] }
 0x157   : > { %16282 = vst [vmem:[#allocation8_spill] sm:$0xff] %v14579_v46 }
 0x159   : > { %11246 = vmatmul.mubr.msk.f32.gmra.mrb[18].mxu1 %vm377_vm1, %v14262_v22  ;;  %11780 = vmatmul.mubr.msk.f32.gmra.mrb[54].mxu0 %vm811_vm2, %v16261_v18  ;;  %v16266_v18 = vld [vmem:[#allocation9_spill] sm:$0xff] }
 0x15a   : > { %11248 = vmatprep.mubr.msk.f32.mxu1 %vm377_vm1, %v14265_v19  ;;  %11782 = vmatprep.mubr.msk.f32.mxu0 %vm811_vm2, %v16262_v20  ;;  %v14304_v20 = vld [vmem:[%s13162_s26 + $0xca] sm:$0xff] }
 0x15d   : > { %11249 = vmatmul.mubr.msk.f32.gmra.mrb[20].mxu1 %vm377_vm1, %v14276_v42  ;;  %11783 = vmatmul.mubr.msk.f32.gmra.mrb[56].mxu0 %vm811_vm2, %v16263_v27  ;;  %v14307_v27 = vld [vmem:[%s13162_s26 + $0xd2] sm:$0xff] }
 0x15e   : > { %11251 = vmatprep.mubr.msk.f32.mxu1 %vm377_vm1, %v14279_v23  ;;  %11785 = vmatprep.mubr.msk.f32.mxu0 %vm811_vm2, %v16264_v5  ;;  %v16267_v5 = vld [vmem:[#allocation10_spill] sm:$0xff] }
 0x161   : > { %11252 = vmatmul.mubr.msk.f32.gmra.mrb[22].mxu1 %vm377_vm1, %v14290_v9  ;;  %11786 = vmatmul.mubr.msk.f32.gmra.mrb[58].mxu0 %vm811_vm2, %v16265_v17  ;;  %v16268_v17 = vld [vmem:[#allocation11_spill] sm:$0xff] }
 0x162   : > { %11254 = vmatprep.mubr.msk.f32.mxu1 %vm377_vm1, %v14293_v2  ;;  %11788 = vmatprep.mubr.msk.f32.mxu0 %vm811_vm2, %v16266_v18  ;;  %v14321_v18 = vld [vmem:[%s13162_s26 + $0xe2] sm:$0xff] }
 0x165   : > { %11255 = vmatmul.mubr.msk.f32.gmra.mrb[24].mxu1 %vm377_vm1, %v14304_v20  ;;  %11789 = vmatmul.mubr.msk.f32.gmra.mrb[60].mxu0 %vm811_vm2, %v16267_v5  ;;  %v16270_v5 = vld [vmem:[#allocation13_spill] sm:$0xff] }
 0x166   : > { %11257 = vmatprep.mubr.msk.f32.mxu1 %vm377_vm1, %v14307_v27  ;;  %11791 = vmatprep.mubr.msk.f32.mxu0 %vm811_vm2, %v16268_v17  ;;  %v14332_v17 = vld [vmem:[%s13162_s26 + $0xea] sm:$0xff] }
 0x169   : > { %11258 = vmatmul.mubr.msk.f32.gmra.mrb[26].mxu1 %vm377_vm1, %v14318_v35  ;;  %11792 = vmatmul.mubr.msk.f32.gmra.mrb[62].mxu0 %vm811_vm2, %v16269_v13  ;;  %v16272_v13 = vld [vmem:[#allocation15_spill] sm:$0xff] }
 0x16a   : > { %11260 = vmatprep.mubr.msk.f32.mxu1 %vm377_vm1, %v14321_v18  ;;  %11794 = vmatprep.mubr.msk.f32.mxu0 %vm811_vm2, %v16270_v5  ;;  %v14346_v5 = vld [vmem:[%s13162_s26 + $0xfa] sm:$0xff] }
 0x16d   : > { %11261 = vmatmul.mubr.msk.f32.gmra.mrb[28].mxu1 %vm377_vm1, %v14332_v17  ;;  %11795 = vmatmul.mubr.msk.f32.gmra.mrb[64].mxu0 %vm811_vm2, %v16271_v7  ;;  %v16274_v7 = vld [vmem:[#allocation17_spill] sm:$0xff] }
 0x16e   : > { %11263 = vmatprep.mubr.msk.f32.mxu1 %vm377_vm1, %v14335_v29  ;;  %11797 = vmatprep.mubr.msk.f32.mxu0 %vm811_vm2, %v16272_v13  ;;  %v14363_v13 = vld [vmem:[%s13162_s26 + $0x112] sm:$0xff] }
 0x171   : > { %11264 = vmatmul.mubr.msk.f32.gmra.mrb[30].mxu1 %vm377_vm1, %v14346_v5  ;;  %11798 = vmatmul.mubr.msk.f32.gmra.mrb[66].mxu0 %vm811_vm2, %v16273_v3  ;;  %v14374_v3 = vld [vmem:[%s13162_s26 + $0x11a] sm:$0xff] }
 0x172   : > { %11266 = vmatprep.mubr.msk.f32.mxu1 %vm377_vm1, %v14349_v25  ;;  %11800 = vmatprep.mubr.msk.f32.mxu0 %vm811_vm2, %v16274_v7  ;;  %v5955_v7 = vld [vmem:[%s13316_s8 + $0x13c] sm:$0xff] }
 0x175   : > { %11267 = vmatmul.mubr.msk.f32.gmra.mrb[32].mxu1 %vm377_vm1, %v14360_v1  ;;  %11801 = vmatmul.mubr.msk.f32.gmra.mrb[68].mxu0 %vm811_vm2, %v16275_v61  ;;  %v6817_v61 = vld [vmem:[%s16165_s4 + $0xf8] sm:$0xff] }
 0x176   : > { %11269 = vmatprep.mubr.msk.f32.mxu1 %vm377_vm1, %v14363_v13  ;;  %11803 = vmatprep.mubr.msk.f32.mxu0 %vm811_vm2, %v5954_v63  ;;  %v3382_v63 = vld [vmem:[%s16165_s4 + $0x60] sm:$0xff]  ;;  %v12102_v45 = vpack.c.bf16 %v6817_v61, %v6816_v55  ;;  %v6355_v61 = vld [vmem:[%s13162_s26 + $0x55] sm:$0xff] }
 0x177   : > { %v14402_v43 = vpack.c.bf16 %v3383_v53, %v3382_v63  ;;  %v14417_v53 = vld [vmem:[%s13316_s8 + $0x22] sm:$0xff]  ;;  %v14449_v63 = vld [vmem:[%s13316_s8 + $0x3a] sm:$0xff] }
 0x178   : > { %v14427_v55 = vld [vmem:[%s16164_s3 + $0x20] sm:$0xf] }
 0x179   : > { %11270 = vmatmul.mubr.msk.f32.gmra.mrb[34].mxu1 %vm377_vm1, %v14374_v3  ;;  %11804 = vmatmul.mubr.msk.f32.gmra.mrb[70].mxu0 %vm811_vm2, %v5955_v7  ;;  %v2489_v7 = vld [vmem:[%s13316_s8 + $0xa] sm:$0xff] }
 0x17a   : > { %11280 = vmatprep.mubr.msk.f32.mxu1 %vm811_vm2, %v2488_v59  ;;  %11808 = vmatprep.mubr.msk.f32.mxu0 %vm377_vm1, %v6349_v57  ;;  %v14410_v57 = vld [vmem:[%s13316_s8 + $0x1a] sm:$0xff] }
 0x17b   : > { %v6352_v59 = vld [vmem:[%s13162_s26 + $0x3d] sm:$0xff] }
 0x17d   : > { %11281 = vmatmul.mubr.msk.f32.vlgmr.msra.gmra.mrb[0].mxu1 %vm811_vm2, %v2489_v7  ;;  %11809 = vmatmul.mubr.msk.f32.vlgmr.msra.gmra.mrb[36].mxu0 %vm377_vm1, %v6350_v51  ;;  %v6353_v51 = vld [vmem:[%s13162_s26 + $0x45] sm:$0xff]  ;;  %v6356_v7 = vld [vmem:[%s13162_s26 + $0x5d] sm:$0xff] }
 0x17e   : > { %11335 = vmatpush3.msk.msra.mxu1 %vm486_vm0, %v14155_v6  ;;  %12101 = vmatpush3.bf16.msra.mxu0 %v14129_v11  ;;  %v6354_v11 = vld [vmem:[%s13162_s26 + $0x4d] sm:$0xff] }
 0x17f   : > { %11283 = vmatprep.mubr.msk.f32.mxu1 %vm811_vm2, %v14399_v49  ;;  %11811 = vmatprep.mubr.msk.f32.mxu0 %vm377_vm1, %v6351_v47  ;;  %v14433_v47 = vld [vmem:[%s13316_s8 + $0x2a] sm:$0xff]  ;;  %v14437_v6 = vld [vmem:[%s13316_s8 + $0x32] sm:$0xff] }
 0x180   : > { %12103 = vmatprep.subr.bf16.mxu0 %v12102_v45  ;;  %12067 = vmatprep.subr.bf16.mxu1 %v14402_v43 }
 0x181   : > { %11284 = vmatmul.mubr.msk.f32.gmra.mrb[2].mxu1 %vm811_vm2, %v14410_v57  ;;  %11812 = vmatmul.mubr.msk.f32.gmra.mrb[38].mxu0 %vm377_vm1, %v6352_v59  ;;  %v6357_v59 = vld [vmem:[%s13162_s26 + $0x65] sm:$0xff] }
 0x182   : > { %11286 = vmatprep.mubr.msk.f32.mxu1 %vm811_vm2, %v14417_v53  ;;  %11814 = vmatprep.mubr.msk.f32.mxu0 %vm377_vm1, %v6353_v51  ;;  %v14463_v51 = vld [vmem:[%s13316_s8 + $0x4a] sm:$0xff] }
 0x183   : > { %12105 = vmatpush3.bf16.msra.mxu0 %v12102_v45  ;;  %v14453_v45 = vld [vmem:[%s13316_s8 + $0x42] sm:$0xff] }
 0x184   : > { %11924 = vmatprep.subr.msk.mxu0 %vm486_vm0, %v14427_v55 }
 0x185   : > { %11287 = vmatmul.mubr.msk.f32.gmra.mrb[4].mxu1 %vm811_vm2, %v14433_v47  ;;  %11815 = vmatmul.mubr.msk.f32.gmra.mrb[40].mxu0 %vm377_vm1, %v6354_v11  ;;  %v6358_v11 = vld [vmem:[%s13162_s26 + $0x6d] sm:$0xff] }
 0x186   : > { %11289 = vmatprep.mubr.msk.f32.mxu1 %vm811_vm2, %v14437_v6  ;;  %11817 = vmatprep.mubr.msk.f32.mxu0 %vm377_vm1, %v6355_v61  ;;  %v14467_v61 = vld [vmem:[%s13316_s8 + $0x52] sm:$0xff] }
 0x189   : > { %11290 = vmatmul.mubr.msk.f32.gmra.mrb[6].mxu1 %vm811_vm2, %v14449_v63  ;;  %11818 = vmatmul.mubr.msk.f32.gmra.mrb[42].mxu0 %vm377_vm1, %v6356_v7  ;;  %v14477_v7 = vld [vmem:[%s13316_s8 + $0x5a] sm:$0xff] }
 0x18a   : > { %11292 = vmatprep.mubr.msk.f32.mxu1 %vm811_vm2, %v14453_v45  ;;  %11820 = vmatprep.mubr.msk.f32.mxu0 %vm377_vm1, %v6357_v59  ;;  %v6360_v59 = vld [vmem:[%s13162_s26 + $0x7d] sm:$0xff] }
 0x18d   : > { %11293 = vmatmul.mubr.msk.f32.gmra.mrb[8].mxu1 %vm811_vm2, %v14463_v51  ;;  %11821 = vmatmul.mubr.msk.f32.gmra.mrb[44].mxu0 %vm377_vm1, %v6358_v11  ;;  %v6362_v11 = vld [vmem:[%s13162_s26 + $0x8d] sm:$0xff] }
 0x18e   : > { %11295 = vmatprep.mubr.msk.f32.mxu1 %vm811_vm2, %v14467_v61  ;;  %11823 = vmatprep.mubr.msk.f32.mxu0 %vm377_vm1, %v6359_v50  ;;  %v14491_v50 = vld [vmem:[%s13316_s8 + $0x6a] sm:$0xff] }
 0x191   : > { %11296 = vmatmul.mubr.msk.f32.gmra.mrb[10].mxu1 %vm811_vm2, %v14477_v7  ;;  %11824 = vmatmul.mubr.msk.f32.gmra.mrb[46].mxu0 %vm377_vm1, %v6360_v59  ;;  %v6364_v59 = vld [vmem:[%s13162_s26 + $0x9d] sm:$0xff] }
 0x192   : > { %11298 = vmatprep.mubr.msk.f32.mxu1 %vm811_vm2, %v14481_v41  ;;  %11826 = vmatprep.mubr.msk.f32.mxu0 %vm377_vm1, %v6361_v34  ;;  %v14505_v34 = vld [vmem:[%s13316_s8 + $0x7a] sm:$0xff] }
 0x195   : > { %11299 = vmatmul.mubr.msk.f32.gmra.mrb[12].mxu1 %vm811_vm2, %v14491_v50  ;;  %11827 = vmatmul.mubr.msk.f32.gmra.mrb[48].mxu0 %vm377_vm1, %v6362_v11  ;;  %v6366_v11 = vld [vmem:[%s13162_s26 + $0xad] sm:$0xff] }
 0x196   : > { %11301 = vmatprep.mubr.msk.f32.mxu1 %vm811_vm2, %v14495_v38  ;;  %11829 = vmatprep.mubr.msk.f32.mxu0 %vm377_vm1, %v6363_v14  ;;  %v14519_v14 = vld [vmem:[%s13316_s8 + $0x8a] sm:$0xff] }
 0x199   : > { %11302 = vmatmul.mubr.msk.f32.gmra.mrb[14].mxu1 %vm811_vm2, %v14505_v34  ;;  %11830 = vmatmul.mubr.msk.f32.gmra.mrb[50].mxu0 %vm377_vm1, %v6364_v59  ;;  %v6368_v59 = vld [vmem:[%s13162_s26 + $0xbd] sm:$0xff] }
 0x19a   : > { %11304 = vmatprep.mubr.msk.f32.mxu1 %vm811_vm2, %v14509_v32  ;;  %11832 = vmatprep.mubr.msk.f32.mxu0 %vm377_vm1, %v6365_v8  ;;  %v14533_v8 = vld [vmem:[%s13316_s8 + $0x9a] sm:$0xff] }
 0x19d   : > { %11305 = vmatmul.mubr.msk.f32.gmra.mrb[16].mxu1 %vm811_vm2, %v14519_v14  ;;  %11833 = vmatmul.mubr.msk.f32.gmra.mrb[52].mxu0 %vm377_vm1, %v6366_v11  ;;  %v6370_v11 = vld [vmem:[%s13162_s26 + $0xcd] sm:$0xff] }
 0x19e   : > { %11307 = vmatprep.mubr.msk.f32.mxu1 %vm811_vm2, %v14523_v58  ;;  %11835 = vmatprep.mubr.msk.f32.mxu0 %vm377_vm1, %v6367_v24  ;;  %v14547_v24 = vld [vmem:[%s13316_s8 + $0xaa] sm:$0xff] }
 0x19f   : > { %16277 = vst [vmem:[#allocation3_spill] sm:$0xff] %v14547_v24 }
 0x1a1   : > { %11308 = vmatmul.mubr.msk.f32.gmra.mrb[18].mxu1 %vm811_vm2, %v14533_v8  ;;  %11836 = vmatmul.mubr.msk.f32.gmra.mrb[54].mxu0 %vm377_vm1, %v6368_v59  ;;  %v6372_v59 = vld [vmem:[%s13162_s26 + $0xdd] sm:$0xff] }
 0x1a2   : > { %11310 = vmatprep.mubr.msk.f32.mxu1 %vm811_vm2, %v14537_v33  ;;  %11838 = vmatprep.mubr.msk.f32.mxu0 %vm377_vm1, %v6369_v39  ;;  %v14561_v39 = vld [vmem:[%s13316_s8 + $0xba] sm:$0xff] }
 0x1a3   : > { %16279 = vst [vmem:[#allocation5_spill] sm:$0xff] %v14561_v39  ;;  %v4240_v33 = vld [vmem:[%s16165_s4 + $0x80] sm:$0xff] }
 0x1a5   : > { %11311 = vmatmul.mubr.msk.f32.gmra.mrb[20].mxu1 %vm811_vm2, %v14547_v24  ;;  %11839 = vmatmul.mubr.msk.f32.gmra.mrb[56].mxu0 %vm377_vm1, %v6370_v11  ;;  %v6374_v11 = vld [vmem:[%s13162_s26 + $0xed] sm:$0xff] }
 0x1a6   : > { %11313 = vmatprep.mubr.msk.f32.mxu1 %vm811_vm2, %v14551_v0  ;;  %11841 = vmatprep.mubr.msk.f32.mxu0 %vm377_vm1, %v6371_v36  ;;  %v14575_v36 = vld [vmem:[%s13316_s8 + $0xca] sm:$0xff]  ;;  %v6375_v0 = vld [vmem:[%s13162_s26 + $0xf5] sm:$0xff] }
 0x1a7   : > { %16281 = vst [vmem:[#allocation7_spill] sm:$0xff] %v14575_v36 }
 0x1a9   : > { %11314 = vmatmul.mubr.msk.f32.gmra.mrb[22].mxu1 %vm811_vm2, %v14561_v39  ;;  %11842 = vmatmul.mubr.msk.f32.gmra.mrb[58].mxu0 %vm377_vm1, %v6372_v59  ;;  %v6376_v59 = vld [vmem:[%s13162_s26 + $0xfd] sm:$0xff]  ;;  %v6377_v39 = vld [vmem:[%s13162_s26 + $0x105] sm:$0xff] }
 0x1aa   : > { %11316 = vmatprep.mubr.msk.f32.mxu1 %vm811_vm2, %v14565_v54  ;;  %11844 = vmatprep.mubr.msk.f32.mxu0 %vm377_vm1, %v6373_v28  ;;  %v14589_v28 = vld [vmem:[%s13316_s8 + $0xda] sm:$0xff]  ;;  %v14593_v54 = vld [vmem:[%s13316_s8 + $0xe2] sm:$0xff] }
 0x1ab   : > { %16283 = vst [vmem:[#allocation9_spill] sm:$0xff] %v14589_v28  ;;  %16284 = vst [vmem:[#allocation10_spill] sm:$0xff] %v14593_v54 }
 0x1ad   : > { %11317 = vmatmul.mubr.msk.f32.gmra.mrb[24].mxu1 %vm811_vm2, %v14575_v36  ;;  %11845 = vmatmul.mubr.msk.f32.gmra.mrb[60].mxu0 %vm377_vm1, %v6374_v11  ;;  %v6378_v11 = vld [vmem:[%s13162_s26 + $0x10d] sm:$0xff]  ;;  %v6379_v36 = vld [vmem:[%s13162_s26 + $0x115] sm:$0xff] }
 0x1ae   : > { %11319 = vmatprep.mubr.msk.f32.mxu1 %vm811_vm2, %v14579_v46  ;;  %11847 = vmatprep.mubr.msk.f32.mxu0 %vm377_vm1, %v6375_v0  ;;  %v14603_v0 = vld [vmem:[%s13316_s8 + $0xea] sm:$0xff]  ;;  %v14607_v46 = vld [vmem:[%s13316_s8 + $0xf2] sm:$0xff] }
 0x1af   : > { %16285 = vst [vmem:[#allocation11_spill] sm:$0xff] %v14603_v0  ;;  %16286 = vst [vmem:[#allocation12_spill] sm:$0xff] %v14607_v46 }
 0x1b1   : > { %11320 = vmatmul.mubr.msk.f32.gmra.mrb[26].mxu1 %vm811_vm2, %v14589_v28  ;;  %11848 = vmatmul.mubr.msk.f32.gmra.mrb[62].mxu0 %vm377_vm1, %v6376_v59  ;;  %v6380_v59 = vld [vmem:[%s13162_s26 + $0x11d] sm:$0xff]  ;;  %v6381_v28 = vld [vmem:[%s13162_s26 + $0x125] sm:$0xff] }
 0x1b2   : > { %11322 = vmatprep.mubr.msk.f32.mxu1 %vm811_vm2, %v14593_v54  ;;  %11850 = vmatprep.mubr.msk.f32.mxu0 %vm377_vm1, %v6377_v39  ;;  %v14617_v39 = vld [vmem:[%s13316_s8 + $0xfa] sm:$0xff]  ;;  %v14621_v54 = vld [vmem:[%s13316_s8 + $0x102] sm:$0xff] }
 0x1b3   : > { %16287 = vst [vmem:[#allocation13_spill] sm:$0xff] %v14617_v39  ;;  %16288 = vst [vmem:[#allocation14_spill] sm:$0xff] %v14621_v54 }
 0x1b5   : > { %11323 = vmatmul.mubr.msk.f32.gmra.mrb[28].mxu1 %vm811_vm2, %v14603_v0  ;;  %11851 = vmatmul.mubr.msk.f32.gmra.mrb[64].mxu0 %vm377_vm1, %v6378_v11  ;;  %v6382_v11 = vld [vmem:[%s13162_s26 + $0x12d] sm:$0xff]  ;;  %v6383_v0 = vld [vmem:[%s13162_s26 + $0x135] sm:$0xff] }
 0x1b6   : > { %11325 = vmatprep.mubr.msk.f32.mxu1 %vm811_vm2, %v14607_v46  ;;  %11853 = vmatprep.mubr.msk.f32.mxu0 %vm377_vm1, %v6379_v36  ;;  %v14631_v36 = vld [vmem:[%s13316_s8 + $0x10a] sm:$0xff]  ;;  %v14635_v46 = vld [vmem:[%s13316_s8 + $0x112] sm:$0xff] }
 0x1b7   : > { %16289 = vst [vmem:[#allocation15_spill] sm:$0xff] %v14631_v36  ;;  %16290 = vst [vmem:[#allocation16_spill] sm:$0xff] %v14635_v46 }
 0x1b9   : > { %11326 = vmatmul.mubr.msk.f32.gmra.mrb[30].mxu1 %vm811_vm2, %v14617_v39  ;;  %11854 = vmatmul.mubr.msk.f32.gmra.mrb[66].mxu0 %vm377_vm1, %v6380_v59  ;;  %v14645_v59 = vld [vmem:[%s13316_s8 + $0x11a] sm:$0xff]  ;;  %v3384_v39 = vld [vmem:[%s16165_s4 + $0x70] sm:$0xff] }
 0x1ba   : > { %11328 = vmatprep.mubr.msk.f32.mxu1 %vm811_vm2, %v14621_v54  ;;  %11856 = vmatprep.mubr.msk.f32.mxu0 %vm377_vm1, %v6381_v28  ;;  %16291 = vst [vmem:[#allocation17_spill] sm:$0xff] %v14645_v59  ;;  %v6384_v28 = vld [vmem:[%s13162_s26 + $0x13d] sm:$0xff]  ;;  %v6778_v54 = vld [vmem:[%s13316_s8 + $0x25] sm:$0xff] }
 0x1bd   : > { %11329 = vmatmul.mubr.msk.f32.gmra.mrb[32].mxu1 %vm811_vm2, %v14631_v36  ;;  %11857 = vmatmul.mubr.msk.f32.gmra.mrb[68].mxu0 %vm377_vm1, %v6382_v11  ;;  %v3385_v11 = vld [vmem:[%s16165_s4 + $0x78] sm:$0xff] }
 0x1be   : > { %11331 = vmatprep.mubr.msk.f32.mxu1 %vm811_vm2, %v14635_v46  ;;  %11859 = vmatprep.mubr.msk.f32.mxu0 %vm377_vm1, %v6383_v0  ;;  %v7672_v0 = vld [vmem:[%s16165_s4 + $0x100] sm:$0xff]  ;;  %v7673_v46 = vld [vmem:[%s16165_s4 + $0x108] sm:$0xff]  ;;  %v12070_v36 = vpack.c.bf16 %v3385_v11, %v3384_v39 }
 0x1bf   : > { %v14669_v24 = vpack.c.bf16 %v7673_v46, %v7672_v0  ;;  %v6781_v46 = vld [vmem:[%s13316_s8 + $0x3d] sm:$0xff]  ;;  %v7207_v39 = vld [vmem:[%s13162_s26 + $0x26] sm:$0xff]  ;;  %v7208_v11 = vld [vmem:[%s13162_s26 + $0x2e] sm:$0xff] }
 0x1c0   : > { %v7209_v0 = vld [vmem:[%s13162_s26 + $0x36] sm:$0xff] }
 0x1c1   : > { %11332 = vmatmul.mubr.msk.f32.gmra.mrb[34].mxu1 %vm811_vm2, %v14645_v59  ;;  %11860 = vmatmul.mubr.msk.f32.gmra.mrb[70].mxu0 %vm377_vm1, %v6384_v28  ;;  %v6779_v28 = vld [vmem:[%s13316_s8 + $0x2d] sm:$0xff]  ;;  %v6780_v59 = vld [vmem:[%s13316_s8 + $0x35] sm:$0xff] }
 0x1c2   : > { %11336 = vmatprep.mubr.msk.f32.mxu1 %vm377_vm1, %v14127_v31  ;;  %11870 = vmatprep.mubr.msk.f32.mxu0 %vm811_vm2, %v6778_v54  ;;  %v4241_v54 = vld [vmem:[%s16165_s4 + $0x88] sm:$0xff] }
 0x1c3   : > { %v6782_v31 = vld [vmem:[%s13316_s8 + $0x45] sm:$0xff] }
 0x1c5   : > { %11337 = vmatmul.mubr.msk.f32.vlgmr.msra.gmra.mrb[0].mxu1 %vm377_vm1, %v14138_v15  ;;  %11871 = vmatmul.mubr.msk.f32.vlgmr.msra.gmra.mrb[36].mxu0 %vm811_vm2, %v6779_v28  ;;  %v14688_v15 = vpack.c.bf16 %v4241_v54, %v4240_v33  ;;  %v6785_v33 = vld [vmem:[%s13316_s8 + $0x5d] sm:$0xff] }
 0x1c6   : > { %12069 = vmatpush3.bf16.msra.mxu1 %v14402_v43  ;;  %11925 = vmatpush3.msk.msra.mxu0 %vm486_vm0, %v14427_v55  ;;  %v6783_v43 = vld [vmem:[%s13316_s8 + $0x4d] sm:$0xff]  ;;  %v6812_v55 = vld [vmem:[%s13316_s8 + $0x135] sm:$0xff] }
 0x1c7   : > { %11339 = vmatprep.mubr.msk.f32.mxu1 %vm377_vm1, %v14145_v62  ;;  %11873 = vmatprep.mubr.msk.f32.mxu0 %vm811_vm2, %v6780_v59  ;;  %v6784_v62 = vld [vmem:[%s13316_s8 + $0x55] sm:$0xff] }
 0x1c8   : > { %12071 = vmatprep.subr.bf16.mxu1 %v12070_v36  ;;  %12107 = vmatprep.subr.bf16.mxu0 %v14669_v24  ;;  %v7675_v59 = vld [vmem:[%s16165_s4 + $0x118] sm:$0xff] }
 0x1c9   : > { %11340 = vmatmul.mubr.msk.f32.gmra.mrb[2].mxu1 %vm377_vm1, %v14162_v10  ;;  %11874 = vmatmul.mubr.msk.f32.gmra.mrb[38].mxu0 %vm811_vm2, %v6781_v46  ;;  %v6786_v10 = vld [vmem:[%s13316_s8 + $0x65] sm:$0xff] }
 0x1ca   : > { %11342 = vmatprep.mubr.msk.f32.mxu1 %vm377_vm1, %v14165_v40  ;;  %11876 = vmatprep.mubr.msk.f32.mxu0 %vm811_vm2, %v6782_v31  ;;  %v6787_v40 = vld [vmem:[%s13316_s8 + $0x6d] sm:$0xff]  ;;  %v7210_v46 = vld [vmem:[%s13162_s26 + $0x3e] sm:$0xff] }
 0x1cb   : > { %12073 = vmatpush3.bf16.msra.mxu1 %v12070_v36  ;;  %v7674_v36 = vld [vmem:[%s16165_s4 + $0x110] sm:$0xff]  ;;  %v7219_v31 = vld [vmem:[%s13162_s26 + $0x86] sm:$0xff] }
 0x1cc   : > { %12075 = vmatprep.subr.bf16.mxu1 %v14688_v15  ;;  %v12110_v54 = vpack.c.bf16 %v7675_v59, %v7674_v36  ;;  %v4204_v36 = vld [vmem:[%s13316_s8 + $0x13] sm:$0xff]  ;;  %v7636_v59 = vld [vmem:[%s13316_s8 + $0x26] sm:$0xff] }
 0x1cd   : > { %11343 = vmatmul.mubr.msk.f32.gmra.mrb[4].mxu1 %vm377_vm1, %v14178_v12  ;;  %11877 = vmatmul.mubr.msk.f32.gmra.mrb[40].mxu0 %vm811_vm2, %v6783_v43  ;;  %v6788_v12 = vld [vmem:[%s13316_s8 + $0x75] sm:$0xff] }
 0x1ce   : > { %11345 = vmatprep.mubr.msk.f32.mxu1 %vm377_vm1, %v14181_v16  ;;  %11879 = vmatprep.mubr.msk.f32.mxu0 %vm811_vm2, %v6784_v62  ;;  %v6789_v16 = vld [vmem:[%s13316_s8 + $0x7d] sm:$0xff]  ;;  %v8322_v62 = vld [vmem:[%s14881_s28 + $0x28] sm:$0xff] }
 0x1cf   : > { %v7221_v43 = vld [vmem:[%s13162_s26 + $0x96] sm:$0xff] }
 0x1d1   : > { %11346 = vmatmul.mubr.msk.f32.gmra.mrb[6].mxu1 %vm377_vm1, %v14192_v21  ;;  %11880 = vmatmul.mubr.msk.f32.gmra.mrb[42].mxu0 %vm811_vm2, %v6785_v33  ;;  %v6790_v21 = vld [vmem:[%s13316_s8 + $0x85] sm:$0xff] }
 0x1d2   : > { %11348 = vmatprep.mubr.msk.f32.mxu1 %vm377_vm1, %v14195_v26  ;;  %11882 = vmatprep.mubr.msk.f32.mxu0 %vm811_vm2, %v6786_v10  ;;  %v6791_v26 = vld [vmem:[%s13316_s8 + $0x8d] sm:$0xff]  ;;  %v8321_v33 = vld [vmem:[%s14881_s28 + $0x20] sm:$0xff]  ;;  %v8324_v10 = vld [vmem:[%s14881_s28 + $0x38] sm:$0xff] }
 0x1d5   : > { %11349 = vmatmul.mubr.msk.f32.gmra.mrb[8].mxu1 %vm377_vm1, %v14206_v30  ;;  %11883 = vmatmul.mubr.msk.f32.gmra.mrb[44].mxu0 %vm811_vm2, %v6787_v40  ;;  %v6792_v30 = vld [vmem:[%s13316_s8 + $0x95] sm:$0xff]  ;;  %v7227_v40 = vld [vmem:[%s13162_s26 + $0xc6] sm:$0xff] }
 0x1d6   : > { %11351 = vmatprep.mubr.msk.f32.mxu1 %vm377_vm1, %v14209_v37  ;;  %11885 = vmatprep.mubr.msk.f32.mxu0 %vm811_vm2, %v6788_v12  ;;  %v6793_v37 = vld [vmem:[%s13316_s8 + $0x9d] sm:$0xff]  ;;  %v16293_v12 = vld [vmem:[#allocation3_spill] sm:$0xff] }
 0x1d9   : > { %11352 = vmatmul.mubr.msk.f32.gmra.mrb[10].mxu1 %vm377_vm1, %v14220_v44  ;;  %11886 = vmatmul.mubr.msk.f32.gmra.mrb[46].mxu0 %vm811_vm2, %v6789_v16  ;;  %v6794_v44 = vld [vmem:[%s13316_s8 + $0xa5] sm:$0xff]  ;;  %v16294_v16 = vld [vmem:[#allocation4_spill] sm:$0xff] }
 0x1da   : > { %11354 = vmatprep.mubr.msk.f32.mxu1 %vm377_vm1, %v14223_v48  ;;  %11888 = vmatprep.mubr.msk.f32.mxu0 %vm811_vm2, %v6790_v21  ;;  %v6795_v48 = vld [vmem:[%s13316_s8 + $0xad] sm:$0xff]  ;;  %v7229_v21 = vld [vmem:[%s13162_s26 + $0xd6] sm:$0xff] }
 0x1dd   : > { %11355 = vmatmul.mubr.msk.f32.gmra.mrb[12].mxu1 %vm377_vm1, %v14234_v52  ;;  %11889 = vmatmul.mubr.msk.f32.gmra.mrb[48].mxu0 %vm811_vm2, %v6791_v26  ;;  %v6796_v52 = vld [vmem:[%s13316_s8 + $0xb5] sm:$0xff] }
 0x1de   : > { %11357 = vmatprep.mubr.msk.f32.mxu1 %vm377_vm1, %v14237_v56  ;;  %11891 = vmatprep.mubr.msk.f32.mxu0 %vm811_vm2, %v6792_v30  ;;  %v6797_v56 = vld [vmem:[%s13316_s8 + $0xbd] sm:$0xff] }
 0x1df   : > { %v16295_v26 = vld [vmem:[#allocation5_spill] sm:$0xff]  ;;  %v16296_v30 = vld [vmem:[#allocation6_spill] sm:$0xff] }
 0x1e1   : > { %11358 = vmatmul.mubr.msk.f32.gmra.mrb[14].mxu1 %vm377_vm1, %v14248_v60  ;;  %11892 = vmatmul.mubr.msk.f32.gmra.mrb[50].mxu0 %vm811_vm2, %v6793_v37  ;;  %v6798_v60 = vld [vmem:[%s13316_s8 + $0xc5] sm:$0xff] }
 0x1e2   : > { %11360 = vmatprep.mubr.msk.f32.mxu1 %vm377_vm1, %v14251_v4  ;;  %11894 = vmatprep.mubr.msk.f32.mxu0 %vm811_vm2, %v6794_v44  ;;  %v6799_v4 = vld [vmem:[%s13316_s8 + $0xcd] sm:$0xff]  ;;  %v7230_v37 = vld [vmem:[%s13162_s26 + $0xde] sm:$0xff] }
 0x1e3   : > { %v7231_v44 = vld [vmem:[%s13162_s26 + $0xe6] sm:$0xff] }
 0x1e5   : > { %11361 = vmatmul.mubr.msk.f32.gmra.mrb[16].mxu1 %vm377_vm1, %v14262_v22  ;;  %11895 = vmatmul.mubr.msk.f32.gmra.mrb[52].mxu0 %vm811_vm2, %v6795_v48  ;;  %v6800_v22 = vld [vmem:[%s13316_s8 + $0xd5] sm:$0xff]  ;;  %v16297_v48 = vld [vmem:[#allocation7_spill] sm:$0xff] }
 0x1e6   : > { %11363 = vmatprep.mubr.msk.f32.mxu1 %vm377_vm1, %v14265_v19  ;;  %11897 = vmatprep.mubr.msk.f32.mxu0 %vm811_vm2, %v6796_v52  ;;  %v6801_v19 = vld [vmem:[%s13316_s8 + $0xdd] sm:$0xff]  ;;  %v16298_v52 = vld [vmem:[#allocation8_spill] sm:$0xff] }
 0x1e9   : > { %11364 = vmatmul.mubr.msk.f32.gmra.mrb[18].mxu1 %vm377_vm1, %v14276_v42  ;;  %11898 = vmatmul.mubr.msk.f32.gmra.mrb[54].mxu0 %vm811_vm2, %v6797_v56  ;;  %v6802_v42 = vld [vmem:[%s13316_s8 + $0xe5] sm:$0xff]  ;;  %v7232_v56 = vld [vmem:[%s13162_s26 + $0xee] sm:$0xff] }
 0x1ea   : > { %11366 = vmatprep.mubr.msk.f32.mxu1 %vm377_vm1, %v14279_v23  ;;  %11900 = vmatprep.mubr.msk.f32.mxu0 %vm811_vm2, %v6798_v60  ;;  %v6803_v23 = vld [vmem:[%s13316_s8 + $0xed] sm:$0xff]  ;;  %v7233_v60 = vld [vmem:[%s13162_s26 + $0xf6] sm:$0xff] }
 0x1ed   : > { %11367 = vmatmul.mubr.msk.f32.gmra.mrb[20].mxu1 %vm377_vm1, %v14290_v9  ;;  %11901 = vmatmul.mubr.msk.f32.gmra.mrb[56].mxu0 %vm811_vm2, %v6799_v4  ;;  %v6804_v9 = vld [vmem:[%s13316_s8 + $0xf5] sm:$0xff] }
 0x1ee   : > { %11369 = vmatprep.mubr.msk.f32.mxu1 %vm377_vm1, %v14293_v2  ;;  %11903 = vmatprep.mubr.msk.f32.mxu0 %vm811_vm2, %v6800_v22  ;;  %v6805_v2 = vld [vmem:[%s13316_s8 + $0xfd] sm:$0xff] }
 0x1ef   : > { %v16299_v4 = vld [vmem:[#allocation9_spill] sm:$0xff]  ;;  %v16300_v22 = vld [vmem:[#allocation10_spill] sm:$0xff] }
 0x1f1   : > { %11370 = vmatmul.mubr.msk.f32.gmra.mrb[22].mxu1 %vm377_vm1, %v14304_v20  ;;  %11904 = vmatmul.mubr.msk.f32.gmra.mrb[58].mxu0 %vm811_vm2, %v6801_v19  ;;  %v6806_v20 = vld [vmem:[%s13316_s8 + $0x105] sm:$0xff] }
 0x1f2   : > { %11372 = vmatprep.mubr.msk.f32.mxu1 %vm377_vm1, %v14307_v27  ;;  %11906 = vmatprep.mubr.msk.f32.mxu0 %vm811_vm2, %v6802_v42  ;;  %v6808_v27 = vld [vmem:[%s13316_s8 + $0x115] sm:$0xff]  ;;  %v7234_v19 = vld [vmem:[%s13162_s26 + $0xfe] sm:$0xff]  ;;  %v7235_v42 = vld [vmem:[%s13162_s26 + $0x106] sm:$0xff] }
 0x1f5   : > { %11373 = vmatmul.mubr.msk.f32.gmra.mrb[24].mxu1 %vm377_vm1, %v14318_v35  ;;  %11907 = vmatmul.mubr.msk.f32.gmra.mrb[60].mxu0 %vm811_vm2, %v6803_v23  ;;  %v6807_v35 = vld [vmem:[%s13316_s8 + $0x10d] sm:$0xff] }
 0x1f6   : > { %11375 = vmatprep.mubr.msk.f32.mxu1 %vm377_vm1, %v14321_v18  ;;  %11909 = vmatprep.mubr.msk.f32.mxu0 %vm811_vm2, %v6804_v9  ;;  %v6809_v18 = vld [vmem:[%s13316_s8 + $0x11d] sm:$0xff]  ;;  %v16301_v23 = vld [vmem:[#allocation11_spill] sm:$0xff]  ;;  %v16302_v9 = vld [vmem:[#allocation12_spill] sm:$0xff] }
 0x1f9   : > { %11376 = vmatmul.mubr.msk.f32.gmra.mrb[26].mxu1 %vm377_vm1, %v14332_v17  ;;  %11910 = vmatmul.mubr.msk.f32.gmra.mrb[62].mxu0 %vm811_vm2, %v6805_v2  ;;  %v6811_v17 = vld [vmem:[%s13316_s8 + $0x12d] sm:$0xff] }
 0x1fa   : > { %11378 = vmatprep.mubr.msk.f32.mxu1 %vm377_vm1, %v14335_v29  ;;  %11912 = vmatprep.mubr.msk.f32.mxu0 %vm811_vm2, %v6806_v20  ;;  %v6810_v29 = vld [vmem:[%s13316_s8 + $0x125] sm:$0xff]  ;;  %v7236_v2 = vld [vmem:[%s13162_s26 + $0x10e] sm:$0xff]  ;;  %v7237_v20 = vld [vmem:[%s13162_s26 + $0x116] sm:$0xff] }
 0x1fd   : > { %11379 = vmatmul.mubr.msk.f32.gmra.mrb[28].mxu1 %vm377_vm1, %v14346_v5  ;;  %11913 = vmatmul.mubr.msk.f32.gmra.mrb[64].mxu0 %vm811_vm2, %v6807_v35  ;;  %v2951_v5 = vld [vmem:[%s13162_s26 + $0x122] sm:$0xff]  ;;  %v16303_v35 = vld [vmem:[#allocation13_spill] sm:$0xff] }
 0x1fe   : > { %11381 = vmatprep.mubr.msk.f32.mxu1 %vm377_vm1, %v14349_v25  ;;  %11915 = vmatprep.mubr.msk.f32.mxu0 %vm811_vm2, %v6808_v27  ;;  %v6813_v25 = vld [vmem:[%s13316_s8 + $0x13d] sm:$0xff] }
 0x1ff   : > { %v16304_v27 = vld [vmem:[#allocation14_spill] sm:$0xff] }
 0x201   : > { %11382 = vmatmul.mubr.msk.f32.gmra.mrb[30].mxu1 %vm377_vm1, %v14360_v1  ;;  %11916 = vmatmul.mubr.msk.f32.gmra.mrb[66].mxu0 %vm811_vm2, %v6809_v18  ;;  %v2952_v1 = vld [vmem:[%s13162_s26 + $0x12a] sm:$0xff]  ;;  %v7238_v18 = vld [vmem:[%s13162_s26 + $0x11e] sm:$0xff] }
 0x202   : > { %11384 = vmatprep.mubr.msk.f32.mxu1 %vm377_vm1, %v14363_v13  ;;  %11918 = vmatprep.mubr.msk.f32.mxu0 %vm811_vm2, %v6810_v29  ;;  %v4242_v13 = vld [vmem:[%s16165_s4 + $0x90] sm:$0xff]  ;;  %v7239_v29 = vld [vmem:[%s13162_s26 + $0x126] sm:$0xff] }
 0x205   : > { %11385 = vmatmul.mubr.msk.f32.gmra.mrb[32].mxu1 %vm377_vm1, %v14374_v3  ;;  %11919 = vmatmul.mubr.msk.f32.gmra.mrb[68].mxu0 %vm811_vm2, %v6811_v17  ;;  %v4243_v3 = vld [vmem:[%s16165_s4 + $0x98] sm:$0xff]  ;;  %v16305_v17 = vld [vmem:[#allocation15_spill] sm:$0xff] }
 0x206   : > { %11387 = vmatprep.mubr.msk.f32.mxu1 %vm377_vm1, %v2951_v5  ;;  %11921 = vmatprep.mubr.msk.f32.mxu0 %vm811_vm2, %v6812_v55  ;;  %v12078_v28 = vpack.c.bf16 %v4243_v3, %v4242_v13  ;;  %v16306_v5 = vld [vmem:[#allocation16_spill] sm:$0xff]  ;;  %v7242_v3 = vld [vmem:[%s13162_s26 + $0x13e] sm:$0xff] }
 0x207   : > { %v7240_v55 = vld [vmem:[%s13162_s26 + $0x12e] sm:$0xff] }
 0x208   : > { %v3381_v13 = vld [vmem:[%s13316_s8 + $0x12a] sm:$0xff] }
 0x209   : > { %11388 = vmatmul.mubr.msk.f32.gmra.mrb[34].mxu1 %vm377_vm1, %v2952_v1  ;;  %11922 = vmatmul.mubr.msk.f32.gmra.mrb[70].mxu0 %vm811_vm2, %v6813_v25  ;;  %v3380_v1 = vld [vmem:[%s13316_s8 + $0x122] sm:$0xff]  ;;  %v7241_v25 = vld [vmem:[%s13162_s26 + $0x136] sm:$0xff] }
 0x20a   : > { %11398 = vmatprep.mubr.msk.f32.mxu1 %vm811_vm2, %v14399_v49  ;;  %11926 = vmatprep.mubr.msk.f32.mxu0 %vm377_vm1, %v7207_v39  ;;  %v7211_v49 = vld [vmem:[%s13162_s26 + $0x46] sm:$0xff]  ;;  %v16307_v39 = vld [vmem:[#allocation17_spill] sm:$0xff] }
 0x20d   : > { %11399 = vmatmul.mubr.msk.f32.vlgmr.msra.gmra.mrb[0].mxu1 %vm811_vm2, %v14410_v57  ;;  %11927 = vmatmul.mubr.msk.f32.vlgmr.msra.gmra.mrb[36].mxu0 %vm377_vm1, %v7208_v11  ;;  %v7212_v57 = vld [vmem:[%s13162_s26 + $0x4e] sm:$0xff]  ;;  %v4205_v11 = vld [vmem:[%s13316_s8 + $0x1b] sm:$0xff] }
 0x20e   : > { %12077 = vmatpush3.bf16.msra.mxu1 %v14688_v15  ;;  %12109 = vmatpush3.bf16.msra.mxu0 %v14669_v24  ;;  %v8319_v24 = vld [vmem:[%s14881_s28 + $0x10] sm:$0xff]  ;;  %v8318_v15 = vld [vmem:[%s14881_s28 + $0x8] sm:$0xff] }
 0x20f   : > { %11401 = vmatprep.mubr.msk.f32.mxu1 %vm811_vm2, %v14417_v53  ;;  %11929 = vmatprep.mubr.msk.f32.mxu0 %vm377_vm1, %v7209_v0  ;;  %v7213_v53 = vld [vmem:[%s13162_s26 + $0x56] sm:$0xff]  ;;  %v7637_v0 = vld [vmem:[%s13316_s8 + $0x2e] sm:$0xff] }
 0x210   : > { %12079 = vmatprep.subr.bf16.mxu1 %v12078_v28  ;;  %12111 = vmatprep.subr.bf16.mxu0 %v12110_v54 }
 0x211   : > { %11402 = vmatmul.mubr.msk.f32.gmra.mrb[2].mxu1 %vm811_vm2, %v14433_v47  ;;  %11930 = vmatmul.mubr.msk.f32.gmra.mrb[38].mxu0 %vm377_vm1, %v7210_v46  ;;  %v7214_v47 = vld [vmem:[%s13162_s26 + $0x5e] sm:$0xff]  ;;  %v4207_v46 = vld [vmem:[%s13316_s8 + $0x2b] sm:$0xff] }
 0x212   : > { %11404 = vmatprep.mubr.msk.f32.mxu1 %vm811_vm2, %v14437_v6  ;;  %11932 = vmatprep.mubr.msk.f32.mxu0 %vm377_vm1, %v7211_v49  ;;  %v7215_v6 = vld [vmem:[%s13162_s26 + $0x66] sm:$0xff]  ;;  %v7639_v49 = vld [vmem:[%s13316_s8 + $0x3e] sm:$0xff] }
 0x213   : > { %12081 = vmatpush3.bf16.msra.mxu1 %v12078_v28  ;;  %12113 = vmatpush3.bf16.msra.mxu0 %v12110_v54  ;;  %v4206_v28 = vld [vmem:[%s13316_s8 + $0x23] sm:$0xff]  ;;  %v7638_v54 = vld [vmem:[%s13316_s8 + $0x36] sm:$0xff] }
 0x214   : > { %8393 = vrot.lane.b32.xlu1 %v8319_v24, %s13071_s25  ;;  %v7643_v24 = vld [vmem:[%s13316_s8 + $0x5e] sm:$0xff] }
 0x215   : > { %11405 = vmatmul.mubr.msk.f32.gmra.mrb[4].mxu1 %vm811_vm2, %v14449_v63  ;;  %11933 = vmatmul.mubr.msk.f32.gmra.mrb[40].mxu0 %vm377_vm1, %v7212_v57  ;;  %v7216_v63 = vld [vmem:[%s13162_s26 + $0x6e] sm:$0xff] }
 0x216   : > { %11407 = vmatprep.mubr.msk.f32.mxu1 %vm811_vm2, %v14453_v45  ;;  %11935 = vmatprep.mubr.msk.f32.mxu0 %vm377_vm1, %v7213_v53  ;;  %v7217_v45 = vld [vmem:[%s13162_s26 + $0x76] sm:$0xff]  ;;  %v7640_v53 = vld [vmem:[%s13316_s8 + $0x46] sm:$0xff] }
 0x217   : > { %v4208_v57 = vld [vmem:[%s13316_s8 + $0x33] sm:$0xff] }
 0x219   : > { %11408 = vmatmul.mubr.msk.f32.gmra.mrb[6].mxu1 %vm811_vm2, %v14463_v51  ;;  %11936 = vmatmul.mubr.msk.f32.gmra.mrb[42].mxu0 %vm377_vm1, %v7214_v47  ;;  %v8317_v51 = vld [vmem:[%s14881_s28] sm:$0xff] }
 0x21a   : > { %11410 = vmatprep.mubr.msk.f32.mxu1 %vm811_vm2, %v14467_v61  ;;  %11938 = vmatprep.mubr.msk.f32.mxu0 %vm377_vm1, %v7215_v6  ;;  %v7218_v61 = vld [vmem:[%s13162_s26 + $0x7e] sm:$0xff]  ;;  %v7641_v6 = vld [vmem:[%s13316_s8 + $0x4e] sm:$0xff] }
 0x21b   : > { %8389 = vrot.lane.b32.xlu0 %v8317_v51, %s13071_s25  ;;  %v4209_v47 = vld [vmem:[%s13316_s8 + $0x3b] sm:$0xff]  ;;  %v4211_v51 = vld [vmem:[%s13316_s8 + $0x4b] sm:$0xff] }
 0x21d   : > { %11411 = vmatmul.mubr.msk.f32.gmra.mrb[8].mxu1 %vm811_vm2, %v14477_v7  ;;  %11939 = vmatmul.mubr.msk.f32.gmra.mrb[44].mxu0 %vm377_vm1, %v7216_v63  ;;  %v8320_v7 = vld [vmem:[%s14881_s28 + $0x18] sm:$0xff]  ;;  %v4210_v63 = vld [vmem:[%s13316_s8 + $0x43] sm:$0xff] }
 0x21e   : > { %11413 = vmatprep.mubr.msk.f32.mxu1 %vm811_vm2, %v14481_v41  ;;  %11941 = vmatprep.mubr.msk.f32.mxu0 %vm377_vm1, %v7217_v45  ;;  %v7220_v41 = vld [vmem:[%s13162_s26 + $0x8e] sm:$0xff]  ;;  %v7642_v45 = vld [vmem:[%s13316_s8 + $0x56] sm:$0xff] }
 0x21f   : > { %8391 = vrot.lane.b32.xlu0 %v8318_v15, %s13071_s25  ;;  %8395 = vrot.lane.b32.xlu1 %v8320_v7, %s13071_s25  ;;  %v8323_v15 = vld [vmem:[%s14881_s28 + $0x30] sm:$0xff]  ;;  %v4213_v7 = vld [vmem:[%s13316_s8 + $0x5b] sm:$0xff] }
 0x221   : > { %11414 = vmatmul.mubr.msk.f32.gmra.mrb[10].mxu1 %vm811_vm2, %v14491_v50  ;;  %11942 = vmatmul.mubr.msk.f32.gmra.mrb[46].mxu0 %vm377_vm1, %v7218_v61  ;;  %v7223_v50 = vld [vmem:[%s13162_s26 + $0xa6] sm:$0xff]  ;;  %v4212_v61 = vld [vmem:[%s13316_s8 + $0x53] sm:$0xff] }
 0x222   : > { %11416 = vmatprep.mubr.msk.f32.mxu1 %vm811_vm2, %v14495_v38  ;;  %11944 = vmatprep.mubr.msk.f32.mxu0 %vm377_vm1, %v7219_v31  ;;  %v7222_v38 = vld [vmem:[%s13162_s26 + $0x9e] sm:$0xff]  ;;  %v7644_v31 = vld [vmem:[%s13316_s8 + $0x66] sm:$0xff] }
 0x223   : > { %8399 = vrot.lane.b32.xlu1 %v8322_v62, %s13071_s25  ;;  %8397 = vrot.lane.b32.xlu0 %v8321_v33, %s13071_s25  ;;  %v4214_v62 = vld [vmem:[%s13316_s8 + $0x63] sm:$0xff]  ;;  %v7646_v33 = vld [vmem:[%s13316_s8 + $0x76] sm:$0xff] }
 0x225   : > { %11417 = vmatmul.mubr.msk.f32.gmra.mrb[12].mxu1 %vm811_vm2, %v14505_v34  ;;  %11945 = vmatmul.mubr.msk.f32.gmra.mrb[48].mxu0 %vm377_vm1, %v7220_v41  ;;  %v7225_v34 = vld [vmem:[%s13162_s26 + $0xb6] sm:$0xff]  ;;  %v7645_v41 = vld [vmem:[%s13316_s8 + $0x6e] sm:$0xff] }
 0x226   : > { %11419 = vmatprep.mubr.msk.f32.mxu1 %vm811_vm2, %v14509_v32  ;;  %11947 = vmatprep.mubr.msk.f32.mxu0 %vm377_vm1, %v7221_v43  ;;  %v7224_v32 = vld [vmem:[%s13162_s26 + $0xae] sm:$0xff] }
 0x227   : > { %8403 = vrot.lane.b32.xlu1 %v8324_v10, %s13071_s25  ;;  %v8326_v43 = vld [vmem:[%s14881_s28 + $0x48] sm:$0xff]  ;;  %8401 = vrot.lane.b32.xlu0 %v8323_v15, %s13071_s25  ;;  %v7647_v10 = vld [vmem:[%s13316_s8 + $0x7e] sm:$0xff] }
 0x228   : > { %v4234_v15 = vld [vmem:[%s13316_s8 + $0x103] sm:$0xff] }
 0x229   : > { %11420 = vmatmul.mubr.msk.f32.gmra.mrb[14].mxu1 %vm811_vm2, %v14519_v14  ;;  %11948 = vmatmul.mubr.msk.f32.gmra.mrb[50].mxu0 %vm377_vm1, %v7222_v38  ;;  %v16292_v14 = vld [vmem:[#allocation2_spill] sm:$0xff] }
 0x22a   : > { %11422 = vmatprep.mubr.msk.f32.mxu1 %vm811_vm2, %v14523_v58  ;;  %11950 = vmatprep.mubr.msk.f32.mxu0 %vm377_vm1, %v7223_v50  ;;  %v7226_v58 = vld [vmem:[%s13162_s26 + $0xbe] sm:$0xff]  ;;  %v4215_v50 = vld [vmem:[%s13316_s8 + $0x6b] sm:$0xff] }
 0x22b   : > { %8407 = vrot.lane.b32.xlu1 %v8326_v43, %s13071_s25  ;;  %v8325_v38 = vld [vmem:[%s14881_s28 + $0x40] sm:$0xff]  ;;  %v4235_v43 = vld [vmem:[%s13316_s8 + $0x10b] sm:$0xff] }
 0x22c   : > { %8405 = vrot.lane.b32.xlu0 %v8325_v38, %s13071_s25  ;;  %v4236_v38 = vld [vmem:[%s13316_s8 + $0x113] sm:$0xff] }
 0x22d   : > { %11423 = vmatmul.mubr.msk.f32.gmra.mrb[16].mxu1 %vm811_vm2, %v14533_v8  ;;  %11951 = vmatmul.mubr.msk.f32.gmra.mrb[52].mxu0 %vm377_vm1, %v7224_v32  ;;  %v7228_v8 = vld [vmem:[%s13162_s26 + $0xce] sm:$0xff]  ;;  %v8328_v32 = vld [vmem:[%s14881_s28 + $0x58] sm:$0xff] }
 0x22e   : > { %11425 = vmatprep.mubr.msk.f32.mxu1 %vm811_vm2, %v16292_v14  ;;  %11953 = vmatprep.mubr.msk.f32.mxu0 %vm377_vm1, %v7225_v34  ;;  %v4216_v34 = vld [vmem:[%s13316_s8 + $0x73] sm:$0xff]  ;;  %v7648_v14 = vld [vmem:[%s13316_s8 + $0x86] sm:$0xff] }
 0x22f   : > { %8411 = vrot.lane.b32.xlu1 %v8328_v32, %s13071_s25  ;;  %v4237_v32 = vld [vmem:[%s13316_s8 + $0x11b] sm:$0xff] }
 0x231   : > { %11426 = vmatmul.mubr.msk.f32.gmra.mrb[18].mxu1 %vm811_vm2, %v16293_v12  ;;  %11954 = vmatmul.mubr.msk.f32.gmra.mrb[54].mxu0 %vm377_vm1, %v7226_v58  ;;  %v8327_v58 = vld [vmem:[%s14881_s28 + $0x50] sm:$0xff] }
 0x232   : > { %11428 = vmatprep.mubr.msk.f32.mxu1 %vm811_vm2, %v16294_v16  ;;  %11956 = vmatprep.mubr.msk.f32.mxu0 %vm377_vm1, %v7227_v40  ;;  %v4217_v40 = vld [vmem:[%s13316_s8 + $0x7b] sm:$0xff]  ;;  %v7649_v12 = vld [vmem:[%s13316_s8 + $0x8e] sm:$0xff] }
 0x233   : > { %v8330_v16 = vld [vmem:[%s14881_s28 + $0x68] sm:$0xff]  ;;  %8409 = vrot.lane.b32.xlu0 %v8327_v58, %s13071_s25 }
 0x234   : > { %8415 = vrot.lane.b32.xlu1 %v8330_v16, %s13071_s25  ;;  %v4238_v58 = vld [vmem:[%s13316_s8 + $0x123] sm:$0xff]  ;;  %v4239_v16 = vld [vmem:[%s13316_s8 + $0x12b] sm:$0xff] }
 0x235   : > { %11429 = vmatmul.mubr.msk.f32.gmra.mrb[20].mxu1 %vm811_vm2, %v16295_v26  ;;  %11957 = vmatmul.mubr.msk.f32.gmra.mrb[56].mxu0 %vm377_vm1, %v7228_v8  ;;  %v4218_v8 = vld [vmem:[%s13316_s8 + $0x83] sm:$0xff] }
 0x236   : > { %11431 = vmatprep.mubr.msk.f32.mxu1 %vm811_vm2, %v16296_v30  ;;  %11959 = vmatprep.mubr.msk.f32.mxu0 %vm377_vm1, %v7229_v21  ;;  %v7650_v21 = vld [vmem:[%s13316_s8 + $0x96] sm:$0xff]  ;;  %v8329_v26 = vld [vmem:[%s14881_s28 + $0x60] sm:$0xff]  ;;  %v4219_v30 = vld [vmem:[%s13316_s8 + $0x8b] sm:$0xff] }
 0x237   : > { %8413 = vrot.lane.b32.xlu0 %v8329_v26, %s13071_s25  ;;  %v8351_v26 = vld [vmem:[%s14881_s28 + $0x110] sm:$0xff] }
 0x239   : > { %11432 = vmatmul.mubr.msk.f32.gmra.mrb[22].mxu1 %vm811_vm2, %v16297_v48  ;;  %11960 = vmatmul.mubr.msk.f32.gmra.mrb[58].mxu0 %vm377_vm1, %v7230_v37  ;;  %v7651_v37 = vld [vmem:[%s13316_s8 + $0x9e] sm:$0xff]  ;;  %v4220_v48 = vld [vmem:[%s13316_s8 + $0x93] sm:$0xff] }
 0x23a   : > { %11434 = vmatprep.mubr.msk.f32.mxu1 %vm811_vm2, %v16298_v52  ;;  %11962 = vmatprep.mubr.msk.f32.mxu0 %vm377_vm1, %v7231_v44  ;;  %v8332_v44 = vld [vmem:[%s14881_s28 + $0x78] sm:$0xff]  ;;  %v7652_v52 = vld [vmem:[%s13316_s8 + $0xa6] sm:$0xff] }
 0x23b   : > { %8419 = vrot.lane.b32.xlu1 %v8332_v44, %s13071_s25 }
 0x23d   : > { %11435 = vmatmul.mubr.msk.f32.gmra.mrb[24].mxu1 %vm811_vm2, %v16299_v4  ;;  %11963 = vmatmul.mubr.msk.f32.gmra.mrb[60].mxu0 %vm377_vm1, %v7232_v56  ;;  %v8331_v56 = vld [vmem:[%s14881_s28 + $0x70] sm:$0xff] }
 0x23e   : > { %11437 = vmatprep.mubr.msk.f32.mxu1 %vm811_vm2, %v16300_v22  ;;  %11965 = vmatprep.mubr.msk.f32.mxu0 %vm377_vm1, %v7233_v60  ;;  %v4221_v60 = vld [vmem:[%s13316_s8 + $0x9b] sm:$0xff]  ;;  %v7653_v4 = vld [vmem:[%s13316_s8 + $0xae] sm:$0xff] }
 0x23f   : > { %v8334_v22 = vld [vmem:[%s14881_s28 + $0x88] sm:$0xff]  ;;  %8417 = vrot.lane.b32.xlu0 %v8331_v56, %s13071_s25 }
 0x240   : > { %8423 = vrot.lane.b32.xlu1 %v8334_v22, %s13071_s25  ;;  %v16308_v56 = vld [vmem:[#allocation19_spill] sm:$0xff]  ;;  %v16309_v22 = vld [vmem:[#allocation20_spill] sm:$0xff] }
 0x241   : > { %11438 = vmatmul.mubr.msk.f32.gmra.mrb[26].mxu1 %vm811_vm2, %v16301_v23  ;;  %11966 = vmatmul.mubr.msk.f32.gmra.mrb[62].mxu0 %vm377_vm1, %v7234_v19  ;;  %v4222_v19 = vld [vmem:[%s13316_s8 + $0xa3] sm:$0xff] }
 0x242   : > { %11440 = vmatprep.mubr.msk.f32.mxu1 %vm811_vm2, %v16302_v9  ;;  %11968 = vmatprep.mubr.msk.f32.mxu0 %vm377_vm1, %v7235_v42  ;;  %v7654_v42 = vld [vmem:[%s13316_s8 + $0xb6] sm:$0xff]  ;;  %v8333_v23 = vld [vmem:[%s14881_s28 + $0x80] sm:$0xff]  ;;  %v4223_v9 = vld [vmem:[%s13316_s8 + $0xab] sm:$0xff] }
 0x243   : > { %8421 = vrot.lane.b32.xlu0 %v8333_v23, %s13071_s25 }
 0x245   : > { %11441 = vmatmul.mubr.msk.f32.gmra.mrb[28].mxu1 %vm811_vm2, %v16303_v35  ;;  %11969 = vmatmul.mubr.msk.f32.gmra.mrb[64].mxu0 %vm377_vm1, %v7236_v2  ;;  %v7655_v2 = vld [vmem:[%s13316_s8 + $0xbe] sm:$0xff]  ;;  %v4224_v35 = vld [vmem:[%s13316_s8 + $0xb3] sm:$0xff] }
 0x246   : > { %11443 = vmatprep.mubr.msk.f32.mxu1 %vm811_vm2, %v16304_v27  ;;  %11971 = vmatprep.mubr.msk.f32.mxu0 %vm377_vm1, %v7237_v20  ;;  %v8336_v20 = vld [vmem:[%s14881_s28 + $0x98] sm:$0xff]  ;;  %v7656_v27 = vld [vmem:[%s13316_s8 + $0xc6] sm:$0xff] }
 0x247   : > { %8427 = vrot.lane.b32.xlu1 %v8336_v20, %s13071_s25 }
 0x249   : > { %11444 = vmatmul.mubr.msk.f32.gmra.mrb[30].mxu1 %vm811_vm2, %v16305_v17  ;;  %11972 = vmatmul.mubr.msk.f32.gmra.mrb[66].mxu0 %vm377_vm1, %v7238_v18  ;;  %v8335_v18 = vld [vmem:[%s14881_s28 + $0x90] sm:$0xff] }
 0x24a   : > { %11446 = vmatprep.mubr.msk.f32.mxu1 %vm811_vm2, %v16306_v5  ;;  %11974 = vmatprep.mubr.msk.f32.mxu0 %vm377_vm1, %v7239_v29  ;;  %v4225_v29 = vld [vmem:[%s13316_s8 + $0xbb] sm:$0xff]  ;;  %v7657_v17 = vld [vmem:[%s13316_s8 + $0xce] sm:$0xff] }
 0x24b   : > { %v8338_v5 = vld [vmem:[%s14881_s28 + $0xa8] sm:$0xff]  ;;  %8425 = vrot.lane.b32.xlu0 %v8335_v18, %s13071_s25 }
 0x24c   : > { %8431 = vrot.lane.b32.xlu1 %v8338_v5, %s13071_s25 }
 0x24d   : > { %11447 = vmatmul.mubr.msk.f32.gmra.mrb[32].mxu1 %vm811_vm2, %v16307_v39  ;;  %11975 = vmatmul.mubr.msk.f32.gmra.mrb[68].mxu0 %vm377_vm1, %v7240_v55  ;;  %v4226_v55 = vld [vmem:[%s13316_s8 + $0xc3] sm:$0xff]  ;;  %v4227_v39 = vld [vmem:[%s13316_s8 + $0xcb] sm:$0xff] }
 0x24e   : > { %11449 = vmatprep.mubr.msk.f32.mxu1 %vm811_vm2, %v3380_v1  ;;  %11977 = vmatprep.mubr.msk.f32.mxu0 %vm377_vm1, %v7241_v25  ;;  %v7658_v1 = vld [vmem:[%s13316_s8 + $0xd6] sm:$0xff]  ;;  %v8337_v25 = vld [vmem:[%s14881_s28 + $0xa0] sm:$0xff] }
 0x24f   : > { %8429 = vrot.lane.b32.xlu0 %v8337_v25, %s13071_s25 }
 0x251   : > { %11450 = vmatmul.mubr.msk.f32.gmra.mrb[34].mxu1 %vm811_vm2, %v3381_v13  ;;  %11978 = vmatmul.mubr.msk.f32.gmra.mrb[70].mxu0 %vm377_vm1, %v7242_v3  ;;  %v7659_v13 = vld [vmem:[%s13316_s8 + $0xde] sm:$0xff] }
 0x252   : > { %11516 = vmatprep.mubr.msk.f32.mxu1 %vm811_vm2, %v4204_v36  ;;  %11988 = vmatprep.mubr.msk.f32.mxu0 %vm811_vm2, %v7636_v59  ;;  %v8340_v3 = vld [vmem:[%s14881_s28 + $0xb8] sm:$0xff]  ;;  %v7660_v59 = vld [vmem:[%s13316_s8 + $0xe6] sm:$0xff] }
 0x253   : > { %v4228_v36 = vld [vmem:[%s13316_s8 + $0xd3] sm:$0xff]  ;;  %8435 = vrot.lane.b32.xlu1 %v8340_v3, %s13071_s25 }
 0x255   : > { %11517 = vmatmul.mubr.msk.f32.vlgmr.msra.gmra.mrb[36].mxu1 %vm811_vm2, %v4205_v11  ;;  %11989 = vmatmul.mubr.msk.f32.vlgmr.msra.gmra.mrb[36].mxu0 %vm811_vm2, %v7637_v0  ;;  %v8339_v11 = vld [vmem:[%s14881_s28 + $0xb0] sm:$0xff]  ;;  %v4229_v0 = vld [vmem:[%s13316_s8 + $0xdb] sm:$0xff] }
 0x256   : > { %11519 = vmatprep.mubr.msk.f32.mxu1 %vm811_vm2, %v4206_v28  ;;  %11991 = vmatprep.mubr.msk.f32.mxu0 %vm811_vm2, %v7638_v54  ;;  %v7661_v28 = vld [vmem:[%s13316_s8 + $0xee] sm:$0xff] }
 0x257   : > { %v8342_v54 = vld [vmem:[%s14881_s28 + $0xc8] sm:$0xff]  ;;  %8433 = vrot.lane.b32.xlu0 %v8339_v11, %s13071_s25  ;;  %v16314_v11 = vld [vmem:[#allocation25_spill] sm:$0xff] }
 0x258   : > { %8439 = vrot.lane.b32.xlu1 %v8342_v54, %s13071_s25  ;;  %v16315_v54 = vld [vmem:[#allocation26_spill] sm:$0xff] }
 0x259   : > { %11520 = vmatmul.mubr.msk.f32.gmra.mrb[38].mxu1 %vm811_vm2, %v4207_v46  ;;  %11992 = vmatmul.mubr.msk.f32.gmra.mrb[38].mxu0 %vm811_vm2, %v7639_v49  ;;  %v4230_v46 = vld [vmem:[%s13316_s8 + $0xe3] sm:$0xff]  ;;  %v7662_v49 = vld [vmem:[%s13316_s8 + $0xf6] sm:$0xff] }
 0x25a   : > { %11522 = vmatprep.mubr.msk.f32.mxu1 %vm811_vm2, %v4208_v57  ;;  %11994 = vmatprep.mubr.msk.f32.mxu0 %vm811_vm2, %v7640_v53  ;;  %v8341_v57 = vld [vmem:[%s14881_s28 + $0xc0] sm:$0xff]  ;;  %v4231_v53 = vld [vmem:[%s13316_s8 + $0xeb] sm:$0xff] }
 0x25b   : > { %8437 = vrot.lane.b32.xlu0 %v8341_v57, %s13071_s25 }
 0x25d   : > { %11523 = vmatmul.mubr.msk.f32.gmra.mrb[40].mxu1 %vm811_vm2, %v4209_v47  ;;  %11995 = vmatmul.mubr.msk.f32.gmra.mrb[40].mxu0 %vm811_vm2, %v7641_v6  ;;  %v7663_v47 = vld [vmem:[%s13316_s8 + $0xfe] sm:$0xff] }
 0x25e   : > { %11525 = vmatprep.mubr.msk.f32.mxu1 %vm811_vm2, %v4210_v63  ;;  %11997 = vmatprep.mubr.msk.f32.mxu0 %vm811_vm2, %v7642_v45  ;;  %v8344_v6 = vld [vmem:[%s14881_s28 + $0xd8] sm:$0xff]  ;;  %v7664_v45 = vld [vmem:[%s13316_s8 + $0x106] sm:$0xff] }
 0x25f   : > { %v4232_v63 = vld [vmem:[%s13316_s8 + $0xf3] sm:$0xff]  ;;  %8443 = vrot.lane.b32.xlu1 %v8344_v6, %s13071_s25 }
 0x261   : > { %11526 = vmatmul.mubr.msk.f32.gmra.mrb[42].mxu1 %vm811_vm2, %v4211_v51  ;;  %11998 = vmatmul.mubr.msk.f32.gmra.mrb[42].mxu0 %vm811_vm2, %v7643_v24  ;;  %v8343_v51 = vld [vmem:[%s14881_s28 + $0xd0] sm:$0xff]  ;;  %v4233_v24 = vld [vmem:[%s13316_s8 + $0xfb] sm:$0xff] }
 0x262   : > { %11528 = vmatprep.mubr.msk.f32.mxu1 %vm811_vm2, %v4212_v61  ;;  %12000 = vmatprep.mubr.msk.f32.mxu0 %vm811_vm2, %v7644_v31  ;;  %v7665_v61 = vld [vmem:[%s13316_s8 + $0x10e] sm:$0xff] }
 0x263   : > { %v8346_v31 = vld [vmem:[%s14881_s28 + $0xe8] sm:$0xff]  ;;  %8441 = vrot.lane.b32.xlu0 %v8343_v51, %s13071_s25 }
 0x264   : > { %8447 = vrot.lane.b32.xlu1 %v8346_v31, %s13071_s25 }
 0x265   : > { %11529 = vmatmul.mubr.msk.f32.gmra.mrb[44].mxu1 %vm811_vm2, %v4213_v7  ;;  %12001 = vmatmul.mubr.msk.f32.gmra.mrb[44].mxu0 %vm811_vm2, %v7645_v41  ;;  %v7666_v7 = vld [vmem:[%s13316_s8 + $0x116] sm:$0xff]  ;;  %v8345_v41 = vld [vmem:[%s14881_s28 + $0xe0] sm:$0xff] }
 0x266   : > { %11531 = vmatprep.mubr.msk.f32.mxu1 %vm811_vm2, %v4214_v62  ;;  %12003 = vmatprep.mubr.msk.f32.mxu0 %vm811_vm2, %v7646_v33  ;;  %v7667_v62 = vld [vmem:[%s13316_s8 + $0x11e] sm:$0xff] }
 0x267   : > { %v8348_v33 = vld [vmem:[%s14881_s28 + $0xf8] sm:$0xff]  ;;  %8445 = vrot.lane.b32.xlu0 %v8345_v41, %s13071_s25 }
 0x268   : > { %8451 = vrot.lane.b32.xlu1 %v8348_v33, %s13071_s25 }
 0x269   : > { %11532 = vmatmul.mubr.msk.f32.gmra.mrb[46].mxu1 %vm811_vm2, %v4215_v50  ;;  %12004 = vmatmul.mubr.msk.f32.gmra.mrb[46].mxu0 %vm811_vm2, %v7647_v10  ;;  %v7668_v50 = vld [vmem:[%s13316_s8 + $0x126] sm:$0xff]  ;;  %v8347_v10 = vld [vmem:[%s14881_s28 + $0xf0] sm:$0xff] }
 0x26a   : > { %11534 = vmatprep.mubr.msk.f32.mxu1 %vm811_vm2, %v4216_v34  ;;  %12006 = vmatprep.mubr.msk.f32.mxu0 %vm811_vm2, %v7648_v14  ;;  %v7669_v34 = vld [vmem:[%s13316_s8 + $0x12e] sm:$0xff] }
 0x26b   : > { %v8350_v14 = vld [vmem:[%s14881_s28 + $0x108] sm:$0xff]  ;;  %8449 = vrot.lane.b32.xlu0 %v8347_v10, %s13071_s25 }
 0x26c   : > { %8455 = vrot.lane.b32.xlu1 %v8350_v14, %s13071_s25  ;;  %v16320_v10 = vld [vmem:[#allocation31_spill] sm:$0xff]  ;;  %v16321_v14 = vld [vmem:[#allocation32_spill] sm:$0xff] }
 0x26d   : > { %11535 = vmatmul.mubr.msk.f32.gmra.mrb[48].mxu1 %vm811_vm2, %v4217_v40  ;;  %12007 = vmatmul.mubr.msk.f32.gmra.mrb[48].mxu0 %vm811_vm2, %v7649_v12  ;;  %v7670_v40 = vld [vmem:[%s13316_s8 + $0x136] sm:$0xff]  ;;  %v8349_v12 = vld [vmem:[%s14881_s28 + $0x100] sm:$0xff] }
 0x26e   : > { %11537 = vmatprep.mubr.msk.f32.mxu1 %vm811_vm2, %v4218_v8  ;;  %12009 = vmatprep.mubr.msk.f32.mxu0 %vm811_vm2, %v7650_v21  ;;  %v7671_v8 = vld [vmem:[%s13316_s8 + $0x13e] sm:$0xff]  ;;  %s13072_s8 = smov 96  }
 0x26f   : > { %v8352_v21 = vld [vmem:[%s14881_s28 + $0x118] sm:$0xff]  ;;  %8453 = vrot.lane.b32.xlu0 %v8349_v12, %s13071_s25 }
 0x270   : > { %8459 = vrot.lane.b32.xlu1 %v8352_v21, %s13071_s25 }
 0x271   : > { %11538 = vmatmul.mubr.msk.f32.gmra.mrb[50].mxu1 %vm811_vm2, %v4219_v30  ;;  %12010 = vmatmul.mubr.msk.f32.gmra.mrb[50].mxu0 %vm811_vm2, %v7651_v37  ;;  %v15208_v30 = vld [vmem:[%s16166_s5] ss:$0 sm:$0xff] }
 0x272   : > { %11540 = vmatprep.mubr.msk.f32.mxu1 %vm811_vm2, %v4220_v48  ;;  %12012 = vmatprep.mubr.msk.f32.mxu0 %vm811_vm2, %v7652_v52 }
 0x273   : > { %8457 = vrot.lane.b32.xlu0 %v8351_v26, %s13071_s25 }
 0x275   : > { %11541 = vmatmul.mubr.msk.f32.gmra.mrb[52].mxu1 %vm811_vm2, %v4221_v60  ;;  %12013 = vmatmul.mubr.msk.f32.gmra.mrb[52].mxu0 %vm811_vm2, %v7653_v4 }
 0x276   : > { %11543 = vmatprep.mubr.msk.f32.mxu1 %vm811_vm2, %v4222_v19  ;;  %12015 = vmatprep.mubr.msk.f32.mxu0 %vm811_vm2, %v7654_v42 }
 0x279   : > { %11544 = vmatmul.mubr.msk.f32.gmra.mrb[54].mxu1 %vm811_vm2, %v4223_v9  ;;  %12016 = vmatmul.mubr.msk.f32.gmra.mrb[54].mxu0 %vm811_vm2, %v7655_v2  ;;  %v16310_v2 = vld [vmem:[#allocation21_spill] sm:$0xff] }
 0x27a   : > { %11546 = vmatprep.mubr.msk.f32.mxu1 %vm811_vm2, %v4224_v35  ;;  %12018 = vmatprep.mubr.msk.f32.mxu0 %vm811_vm2, %v7656_v27  ;;  %v16311_v27 = vld [vmem:[#allocation22_spill] sm:$0xff] }
 0x27d   : > { %11547 = vmatmul.mubr.msk.f32.gmra.mrb[56].mxu1 %vm811_vm2, %v4225_v29  ;;  %12019 = vmatmul.mubr.msk.f32.gmra.mrb[56].mxu0 %vm811_vm2, %v7657_v17 }
 0x27e   : > { %11549 = vmatprep.mubr.msk.f32.mxu1 %vm811_vm2, %v4226_v55  ;;  %12021 = vmatprep.mubr.msk.f32.mxu0 %vm811_vm2, %v7658_v1  ;;  %v16312_v55 = vld [vmem:[#allocation23_spill] sm:$0xff] }
 0x281   : > { %11550 = vmatmul.mubr.msk.f32.gmra.mrb[58].mxu1 %vm811_vm2, %v4227_v39  ;;  %12022 = vmatmul.mubr.msk.f32.gmra.mrb[58].mxu0 %vm811_vm2, %v7659_v13  ;;  %v16313_v39 = vld [vmem:[#allocation24_spill] sm:$0xff] }
 0x282   : > { %11552 = vmatprep.mubr.msk.f32.mxu1 %vm811_vm2, %v4228_v36  ;;  %12024 = vmatprep.mubr.msk.f32.mxu0 %vm811_vm2, %v7660_v59 }
 0x285   : > { %11553 = vmatmul.mubr.msk.f32.gmra.mrb[60].mxu1 %vm811_vm2, %v4229_v0  ;;  %12025 = vmatmul.mubr.msk.f32.gmra.mrb[60].mxu0 %vm811_vm2, %v7661_v28 }
 0x286   : > { %11555 = vmatprep.mubr.msk.f32.mxu1 %vm811_vm2, %v4230_v46  ;;  %12027 = vmatprep.mubr.msk.f32.mxu0 %vm811_vm2, %v7662_v49 }
 0x289   : > { %11556 = vmatmul.mubr.msk.f32.gmra.mrb[62].mxu1 %vm811_vm2, %v4231_v53  ;;  %12028 = vmatmul.mubr.msk.f32.gmra.mrb[62].mxu0 %vm811_vm2, %v7663_v47  ;;  %v16316_v47 = vld [vmem:[#allocation27_spill] sm:$0xff] }
 0x28a   : > { %11558 = vmatprep.mubr.msk.f32.mxu1 %vm811_vm2, %v4232_v63  ;;  %12030 = vmatprep.mubr.msk.f32.mxu0 %vm811_vm2, %v7664_v45  ;;  %v16317_v45 = vld [vmem:[#allocation28_spill] sm:$0xff] }
 0x28d   : > { %11559 = vmatmul.mubr.msk.f32.gmra.mrb[64].mxu1 %vm811_vm2, %v4233_v24  ;;  %12031 = vmatmul.mubr.msk.f32.gmra.mrb[64].mxu0 %vm811_vm2, %v7665_v61 }
 0x28e   : > { %11561 = vmatprep.mubr.msk.f32.mxu1 %vm811_vm2, %v4234_v15  ;;  %12033 = vmatprep.mubr.msk.f32.mxu0 %vm811_vm2, %v7666_v7  ;;  %v16318_v15 = vld [vmem:[#allocation29_spill] sm:$0xff] }
 0x291   : > { %11562 = vmatmul.mubr.msk.f32.gmra.mrb[66].mxu1 %vm811_vm2, %v4235_v43  ;;  %12034 = vmatmul.mubr.msk.f32.gmra.mrb[66].mxu0 %vm811_vm2, %v7667_v62  ;;  %v16319_v43 = vld [vmem:[#allocation30_spill] sm:$0xff] }
 0x292   : > { %11564 = vmatprep.mubr.msk.f32.mxu1 %vm811_vm2, %v4236_v38  ;;  %12036 = vmatprep.mubr.msk.f32.mxu0 %vm811_vm2, %v7668_v50 }
 0x295   : > { %11565 = vmatmul.mubr.msk.f32.gmra.mrb[68].mxu1 %vm811_vm2, %v4237_v32  ;;  %12037 = vmatmul.mubr.msk.f32.gmra.mrb[68].mxu0 %vm811_vm2, %v7669_v34 }
 0x296   : > { %11567 = vmatprep.mubr.msk.f32.mxu1 %vm811_vm2, %v4238_v58  ;;  %12039 = vmatprep.mubr.msk.f32.mxu0 %vm811_vm2, %v7670_v40 }
 0x299   : > { %11568 = vmatmul.mubr.msk.f32.gmra.mrb[70].mxu1 %vm811_vm2, %v4239_v16  ;;  %12040 = vmatmul.mubr.msk.f32.gmra.mrb[70].mxu0 %vm811_vm2, %v7671_v8  ;;  %v16322_v8 = vld [vmem:[#allocation33_spill] sm:$0xff] }
 0x2e0   : > { %v11400_v37 = vpop.f32.mrb[0].mxu1 }
 0x2e1   : > { %v12114_v44 = vadd.f32 %v11400_v37, %v15208_v30  ;;  %v3560_v48 = vpop.f32.mrb[1].mxu1  ;;  %v16323_v37 = vld [vmem:[#allocation34_spill] sm:$0xff] }
 0x2e2   : > { %v12118_v52 = vadd.f32 %v15208_v30, %v3560_v48 }
 0x2e3   : > { %v15213_v60 = vadd.f32 %v12114_v44, %v16308_v56 }
 0x2e4   : > { %v11403_v4 = vpop.f32.mrb[2].mxu1  ;;  %v15216_v19 = vadd.f32 %v12118_v52, %v16309_v22 }
 0x2e5   : > { %v12122_v42 = vadd.f32 %v11403_v4, %v15208_v30  ;;  %v3570_v23 = vpop.f32.mrb[3].mxu1  ;;  %v16324_v4 = vld [vmem:[#allocation35_spill] sm:$0xff] }
 0x2e6   : > { %v12126_v9 = vadd.f32 %v15208_v30, %v3570_v23  ;;  %v16325_v23 = vld [vmem:[#allocation36_spill] sm:$0xff] }
 0x2e7   : > { %v15221_v20 = vadd.f32 %v12122_v42, %v16310_v2 }
 0x2e8   : > { %v11406_v35 = vpop.f32.mrb[4].mxu1  ;;  %v15224_v18 = vadd.f32 %v12126_v9, %v16311_v27 }
 0x2e9   : > { %v12130_v29 = vadd.f32 %v11406_v35, %v15208_v30  ;;  %v3580_v17 = vpop.f32.mrb[5].mxu1 }
 0x2ea   : > { %v12134_v5 = vadd.f32 %v15208_v30, %v3580_v17 }
 0x2eb   : > { %v15229_v1 = vadd.f32 %v12130_v29, %v16312_v55  ;;  %v16326_v29 = vld [vmem:[#allocation37_spill] sm:$0xff]  ;;  %v16327_v55 = vld [vmem:[#allocation38_spill] sm:$0xff] }
 0x2ec   : > { %v11409_v25 = vpop.f32.mrb[6].mxu1  ;;  %v15232_v13 = vadd.f32 %v12134_v5, %v16313_v39 }
 0x2ed   : > { %v12138_v3 = vadd.f32 %v11409_v25, %v15208_v30  ;;  %v3590_v36 = vpop.f32.mrb[7].mxu1 }
 0x2ee   : > { %v12142_v59 = vadd.f32 %v15208_v30, %v3590_v36 }
 0x2ef   : > { %v15237_v0 = vadd.f32 %v12138_v3, %v16314_v11 }
 0x2f0   : > { %v11412_v28 = vpop.f32.mrb[8].mxu1  ;;  %v15240_v46 = vadd.f32 %v12142_v59, %v16315_v54  ;;  %v16328_v59 = vld [vmem:[#allocation39_spill] sm:$0xff]  ;;  %v16329_v54 = vld [vmem:[#allocation40_spill] sm:$0xff] }
 0x2f1   : > { %v12146_v49 = vadd.f32 %v11412_v28, %v15208_v30  ;;  %v3600_v57 = vpop.f32.mrb[9].mxu1 }
 0x2f2   : > { %v12150_v53 = vadd.f32 %v15208_v30, %v3600_v57 }
 0x2f3   : > { %v15245_v6 = vadd.f32 %v12146_v49, %v16316_v47 }
 0x2f4   : > { %v11415_v63 = vpop.f32.mrb[10].mxu1  ;;  %v15248_v51 = vadd.f32 %v12150_v53, %v16317_v45 }
 0x2f5   : > { %v12154_v24 = vadd.f32 %v11415_v63, %v15208_v30  ;;  %v3610_v61 = vpop.f32.mrb[11].mxu1  ;;  %v16330_v63 = vld [vmem:[#allocation41_spill] sm:$0xff] }
 0x2f6   : > { %v12158_v31 = vadd.f32 %v15208_v30, %v3610_v61  ;;  %v16331_v61 = vld [vmem:[#allocation42_spill] sm:$0xff] }
 0x2f7   : > { %v15253_v7 = vadd.f32 %v12154_v24, %v16318_v15 }
 0x2f8   : > { %v11418_v41 = vpop.f32.mrb[12].mxu1  ;;  %v15256_v62 = vadd.f32 %v12158_v31, %v16319_v43 }
 0x2f9   : > { %v12162_v33 = vadd.f32 %v11418_v41, %v15208_v30  ;;  %v3620_v38 = vpop.f32.mrb[13].mxu1 }
 0x2fa   : > { %v12166_v50 = vadd.f32 %v15208_v30, %v3620_v38 }
 0x2fb   : > { %v15261_v32 = vadd.f32 %v12162_v33, %v16320_v10  ;;  %v16332_v33 = vld [vmem:[#allocation43_spill] sm:$0xff]  ;;  %v16333_v10 = vld [vmem:[#allocation44_spill] sm:$0xff] }
 0x2fc   : > { %v11421_v34 = vpop.f32.mrb[14].mxu1  ;;  %v15264_v58 = vadd.f32 %v12166_v50, %v16321_v14 }
 0x2fd   : > { %v12170_v40 = vadd.f32 %v11421_v34, %v15208_v30  ;;  %v3630_v12 = vpop.f32.mrb[15].mxu1 }
 0x2fe   : > { %v12174_v16 = vadd.f32 %v15208_v30, %v3630_v12 }
 0x2ff   : > { %v15269_v21 = vadd.f32 %v12170_v40, %v16322_v8 }
 0x300   : > { %v11424_v26 = vpop.f32.mrb[16].mxu1  ;;  %v15272_v44 = vadd.f32 %v12174_v16, %v16323_v37  ;;  %v16334_v16 = vld [vmem:[#allocation45_spill] sm:$0xff]  ;;  %v16335_v37 = vld [vmem:[#allocation46_spill] sm:$0xff] }
 0x301   : > { %v12178_v48 = vadd.f32 %v11424_v26, %v15208_v30  ;;  %v3640_v52 = vpop.f32.mrb[17].mxu1 }
 0x302   : > { %v12182_v56 = vadd.f32 %v15208_v30, %v3640_v52 }
 0x303   : > { %v15277_v22 = vadd.f32 %v12178_v48, %v16324_v4 }
 0x304   : > { %v11427_v42 = vpop.f32.mrb[18].mxu1  ;;  %v15280_v9 = vadd.f32 %v12182_v56, %v16325_v23 }
 0x305   : > { %v12186_v2 = vadd.f32 %v11427_v42, %v15208_v30  ;;  %v3650_v35 = vpop.f32.mrb[19].mxu1  ;;  %v16336_v42 = vld [vmem:[#allocation47_spill] sm:$0xff] }
 0x306   : > { %v12190_v27 = vadd.f32 %v15208_v30, %v3650_v35  ;;  %v16337_v35 = vld [vmem:[#allocation48_spill] sm:$0xff] }
 0x307   : > { %v15285_v17 = vadd.f32 %v12186_v2, %v16326_v29 }
 0x308   : > { %v11430_v5 = vpop.f32.mrb[20].mxu1  ;;  %v15288_v25 = vadd.f32 %v12190_v27, %v16327_v55 }
 0x309   : > { %v12194_v39 = vadd.f32 %v11430_v5, %v15208_v30  ;;  %v3660_v3 = vpop.f32.mrb[21].mxu1 }
 0x30a   : > { %v12198_v36 = vadd.f32 %v15208_v30, %v3660_v3 }
 0x30b   : > { %v15293_v11 = vadd.f32 %v12194_v39, %v16328_v59  ;;  %v16338_v39 = vld [vmem:[#allocation49_spill] sm:$0xff]  ;;  %v16339_v59 = vld [vmem:[#allocation50_spill] sm:$0xff] }
 0x30c   : > { %v11433_v28 = vpop.f32.mrb[22].mxu1  ;;  %v15296_v49 = vadd.f32 %v12198_v36, %v16329_v54 }
 0x30d   : > { %v12202_v57 = vadd.f32 %v11433_v28, %v15208_v30  ;;  %v3670_v53 = vpop.f32.mrb[23].mxu1 }
 0x30e   : > { %v12206_v47 = vadd.f32 %v15208_v30, %v3670_v53 }
 0x30f   : > { %v15301_v45 = vadd.f32 %v12202_v57, %v16330_v63 }
 0x310   : > { %v11436_v24 = vpop.f32.mrb[24].mxu1  ;;  %v15304_v31 = vadd.f32 %v12206_v47, %v16331_v61  ;;  %v16340_v47 = vld [vmem:[#allocation51_spill] sm:$0xff]  ;;  %v16341_v61 = vld [vmem:[#allocation52_spill] sm:$0xff] }
 0x311   : > { %v12210_v15 = vadd.f32 %v11436_v24, %v15208_v30  ;;  %v3680_v41 = vpop.f32.mrb[25].mxu1 }
 0x312   : > { %v12214_v43 = vadd.f32 %v15208_v30, %v3680_v41 }
 0x313   : > { %v15309_v38 = vadd.f32 %v12210_v15, %v16332_v33 }
 0x314   : > { %v11439_v50 = vpop.f32.mrb[26].mxu1  ;;  %v15312_v34 = vadd.f32 %v12214_v43, %v16333_v10 }
 0x315   : > { %v12218_v14 = vadd.f32 %v11439_v50, %v15208_v30  ;;  %v3690_v40 = vpop.f32.mrb[27].mxu1  ;;  %v16342_v50 = vld [vmem:[#allocation53_spill] sm:$0xff] }
 0x316   : > { %v12222_v12 = vadd.f32 %v15208_v30, %v3690_v40 }
 0x317   : > { %v15317_v8 = vadd.f32 %v12218_v14, %v16334_v16 }
 0x318   : > { %v11442_v26 = vpop.f32.mrb[28].mxu1  ;;  %v15320_v48 = vadd.f32 %v12222_v12, %v16335_v37  ;;  %v16343_v12 = vld [vmem:[#allocation54_spill] sm:$0xff] }
 0x319   : > { %v12226_v52 = vadd.f32 %v11442_v26, %v15208_v30  ;;  %v3700_v56 = vpop.f32.mrb[29].mxu1 }
 0x31a   : > { %v12230_v4 = vadd.f32 %v15208_v30, %v3700_v56 }
 0x31b   : > { %v15325_v23 = vadd.f32 %v12226_v52, %v16336_v42 }
 0x31c   : > { %v11445_v2 = vpop.f32.mrb[30].mxu1  ;;  %v15328_v27 = vadd.f32 %v12230_v4, %v16337_v35 }
 0x31d   : > { %v12234_v29 = vadd.f32 %v11445_v2, %v15208_v30  ;;  %v3710_v5 = vpop.f32.mrb[31].mxu1 }
 0x31e   : > { %v12238_v55 = vadd.f32 %v15208_v30, %v3710_v5 }
 0x31f   : > { %v15333_v3 = vadd.f32 %v12234_v29, %v16338_v39 }
 0x320   : > { %v11448_v36 = vpop.f32.mrb[32].mxu1  ;;  %v15336_v28 = vadd.f32 %v12238_v55, %v16339_v59 }
 0x321   : > { %v12242_v54 = vadd.f32 %v11448_v36, %v15208_v30  ;;  %v3720_v57 = vpop.f32.mrb[33].mxu1 }
 0x322   : > { %v12246_v53 = vadd.f32 %v15208_v30, %v3720_v57 }
 0x323   : > { %v15341_v63 = vadd.f32 %v12242_v54, %v16340_v47  ;;  %v15374_v47 = vpop.permute.xlu1 %8393 }
 0x324   : > { %v11451_v24 = vpop.f32.mrb[34].mxu1  ;;  %v15344_v15 = vadd.f32 %v12246_v53, %v16341_v61 }
 0x325   : > { %v12250_v41 = vadd.f32 %v11451_v24, %v15208_v30  ;;  %v3730_v43 = vpop.f32.mrb[35].mxu1 }
 0x326   : > { %v12254_v33 = vadd.f32 %v15208_v30, %v3730_v43 }
 0x327   : > { %v15349_v10 = vadd.f32 %v12250_v41, %v16342_v50 }
 0x328   : > { %v11518_v14 = vpop.f32.mrb[36].mxu1  ;;  %v11990_v40 = vpop.f32.mrb[36].mxu0  ;;  %v15352_v16 = vadd.f32 %v12254_v33, %v16343_v12 }
 0x329   : > { %v12116_v26 = vadd.f32 %v15213_v60, %v11518_v14  ;;  %v4418_v37 = vpop.f32.mrb[37].mxu1  ;;  %v7850_v52 = vpop.f32.mrb[37].mxu0 }
 0x32a   : > { %v12120_v56 = vadd.f32 %v15216_v19, %v4418_v37  ;;  %v15384_v14 = vpop.permute.xlu0 %8389 }
 0x32b   : > { %v15356_v4 = vadd.f32 %v12116_v26, %v11990_v40 }
 0x32c   : > { %v15358_v42 = vadd.f32 %v12120_v56, %v7850_v52  ;;  %v11521_v2 = vpop.f32.mrb[38].mxu1  ;;  %v11993_v30 = vpop.f32.mrb[38].mxu0 }
 0x32d   : > { %12775 = vtanh.f32 %v15356_v4  ;;  %v12124_v35 = vadd.f32 %v15221_v20, %v11521_v2  ;;  %v4428_v29 = vpop.f32.mrb[39].mxu1  ;;  %v7860_v5 = vpop.f32.mrb[39].mxu0 }
 0x32e   : > { %12777 = vtanh.f32 %v15358_v42  ;;  %v12128_v60 = vadd.f32 %v15224_v18, %v4428_v29 }
 0x32f   : > { %v15364_v55 = vadd.f32 %v12124_v35, %v11993_v30  ;;  %v15396_v35 = vpop.permute.xlu1 %8395 }
 0x330   : > { %v15366_v39 = vadd.f32 %v12128_v60, %v7860_v5  ;;  %v11524_v19 = vpop.f32.mrb[40].mxu1  ;;  %v11996_v36 = vpop.f32.mrb[40].mxu0 }
 0x331   : > { %12779 = vtanh.f32 %v15364_v55  ;;  %v12132_v59 = vadd.f32 %v15229_v1, %v11524_v19  ;;  %v4438_v54 = vpop.f32.mrb[41].mxu1  ;;  %v7870_v57 = vpop.f32.mrb[41].mxu0 }
 0x332   : > { %12781 = vtanh.f32 %v15366_v39  ;;  %v12136_v20 = vadd.f32 %v15232_v13, %v4438_v54 }
 0x333   : > { %v15372_v53 = vadd.f32 %v12132_v59, %v11996_v36 }
 0x334   : > { %v15376_v18 = vadd.f32 %v12136_v20, %v7870_v57  ;;  %v11527_v24 = vpop.f32.mrb[42].mxu1  ;;  %v11999_v61 = vpop.f32.mrb[42].mxu0 }
 0x335   : > { %12783 = vtanh.f32 %v15372_v53  ;;  %v12140_v41 = vadd.f32 %v15237_v0, %v11527_v24  ;;  %v4448_v43 = vpop.f32.mrb[43].mxu1  ;;  %v7880_v1 = vpop.f32.mrb[43].mxu0 }
 0x336   : > { %12785 = vtanh.f32 %v15376_v18  ;;  %v12144_v33 = vadd.f32 %v15240_v46, %v4448_v43  ;;  %v15406_v20 = vpop.permute.xlu0 %8391 }
 0x337   : > { %v12776_v50 = vpop.eup %12775  ;;  %v15382_v13 = vadd.f32 %v12140_v41, %v11999_v61 }
 0x338   : > { %v12778_v40 = vpop.eup %12777  ;;  %v15386_v12 = vadd.f32 %v12144_v33, %v7880_v1  ;;  %v12002_v26 = vpop.f32.mrb[44].mxu0  ;;  %8571 = vrot.lane.b32.xlu1 %v12776_v50, %s13071_s25 }
 0x339   : > { %v11530_v37 = vpop.f32.mrb[44].mxu1  ;;  %12787 = vtanh.f32 %v15382_v13  ;;  %v7890_v52 = vpop.f32.mrb[45].mxu0  ;;  %8569 = vrot.lane.b32.xlu0 %v12778_v40, %s13071_s25 }
 0x33a   : > { %v12148_v0 = vadd.f32 %v15245_v6, %v11530_v37  ;;  %v4458_v46 = vpop.f32.mrb[45].mxu1  ;;  %12789 = vtanh.f32 %v15386_v12  ;;  %v15419_v37 = vpop.permute.xlu0 %8397 }
 0x33b   : > { %v12152_v56 = vadd.f32 %v15248_v51, %v4458_v46  ;;  %v12780_v2 = vpop.eup %12779 }
 0x33c   : > { %v15394_v30 = vadd.f32 %v12148_v0, %v12002_v26  ;;  %v12782_v29 = vpop.eup %12781  ;;  %v12005_v60 = vpop.f32.mrb[46].mxu0  ;;  %8575 = vrot.lane.b32.xlu1 %v12780_v2, %s13071_s25 }
 0x33d   : > { %v15398_v5 = vadd.f32 %v12152_v56, %v7890_v52  ;;  %v11533_v6 = vpop.f32.mrb[46].mxu1  ;;  %v7900_v36 = vpop.f32.mrb[47].mxu0  ;;  %8573 = vrot.lane.b32.xlu0 %v12782_v29, %s13071_s25 }
 0x33e   : > { %v12156_v19 = vadd.f32 %v15253_v7, %v11533_v6  ;;  %v4468_v59 = vpop.f32.mrb[47].mxu1  ;;  %12791 = vtanh.f32 %v15394_v30  ;;  %v15417_v26 = vpop.permute.xlu1 %8399 }
 0x33f   : > { %v12160_v51 = vadd.f32 %v15256_v62, %v4468_v59  ;;  %v12784_v54 = vpop.eup %12783  ;;  %12793 = vtanh.f32 %v15398_v5 }
 0x340   : > { %v15404_v57 = vadd.f32 %v12156_v19, %v12005_v60  ;;  %v12786_v24 = vpop.eup %12785  ;;  %v12008_v41 = vpop.f32.mrb[48].mxu0  ;;  %8579 = vrot.lane.b32.xlu1 %v12784_v54, %s13071_s25 }
 0x341   : > { %v15408_v61 = vadd.f32 %v12160_v51, %v7900_v36  ;;  %v11536_v43 = vpop.f32.mrb[48].mxu1  ;;  %v7910_v1 = vpop.f32.mrb[49].mxu0  ;;  %8577 = vrot.lane.b32.xlu0 %v12786_v24, %s13071_s25 }
 0x342   : > { %v12164_v7 = vadd.f32 %v15261_v32, %v11536_v43  ;;  %v4478_v33 = vpop.f32.mrb[49].mxu1  ;;  %12795 = vtanh.f32 %v15404_v57  ;;  %v15439_v43 = vpop.permute.xlu0 %8401 }
 0x343   : > { %v12168_v62 = vadd.f32 %v15264_v58, %v4478_v33  ;;  %v12788_v50 = vpop.eup %12787  ;;  %12797 = vtanh.f32 %v15408_v61 }
 0x344   : > { %v15415_v40 = vadd.f32 %v12164_v7, %v12008_v41  ;;  %v12790_v0 = vpop.eup %12789  ;;  %v12011_v46 = vpop.f32.mrb[50].mxu0  ;;  %8583 = vrot.lane.b32.xlu1 %v12788_v50, %s13071_s25 }
 0x345   : > { %v15421_v52 = vadd.f32 %v12168_v62, %v7910_v1  ;;  %v11539_v32 = vpop.f32.mrb[50].mxu1  ;;  %v7920_v2 = vpop.f32.mrb[51].mxu0  ;;  %8581 = vrot.lane.b32.xlu0 %v12790_v0, %s13071_s25 }
 0x346   : > { %v12172_v56 = vadd.f32 %v15269_v21, %v11539_v32  ;;  %v4488_v58 = vpop.f32.mrb[51].mxu1  ;;  %v15437_v41 = vpop.permute.xlu1 %8403  ;;  %12799 = vtanh.f32 %v15415_v40 }
 0x347   : > { %v12176_v29 = vadd.f32 %v15272_v44, %v4488_v58  ;;  %12801 = vtanh.f32 %v15421_v52 }
 0x348   : > { %v15428_v60 = vadd.f32 %v12172_v56, %v12011_v46  ;;  %v12014_v19 = vpop.f32.mrb[52].mxu0  ;;  %v11542_v36 = vpop.f32.mrb[52].mxu1 }
 0x349   : > { %v15430_v6 = vadd.f32 %v12176_v29, %v7920_v2  ;;  %v12180_v59 = vadd.f32 %v15277_v22, %v11542_v36  ;;  %v7930_v51 = vpop.f32.mrb[53].mxu0  ;;  %v4498_v21 = vpop.f32.mrb[53].mxu1 }
 0x34a   : > { %v12184_v54 = vadd.f32 %v15280_v9, %v4498_v21  ;;  %v12792_v44 = vpop.eup %12791  ;;  %12803 = vtanh.f32 %v15428_v60 }
 0x34b   : > { %v15435_v24 = vadd.f32 %v12180_v59, %v12014_v19  ;;  %8587 = vrot.lane.b32.xlu1 %v12792_v44, %s13071_s25  ;;  %v12794_v46 = vpop.eup %12793  ;;  %v15458_v59 = vpop.permute.xlu1 %8407  ;;  %12805 = vtanh.f32 %v15430_v6 }
 0x34c   : > { %v15441_v7 = vadd.f32 %v12184_v54, %v7930_v51  ;;  %v12017_v1 = vpop.f32.mrb[54].mxu0  ;;  %v11545_v33 = vpop.f32.mrb[54].mxu1  ;;  %8585 = vrot.lane.b32.xlu0 %v12794_v46, %s13071_s25 }
 0x34d   : > { %v12188_v22 = vadd.f32 %v15285_v17, %v11545_v33  ;;  %v7940_v62 = vpop.f32.mrb[55].mxu0  ;;  %v4508_v50 = vpop.f32.mrb[55].mxu1  ;;  %12807 = vtanh.f32 %v15435_v24 }
 0x34e   : > { %v12192_v9 = vadd.f32 %v15288_v25, %v4508_v50  ;;  %v12796_v25 = vpop.eup %12795  ;;  %v15460_v51 = vpop.permute.xlu0 %8405  ;;  %12809 = vtanh.f32 %v15441_v7 }
 0x34f   : > { %v15448_v0 = vadd.f32 %v12188_v22, %v12017_v1  ;;  %8591 = vrot.lane.b32.xlu1 %v12796_v25, %s13071_s25  ;;  %v12798_v22 = vpop.eup %12797 }
 0x350   : > { %v15450_v32 = vadd.f32 %v12192_v9, %v7940_v62  ;;  %v12020_v56 = vpop.f32.mrb[56].mxu0  ;;  %v11548_v2 = vpop.f32.mrb[56].mxu1  ;;  %8589 = vrot.lane.b32.xlu0 %v12798_v22, %s13071_s25 }
 0x351   : > { %v12196_v58 = vadd.f32 %v15293_v11, %v11548_v2  ;;  %v7950_v29 = vpop.f32.mrb[57].mxu0  ;;  %v4518_v19 = vpop.f32.mrb[57].mxu1  ;;  %12811 = vtanh.f32 %v15448_v0 }
 0x352   : > { %v12200_v17 = vadd.f32 %v15296_v49, %v4518_v19  ;;  %v15480_v19 = vpop.permute.xlu1 %8411  ;;  %12813 = vtanh.f32 %v15450_v32 }
 0x353   : > { %v15456_v36 = vadd.f32 %v12196_v58, %v12020_v56  ;;  %v12800_v56 = vpop.eup %12799 }
 0x354   : > { %v15463_v21 = vadd.f32 %v12200_v17, %v7950_v29  ;;  %v12023_v54 = vpop.f32.mrb[58].mxu0  ;;  %v11551_v44 = vpop.f32.mrb[58].mxu1  ;;  %8595 = vrot.lane.b32.xlu1 %v12800_v56, %s13071_s25 }
 0x355   : > { %v12204_v11 = vadd.f32 %v15301_v45, %v11551_v44  ;;  %v7960_v1 = vpop.f32.mrb[59].mxu0  ;;  %v4528_v33 = vpop.f32.mrb[59].mxu1  ;;  %12815 = vtanh.f32 %v15456_v36 }
 0x356   : > { %v12208_v49 = vadd.f32 %v15304_v31, %v4528_v33  ;;  %v15482_v17 = vpop.permute.xlu0 %8409  ;;  %v12802_v25 = vpop.eup %12801  ;;  %12817 = vtanh.f32 %v15463_v21 }
 0x357   : > { %v15468_v62 = vadd.f32 %v12204_v11, %v12023_v54  ;;  %8593 = vrot.lane.b32.xlu0 %v12802_v25, %s13071_s25 }
 0x358   : > { %v15472_v50 = vadd.f32 %v12208_v49, %v7960_v1  ;;  %v12026_v9 = vpop.f32.mrb[60].mxu0  ;;  %v11554_v46 = vpop.f32.mrb[60].mxu1 }
 0x359   : > { %v12212_v2 = vadd.f32 %v15309_v38, %v11554_v46  ;;  %v7970_v58 = vpop.f32.mrb[61].mxu0  ;;  %v4538_v45 = vpop.f32.mrb[61].mxu1  ;;  %12819 = vtanh.f32 %v15468_v62 }
 0x35a   : > { %v12216_v31 = vadd.f32 %v15312_v34, %v4538_v45  ;;  %v12804_v49 = vpop.eup %12803  ;;  %v15501_v25 = vpop.permute.xlu0 %8413  ;;  %12821 = vtanh.f32 %v15472_v50 }
 0x35b   : > { %v15478_v29 = vadd.f32 %v12212_v2, %v12026_v9  ;;  %8599 = vrot.lane.b32.xlu1 %v12804_v49, %s13071_s25 }
 0x35c   : > { %v15484_v54 = vadd.f32 %v12216_v31, %v7970_v58  ;;  %v12029_v44 = vpop.f32.mrb[62].mxu0  ;;  %v11557_v11 = vpop.f32.mrb[62].mxu1 }
 0x35d   : > { %v12220_v38 = vadd.f32 %v15317_v8, %v11557_v11  ;;  %v7980_v1 = vpop.f32.mrb[63].mxu0  ;;  %v4548_v33 = vpop.f32.mrb[63].mxu1  ;;  %12823 = vtanh.f32 %v15478_v29 }
 0x35e   : > { %v12224_v34 = vadd.f32 %v15320_v48, %v4548_v33  ;;  %v12806_v8 = vpop.eup %12805  ;;  %v15499_v48 = vpop.permute.xlu1 %8415  ;;  %12825 = vtanh.f32 %v15484_v54 }
 0x35f   : > { %v15490_v22 = vadd.f32 %v12220_v38, %v12029_v44  ;;  %8597 = vrot.lane.b32.xlu0 %v12806_v8, %s13071_s25  ;;  %v12808_v11 = vpop.eup %12807 }
 0x360   : > { %v15493_v9 = vadd.f32 %v12224_v34, %v7980_v1  ;;  %v12032_v46 = vpop.f32.mrb[64].mxu0  ;;  %v11560_v56 = vpop.f32.mrb[64].mxu1  ;;  %8603 = vrot.lane.b32.xlu1 %v12808_v11, %s13071_s25 }
 0x361   : > { %v12228_v2 = vadd.f32 %v15325_v23, %v11560_v56  ;;  %v7990_v58 = vpop.f32.mrb[65].mxu0  ;;  %v4558_v45 = vpop.f32.mrb[65].mxu1  ;;  %12827 = vtanh.f32 %v15490_v22 }
 0x362   : > { %v12232_v31 = vadd.f32 %v15328_v27, %v4558_v45  ;;  %v12810_v56 = vpop.eup %12809  ;;  %12829 = vtanh.f32 %v15493_v9 }
 0x363   : > { %v15503_v44 = vadd.f32 %v12228_v2, %v12032_v46  ;;  %8601 = vrot.lane.b32.xlu0 %v12810_v56, %s13071_s25 }
 0x364   : > { %v15506_v38 = vadd.f32 %v12232_v31, %v7990_v58  ;;  %v12035_v1 = vpop.f32.mrb[66].mxu0  ;;  %v11563_v23 = vpop.f32.mrb[66].mxu1 }
 0x365   : > { %v12236_v33 = vadd.f32 %v15333_v3, %v11563_v23  ;;  %v8000_v27 = vpop.f32.mrb[67].mxu0  ;;  %v4568_v34 = vpop.f32.mrb[67].mxu1  ;;  %12831 = vtanh.f32 %v15503_v44 }
 0x366   : > { %v12240_v49 = vadd.f32 %v15336_v28, %v4568_v34  ;;  %v15519_v3 = vpop.permute.xlu1 %8419  ;;  %v12812_v23 = vpop.eup %12811  ;;  %12833 = vtanh.f32 %v15506_v38 }
 0x367   : > { %v15512_v46 = vadd.f32 %v12236_v33, %v12035_v1  ;;  %16344 = vst [vmem:[#allocation18_spill] sm:$0xff] %v15519_v3  ;;  %v15522_v34 = vpop.permute.xlu0 %8417  ;;  %8607 = vrot.lane.b32.xlu1 %v12812_v23, %s13071_s25  ;;  %v12814_v3 = vpop.eup %12813 }
 0x368   : > { %v15515_v2 = vadd.f32 %v12240_v49, %v8000_v27  ;;  %v12038_v58 = vpop.f32.mrb[68].mxu0  ;;  %v11566_v45 = vpop.f32.mrb[68].mxu1  ;;  %8605 = vrot.lane.b32.xlu0 %v12814_v3, %s13071_s25 }
 0x369   : > { %v12244_v8 = vadd.f32 %v15341_v63, %v11566_v45  ;;  %v8010_v31 = vpop.f32.mrb[69].mxu0  ;;  %v4578_v11 = vpop.f32.mrb[69].mxu1  ;;  %12835 = vtanh.f32 %v15512_v46 }
 0x36a   : > { %v12248_v28 = vadd.f32 %v15344_v15, %v4578_v11  ;;  %12837 = vtanh.f32 %v15515_v2 }
 0x36b   : > { %v15524_v1 = vadd.f32 %v12244_v8, %v12038_v58  ;;  %v15536_v58 = vpop.permute.xlu1 %8423 }
 0x36c   : > { %v15527_v33 = vadd.f32 %v12248_v28, %v8010_v31  ;;  %v12041_v27 = vpop.f32.mrb[70].mxu0  ;;  %v11569_v49 = vpop.f32.mrb[70].mxu1 }
 0x36d   : > { %v12252_v63 = vadd.f32 %v15349_v10, %v11569_v49  ;;  %v8020_v56 = vpop.f32.mrb[71].mxu0  ;;  %v4588_v45 = vpop.f32.mrb[71].mxu1  ;;  %12839 = vtanh.f32 %v15524_v1 }
 0x36e   : > { %v12256_v15 = vadd.f32 %v15352_v16, %v4588_v45  ;;  %v12816_v31 = vpop.eup %12815  ;;  %v15540_v28 = vpop.permute.xlu0 %8421  ;;  %12841 = vtanh.f32 %v15527_v33 }
 0x36f   : > { %v15533_v11 = vadd.f32 %v12252_v63, %v12041_v27  ;;  %8611 = vrot.lane.b32.xlu1 %v12816_v31, %s13071_s25  ;;  %v12818_v10 = vpop.eup %12817  ;;  %v15546_v16 = vpop.permute.xlu1 %8427 }
 0x370   : > { %v15538_v8 = vadd.f32 %v12256_v15, %v8020_v56  ;;  %8609 = vrot.lane.b32.xlu0 %v12818_v10, %s13071_s25  ;;  %v12820_v3 = vpop.eup %12819 }
 0x371   : > { %v12822_v27 = vpop.eup %12821 }
 0x372   : > { %v15548_v23 = vpop.permute.xlu0 %8425  ;;  %v12824_v63 = vpop.eup %12823 }
 0x373   : > { %8615 = vrot.lane.b32.xlu1 %v12820_v3, %s13071_s25  ;;  %v15554_v49 = vpop.permute.xlu1 %8431  ;;  %v12826_v45 = vpop.eup %12825 }
 0x374   : > { %8613 = vrot.lane.b32.xlu0 %v12822_v27, %s13071_s25  ;;  %v12828_v31 = vpop.eup %12827 }
 0x375   : > { %v12830_v3 = vpop.eup %12829 }
 0x376   : > { %v15556_v56 = vpop.permute.xlu0 %8429 }
 0x377   : > { %16345 = vst [vmem:[#allocation2_spill] sm:$0xff] %v15556_v56  ;;  %8619 = vrot.lane.b32.xlu1 %v12824_v63, %s13071_s25  ;;  %v15562_v15 = vpop.permute.xlu1 %8435  ;;  %v12832_v63 = vpop.eup %12831 }
 0x378   : > { %8617 = vrot.lane.b32.xlu0 %v12826_v45, %s13071_s25  ;;  %16346 = vst [vmem:[#allocation3_spill] sm:$0xff] %v15562_v15  ;;  %v10250_v15 = vmul.f32 -1.442695, %v15356_v4 }
 0x37a   : > { %v15564_v10 = vpop.permute.xlu0 %8433  ;;  %12843 = vpow2.f32 %v10250_v15 }
 0x37b   : > { %16347 = vst [vmem:[#allocation4_spill] sm:$0xff] %v15564_v10  ;;  %8623 = vrot.lane.b32.xlu1 %v12828_v31, %s13071_s25  ;;  %v15570_v27 = vpop.permute.xlu1 %8439  ;;  %v12834_v10 = vpop.eup %12833  ;;  %v10249_v31 = vmul.f32 -1.442695, %v15358_v42  ;;  %v10254_v42 = vmul.f32 -1.442695, %v15372_v53 }
 0x37c   : > { %8621 = vrot.lane.b32.xlu0 %v12830_v3, %s13071_s25  ;;  %16348 = vst [vmem:[#allocation5_spill] sm:$0xff] %v15570_v27  ;;  %v10252_v3 = vmul.f32 -1.442695, %v15364_v55  ;;  %v12836_v27 = vpop.eup %12835  ;;  %v10253_v55 = vmul.f32 -1.442695, %v15376_v18 }
 0x37d   : > { %12845 = vpow2.f32 %v10249_v31  ;;  %v12838_v4 = vpop.eup %12837  ;;  %v10255_v53 = vmul.f32 -1.442695, %v15386_v12  ;;  %v10258_v12 = vmul.f32 -1.442695, %v15394_v30 }
 0x37e   : > { %v15572_v45 = vpop.permute.xlu0 %8437  ;;  %12847 = vtanh.f32 %v15533_v11 }
 0x37f   : > { %16349 = vst [vmem:[#allocation6_spill] sm:$0xff] %v15572_v45  ;;  %8627 = vrot.lane.b32.xlu1 %v12832_v63, %s13071_s25  ;;  %v15581_v56 = vpop.permute.xlu1 %8443  ;;  %v10251_v45 = vmul.f32 -1.442695, %v15366_v39  ;;  %12849 = vpow2.f32 %v10252_v3  ;;  %v12840_v39 = vpop.eup %12839 }
 0x380   : > { %8625 = vrot.lane.b32.xlu0 %v12834_v10, %s13071_s25  ;;  %16350 = vst [vmem:[#allocation7_spill] sm:$0xff] %v15581_v56  ;;  %v12842_v31 = vpop.eup %12841 }
 0x381   : > { %12851 = vpow2.f32 %v10251_v45 }
 0x382   : > { %v15584_v63 = vpop.permute.xlu0 %8441  ;;  %12853 = vtanh.f32 %v15538_v8 }
 0x383   : > { %16351 = vst [vmem:[#allocation8_spill] sm:$0xff] %v15584_v63  ;;  %8631 = vrot.lane.b32.xlu1 %v12836_v27, %s13071_s25  ;;  %v15592_v15 = vpop.permute.xlu1 %8447  ;;  %12855 = vpow2.f32 %v10254_v42  ;;  %v10256_v27 = vmul.f32 -1.442695, %v15382_v13 }
 0x384   : > { %8629 = vrot.lane.b32.xlu0 %v12838_v4, %s13071_s25  ;;  %16352 = vst [vmem:[#allocation9_spill] sm:$0xff] %v15592_v15  ;;  %12857 = vpow2.f32 %v10253_v55  ;;  %v12844_v45 = vpop.eup %12843 }
 0x385   : > { %12859 = vpow2.f32 %v10256_v27  ;;  %v8174_v63 = vadd.f32 1.0, %v12844_v45 }
 0x386   : > { %v15594_v10 = vpop.permute.xlu0 %8445  ;;  %12861 = vpow2.f32 %v10255_v53  ;;  %v10257_v53 = vmul.f32 -1.442695, %v15398_v5 }
 0x387   : > { %16353 = vst [vmem:[#allocation10_spill] sm:$0xff] %v15594_v10  ;;  %8635 = vrot.lane.b32.xlu1 %v12840_v39, %s13071_s25  ;;  %v12846_v18 = vpop.eup %12845  ;;  %v15600_v3 = vpop.permute.xlu1 %8451  ;;  %12863 = vrcp.f32 %v8174_v63  ;;  %v10260_v63 = vmul.f32 -1.442695, %v15404_v57 }
 0x388   : > { %8633 = vrot.lane.b32.xlu0 %v12842_v31, %s13071_s25  ;;  %16354 = vst [vmem:[#allocation11_spill] sm:$0xff] %v15600_v3  ;;  %v12848_v4 = vpop.eup %12847  ;;  %v8173_v42 = vadd.f32 1.0, %v12846_v18 }
 0x389   : > { %v12850_v10 = vpop.eup %12849 }
 0x38a   : > { %v15602_v15 = vpop.permute.xlu0 %8449  ;;  %v8176_v39 = vadd.f32 1.0, %v12850_v10  ;;  %12865 = vrcp.f32 %v8173_v42 }
 0x38b   : > { %16355 = vst [vmem:[#allocation12_spill] sm:$0xff] %v15602_v15  ;;  %8639 = vrot.lane.b32.xlu1 %v12848_v4, %s13071_s25  ;;  %v12852_v13 = vpop.eup %12851  ;;  %v15607_v31 = vpop.permute.xlu1 %8455  ;;  %12867 = vpow2.f32 %v10258_v12 }
 0x38c   : > { %v12854_v55 = vpop.eup %12853  ;;  %16356 = vst [vmem:[#allocation13_spill] sm:$0xff] %v15607_v31  ;;  %v8175_v27 = vadd.f32 1.0, %v12852_v13  ;;  %12869 = vrcp.f32 %v8176_v39  ;;  %v10259_v39 = vmul.f32 -1.442695, %v15408_v61 }
 0x38d   : > { %8637 = vrot.lane.b32.xlu0 %v12854_v55, %s13071_s25  ;;  %v12856_v3 = vpop.eup %12855 }
 0x38e   : > { %v15609_v15 = vpop.permute.xlu0 %8453  ;;  %v12858_v45 = vpop.eup %12857  ;;  %v8178_v18 = vadd.f32 1.0, %v12856_v3  ;;  %12871 = vrcp.f32 %v8175_v27 }
 0x38f   : > { %16357 = vst [vmem:[#allocation14_spill] sm:$0xff] %v15609_v15  ;;  %v12860_v4 = vpop.eup %12859  ;;  %v8177_v30 = vadd.f32 1.0, %v12858_v45  ;;  %v15613_v10 = vpop.permute.xlu1 %8459  ;;  %12873 = vpow2.f32 %v10257_v53 }
 0x390   : > { %v12862_v56 = vpop.eup %12861  ;;  %16358 = vst [vmem:[#allocation15_spill] sm:$0xff] %v15613_v10  ;;  %12875 = vrcp.f32 %v8178_v18  ;;  %v8180_v13 = vadd.f32 1.0, %v12860_v4  ;;  %v10262_v18 = vmul.f32 -1.442695, %v15415_v40 }
 0x391   : > { %12877 = vrcp.f32 %v8177_v30  ;;  %v8179_v42 = vadd.f32 1.0, %v12862_v56  ;;  %v15617_v12 = vpop.eup %12863 }
 0x392   : > { %v15615_v55 = vpop.permute.xlu0 %8457  ;;  %12879 = vpow2.f32 %v10260_v63 }
 0x393   : > { %16359 = vst [vmem:[#allocation16_spill] sm:$0xff] %v15615_v55  ;;  %12881 = vrcp.f32 %v8180_v13  ;;  %v10261_v13 = vmul.f32 -1.442695, %v15421_v52 }
 0x394   : > { %v15619_v3 = vpop.eup %12865  ;;  %12883 = vrcp.f32 %v8179_v42 }
 0x395   : > { %v12868_v53 = vpop.eup %12867  ;;  %12885 = vpow2.f32 %v10259_v39  ;;  %v10264_v39 = vmul.f32 -1.442695, %v15428_v60 }
 0x396   : > { %v15626_v56 = vpop.eup %12869  ;;  %12887 = vpow2.f32 %v10262_v18 }
 0x397   : > { %12889 = vpow2.f32 %v10261_v13 }
 0x398   : > { %v15629_v30 = vpop.eup %12871 }
 0x399   : > { %v12874_v42 = vpop.eup %12873 }
 0x39a   : > { %v15635_v40 = vpop.eup %12875 }
 0x3aa   : > { %v8572_v5 = vpop.permute.xlu1 %8571 }
 0x3ab   : > { %v8678_v27 = vmul.f32 %v15617_v12, %v8572_v5  ;;  %v8570_v57 = vpop.permute.xlu0 %8569 }
 0x3ac   : > { %v8677_v45 = vmul.f32 %v15619_v3, %v8570_v57  ;;  %v8182_v57 = vadd.f32 1.0, %v12868_v53  ;;  %v8181_v53 = vadd.f32 1.0, %v12874_v42 }
 0x3ad   : > { %8751 = vrot.lane.b32.xlu1 %v8678_v27, %s13071_s25 }
 0x3ae   : > { %v8576_v4 = vpop.permute.xlu1 %8575  ;;  %8749 = vrot.lane.b32.xlu0 %v8677_v45, %s13071_s25  ;;  %v15638_v45 = vpop.eup %12877  ;;  %12891 = vrcp.f32 %v8182_v57 }
 0x3af   : > { %v8680_v61 = vmul.f32 %v15626_v56, %v8576_v4  ;;  %v8574_v63 = vpop.permute.xlu0 %8573  ;;  %v12880_v52 = vpop.eup %12879  ;;  %12893 = vpow2.f32 %v10264_v39 }
 0x3b0   : > { %v8679_v5 = vmul.f32 %v15629_v30, %v8574_v63  ;;  %v15644_v18 = vpop.eup %12881  ;;  %v8184_v60 = vadd.f32 1.0, %v12880_v52  ;;  %12895 = vrcp.f32 %v8181_v53 }
 0x3b1   : > { %8755 = vrot.lane.b32.xlu1 %v8680_v61, %s13071_s25  ;;  %v10263_v61 = vmul.f32 -1.442695, %v15430_v6  ;;  %v15648_v10 = vpop.eup %12883 }
 0x3b2   : > { %v8580_v27 = vpop.permute.xlu1 %8579  ;;  %8753 = vrot.lane.b32.xlu0 %v8679_v5, %s13071_s25  ;;  %v12886_v57 = vpop.eup %12885 }
 0x3b3   : > { %v8682_v4 = vmul.f32 %v15635_v40, %v8580_v27  ;;  %v8578_v55 = vpop.permute.xlu0 %8577  ;;  %12897 = vpow2.f32 %v10263_v61  ;;  %v12888_v6 = vpop.eup %12887  ;;  %v8183_v52 = vadd.f32 1.0, %v12886_v57 }
 0x3b4   : > { %v8681_v63 = vmul.f32 %v15638_v45, %v8578_v55  ;;  %v10266_v55 = vmul.f32 -1.442695, %v15435_v24  ;;  %12899 = vrcp.f32 %v8184_v60  ;;  %v12890_v39 = vpop.eup %12889  ;;  %v10268_v24 = vmul.f32 -1.442695, %v15448_v0 }
 0x3b5   : > { %8759 = vrot.lane.b32.xlu1 %v8682_v4, %s13071_s25  ;;  %v10265_v4 = vmul.f32 -1.442695, %v15441_v7  ;;  %v10267_v60 = vmul.f32 -1.442695, %v15450_v32 }
 0x3b6   : > { %v8584_v5 = vpop.permute.xlu1 %8583  ;;  %8757 = vrot.lane.b32.xlu0 %v8681_v63, %s13071_s25  ;;  %12901 = vpow2.f32 %v10266_v55  ;;  %v8186_v63 = vadd.f32 1.0, %v12888_v6 }
 0x3b7   : > { %v8684_v27 = vmul.f32 %v15644_v18, %v8584_v5  ;;  %v8582_v13 = vpop.permute.xlu0 %8581  ;;  %12903 = vpow2.f32 %v10265_v4  ;;  %v10270_v4 = vmul.f32 -1.442695, %v15456_v36  ;;  %v10272_v36 = vmul.f32 -1.442695, %v15468_v62 }
 0x3b8   : > { %v8683_v42 = vmul.f32 %v15648_v10, %v8582_v13  ;;  %v15656_v5 = vpop.eup %12891  ;;  %12905 = vrcp.f32 %v8183_v52 }
 0x3b9   : > { %8763 = vrot.lane.b32.xlu1 %v8684_v27, %s13071_s25  ;;  %v12894_v61 = vpop.eup %12893  ;;  %v8185_v27 = vadd.f32 1.0, %v12890_v39  ;;  %12907 = vrcp.f32 %v8186_v63 }
 0x3ba   : > { %8761 = vrot.lane.b32.xlu0 %v8683_v42, %s13071_s25  ;;  %v15662_v7 = vpop.eup %12895  ;;  %12909 = vpow2.f32 %v10268_v24  ;;  %v8188_v57 = vadd.f32 1.0, %v12894_v61  ;;  %v10269_v24 = vmul.f32 -1.442695, %v15463_v21 }
 0x3bb   : > { %12911 = vrcp.f32 %v8185_v27 }
 0x3bc   : > { %12913 = vpow2.f32 %v10267_v60 }
 0x3bd   : > { %v8588_v13 = vpop.permute.xlu1 %8587  ;;  %v12898_v42 = vpop.eup %12897  ;;  %12915 = vrcp.f32 %v8188_v57 }
 0x3be   : > { %v8686_v53 = vmul.f32 %v15656_v5, %v8588_v13  ;;  %v8586_v55 = vpop.permute.xlu0 %8585  ;;  %v15665_v0 = vpop.eup %12899  ;;  %v8187_v32 = vadd.f32 1.0, %v12898_v42  ;;  %12917 = vpow2.f32 %v10270_v4  ;;  %v10271_v4 = vmul.f32 -1.442695, %v15472_v50 }
 0x3bf   : > { %v8685_v6 = vmul.f32 %v15662_v7, %v8586_v55 }
 0x3c0   : > { %8767 = vrot.lane.b32.xlu1 %v8686_v53, %s13071_s25  ;;  %v12902_v52 = vpop.eup %12901  ;;  %12919 = vrcp.f32 %v8187_v32 }
 0x3c1   : > { %v8592_v39 = vpop.permute.xlu1 %8591  ;;  %8765 = vrot.lane.b32.xlu0 %v8685_v6, %s13071_s25  ;;  %v12904_v13 = vpop.eup %12903  ;;  %v8190_v53 = vadd.f32 1.0, %v12902_v52  ;;  %12921 = vpow2.f32 %v10269_v24  ;;  %v10274_v24 = vmul.f32 -1.442695, %v15478_v29 }
 0x3c2   : > { %v8688_v63 = vmul.f32 %v15665_v0, %v8592_v39  ;;  %v15672_v61 = vpop.eup %12905  ;;  %v8590_v27 = vpop.permute.xlu0 %8589  ;;  %v8189_v42 = vadd.f32 1.0, %v12904_v13 }
 0x3c3   : > { %v8687_v60 = vmul.f32 %v15672_v61, %v8590_v27  ;;  %v15676_v55 = vpop.eup %12907  ;;  %12923 = vrcp.f32 %v8190_v53 }
 0x3c4   : > { %8771 = vrot.lane.b32.xlu1 %v8688_v63, %s13071_s25  ;;  %v12910_v6 = vpop.eup %12909  ;;  %12925 = vpow2.f32 %v10272_v36 }
 0x3c5   : > { %8769 = vrot.lane.b32.xlu0 %v8687_v60, %s13071_s25  ;;  %v15681_v52 = vpop.eup %12911  ;;  %12927 = vrcp.f32 %v8189_v42  ;;  %v8192_v32 = vadd.f32 1.0, %v12910_v6  ;;  %v10273_v60 = vmul.f32 -1.442695, %v15484_v54 }
 0x3c6   : > { %v8596_v57 = vpop.permute.xlu1 %8595  ;;  %v12914_v62 = vpop.eup %12913  ;;  %12929 = vpow2.f32 %v10271_v4 }
 0x3c7   : > { %v8690_v21 = vmul.f32 %v15676_v55, %v8596_v57  ;;  %v15686_v13 = vpop.eup %12915  ;;  %v8191_v27 = vadd.f32 1.0, %v12914_v62  ;;  %12931 = vrcp.f32 %v8192_v32 }
 0x3c8   : > { %v12918_v50 = vpop.eup %12917  ;;  %12933 = vpow2.f32 %v10274_v24 }
 0x3c9   : > { %v8594_v39 = vpop.permute.xlu0 %8593  ;;  %8775 = vrot.lane.b32.xlu1 %v8690_v21, %s13071_s25  ;;  %v8194_v6 = vadd.f32 1.0, %v12918_v50  ;;  %12935 = vrcp.f32 %v8191_v27 }
 0x3ca   : > { %v8689_v63 = vmul.f32 %v15681_v52, %v8594_v39  ;;  %v15691_v57 = vpop.eup %12919  ;;  %v10276_v39 = vmul.f32 -1.442695, %v15490_v22  ;;  %12937 = vpow2.f32 %v10273_v60  ;;  %v10278_v60 = vmul.f32 -1.442695, %v15503_v44 }
 0x3cb   : > { %v12922_v29 = vpop.eup %12921  ;;  %12939 = vrcp.f32 %v8194_v6 }
 0x3cc   : > { %8773 = vrot.lane.b32.xlu0 %v8689_v63, %s13071_s25  ;;  %v8193_v63 = vadd.f32 1.0, %v12922_v29  ;;  %12941 = vpow2.f32 %v10276_v39  ;;  %v10277_v39 = vmul.f32 -1.442695, %v15506_v38 }
 0x3cd   : > { %v8600_v53 = vpop.permute.xlu1 %8599  ;;  %v15695_v4 = vpop.eup %12923 }
 0x3ce   : > { %v8692_v36 = vmul.f32 %v15686_v13, %v8600_v53  ;;  %v12926_v54 = vpop.eup %12925  ;;  %v10275_v53 = vmul.f32 -1.442695, %v15493_v9  ;;  %12943 = vrcp.f32 %v8193_v63 }
 0x3cf   : > { %v15700_v24 = vpop.eup %12927 }
 0x3d0   : > { %8779 = vrot.lane.b32.xlu1 %v8692_v36, %s13071_s25  ;;  %v12930_v22 = vpop.eup %12929  ;;  %v8196_v36 = vadd.f32 1.0, %v12926_v54  ;;  %12945 = vpow2.f32 %v10275_v53  ;;  %v10280_v53 = vmul.f32 -1.442695, %v15512_v46 }
 0x3d1   : > { %v8598_v42 = vpop.permute.xlu0 %8597 }
 0x3d2   : > { %v8691_v21 = vmul.f32 %v15691_v57, %v8598_v42  ;;  %v8604_v62 = vpop.permute.xlu1 %8603  ;;  %v15707_v42 = vpop.eup %12931  ;;  %12947 = vrcp.f32 %v8196_v36 }
 0x3d3   : > { %v8694_v32 = vmul.f32 %v15695_v4, %v8604_v62  ;;  %v12934_v6 = vpop.eup %12933  ;;  %12949 = vpow2.f32 %v10278_v60  ;;  %v10279_v60 = vmul.f32 -1.442695, %v15515_v2 }
 0x3d4   : > { %8777 = vrot.lane.b32.xlu0 %v8691_v21, %s13071_s25  ;;  %v8195_v21 = vadd.f32 1.0, %v12930_v22  ;;  %v15711_v62 = vpop.eup %12935  ;;  %v8198_v54 = vadd.f32 1.0, %v12934_v6 }
 0x3d5   : > { %v8602_v50 = vpop.permute.xlu0 %8601  ;;  %8783 = vrot.lane.b32.xlu1 %v8694_v32, %s13071_s25  ;;  %v12938_v44 = vpop.eup %12937 }
 0x3d6   : > { %v8693_v27 = vmul.f32 %v15700_v24, %v8602_v50  ;;  %12951 = vrcp.f32 %v8195_v21  ;;  %v15716_v50 = vpop.eup %12939  ;;  %v8197_v22 = vadd.f32 1.0, %v12938_v44 }
 0x3d7   : > { %12953 = vpow2.f32 %v10277_v39  ;;  %v12942_v38 = vpop.eup %12941  ;;  %v10282_v39 = vmul.f32 -1.442695, %v15524_v1 }
 0x3d8   : > { %8781 = vrot.lane.b32.xlu0 %v8693_v27, %s13071_s25  ;;  %12955 = vrcp.f32 %v8198_v54  ;;  %v8200_v21 = vadd.f32 1.0, %v12942_v38 }
 0x3d9   : > { %v8608_v29 = vpop.permute.xlu1 %8607  ;;  %12957 = vpow2.f32 %v10280_v53  ;;  %v10281_v53 = vmul.f32 -1.442695, %v15527_v33 }
 0x3da   : > { %v8696_v9 = vmul.f32 %v15707_v42, %v8608_v29  ;;  %v8606_v32 = vpop.permute.xlu0 %8605  ;;  %v15721_v29 = vpop.eup %12943  ;;  %12959 = vrcp.f32 %v8197_v22 }
 0x3db   : > { %v8695_v63 = vmul.f32 %v15711_v62, %v8606_v32  ;;  %v12946_v46 = vpop.eup %12945  ;;  %12961 = vpow2.f32 %v10279_v60  ;;  %v10284_v60 = vmul.f32 -1.442695, %v15533_v11 }
 0x3dc   : > { %8787 = vrot.lane.b32.xlu1 %v8696_v9, %s13071_s25  ;;  %v15726_v32 = vpop.eup %12947  ;;  %v8199_v54 = vadd.f32 1.0, %v12946_v46  ;;  %12963 = vrcp.f32 %v8200_v21 }
 0x3dd   : > { %8785 = vrot.lane.b32.xlu0 %v8695_v63, %s13071_s25  ;;  %v12950_v2 = vpop.eup %12949  ;;  %12965 = vpow2.f32 %v10282_v39  ;;  %v10283_v39 = vmul.f32 -1.442695, %v15538_v8 }
 0x3de   : > { %v8202_v22 = vadd.f32 1.0, %v12950_v2  ;;  %12967 = vrcp.f32 %v8199_v54 }
 0x3df   : > { %12969 = vpow2.f32 %v10281_v53 }
 0x3e0   : > { %12971 = vrcp.f32 %v8202_v22 }
 0x3e1   : > { %v8612_v27 = vpop.permute.xlu1 %8611  ;;  %12973 = vpow2.f32 %v10284_v60 }
 0x3e2   : > { %v8698_v36 = vmul.f32 %v15716_v50, %v8612_v27  ;;  %v8610_v6 = vpop.permute.xlu0 %8609  ;;  %v15731_v27 = vpop.eup %12951 }
 0x3e3   : > { %v8697_v9 = vmul.f32 %v15721_v29, %v8610_v6  ;;  %v12954_v1 = vpop.eup %12953 }
 0x3e4   : > { %8791 = vrot.lane.b32.xlu1 %v8698_v36, %s13071_s25  ;;  %v15736_v6 = vpop.eup %12955  ;;  %v8201_v21 = vadd.f32 1.0, %v12954_v1 }
 0x3e5   : > { %v8616_v44 = vpop.permute.xlu1 %8615  ;;  %8789 = vrot.lane.b32.xlu0 %v8697_v9, %s13071_s25  ;;  %v12958_v33 = vpop.eup %12957 }
 0x3e6   : > { %v8700_v63 = vmul.f32 %v15726_v32, %v8616_v44  ;;  %v8614_v38 = vpop.permute.xlu0 %8613  ;;  %v15741_v44 = vpop.eup %12959  ;;  %v8204_v54 = vadd.f32 1.0, %v12958_v33  ;;  %12975 = vrcp.f32 %v8201_v21 }
 0x3e7   : > { %v8699_v36 = vmul.f32 %v15731_v27, %v8614_v38  ;;  %v12962_v11 = vpop.eup %12961  ;;  %12977 = vpow2.f32 %v10283_v39 }
 0x3e8   : > { %8795 = vrot.lane.b32.xlu1 %v8700_v63, %s13071_s25  ;;  %v15745_v53 = vpop.eup %12963  ;;  %v8203_v22 = vadd.f32 1.0, %v12962_v11  ;;  %12979 = vrcp.f32 %v8204_v54 }
 0x3e9   : > { %v8620_v46 = vpop.permute.xlu1 %8619  ;;  %8793 = vrot.lane.b32.xlu0 %v8699_v36, %s13071_s25  ;;  %v12966_v1 = vpop.eup %12965 }
 0x3ea   : > { %v8702_v9 = vmul.f32 %v15736_v6, %v8620_v46  ;;  %v8618_v2 = vpop.permute.xlu0 %8617  ;;  %v15749_v36 = vpop.eup %12967  ;;  %v8206_v33 = vadd.f32 1.0, %v12966_v1  ;;  %12981 = vrcp.f32 %v8203_v22 }
 0x3eb   : > { %v8701_v63 = vmul.f32 %v15741_v44, %v8618_v2  ;;  %v12970_v46 = vpop.eup %12969 }
 0x3ec   : > { %8799 = vrot.lane.b32.xlu1 %v8702_v9, %s13071_s25  ;;  %v15753_v9 = vpop.eup %12971  ;;  %v8205_v11 = vadd.f32 1.0, %v12970_v46  ;;  %12983 = vrcp.f32 %v8206_v33 }
 0x3ed   : > { %v8624_v38 = vpop.permute.xlu1 %8623  ;;  %8797 = vrot.lane.b32.xlu0 %v8701_v63, %s13071_s25  ;;  %v12974_v2 = vpop.eup %12973 }
 0x3ee   : > { %v8704_v8 = vmul.f32 %v15745_v53, %v8624_v38  ;;  %v8622_v60 = vpop.permute.xlu0 %8621  ;;  %v8208_v1 = vadd.f32 1.0, %v12974_v2  ;;  %12985 = vrcp.f32 %v8205_v11 }
 0x3ef   : > { %v8703_v21 = vmul.f32 %v15749_v36, %v8622_v60 }
 0x3f0   : > { %8803 = vrot.lane.b32.xlu1 %v8704_v8, %s13071_s25  ;;  %v15757_v54 = vpop.eup %12975  ;;  %12987 = vrcp.f32 %v8208_v1 }
 0x3f1   : > { %v8628_v39 = vpop.permute.xlu1 %8627  ;;  %8801 = vrot.lane.b32.xlu0 %v8703_v21, %s13071_s25  ;;  %v12978_v8 = vpop.eup %12977 }
 0x3f2   : > { %v8706_v63 = vmul.f32 %v15753_v9, %v8628_v39  ;;  %v8626_v38 = vpop.permute.xlu0 %8625  ;;  %v15761_v22 = vpop.eup %12979  ;;  %v8207_v21 = vadd.f32 1.0, %v12978_v8 }
 0x3f3   : > { %v8705_v60 = vmul.f32 %v15757_v54, %v8626_v38 }
 0x3f4   : > { %8807 = vrot.lane.b32.xlu1 %v8706_v63, %s13071_s25  ;;  %v15765_v33 = vpop.eup %12981  ;;  %12989 = vrcp.f32 %v8207_v21 }
 0x3f5   : > { %v8632_v15 = vpop.permute.xlu1 %8631  ;;  %8805 = vrot.lane.b32.xlu0 %v8705_v60, %s13071_s25 }
 0x3f6   : > { %v8708_v46 = vmul.f32 %v15761_v22, %v8632_v15  ;;  %v8630_v39 = vpop.permute.xlu0 %8629  ;;  %v15769_v2 = vpop.eup %12983 }
 0x3f7   : > { %v8707_v63 = vmul.f32 %v15765_v33, %v8630_v39  ;;  %16360 = vst [vmem:[#allocation17_spill] sm:$0xff] %v15769_v2 }
 0x3f8   : > { %8811 = vrot.lane.b32.xlu1 %v8708_v46, %s13071_s25  ;;  %v15773_v60 = vpop.eup %12985 }
 0x3f9   : > { %v8636_v11 = vpop.permute.xlu1 %8635  ;;  %8809 = vrot.lane.b32.xlu0 %v8707_v63, %s13071_s25  ;;  %16361 = vst [vmem:[#allocation19_spill] sm:$0xff] %v15773_v60 }
 0x3fa   : > { %v8710_v38 = vmul.f32 %v15769_v2, %v8636_v11  ;;  %v8634_v8 = vpop.permute.xlu0 %8633  ;;  %v15777_v1 = vpop.eup %12987  ;;  %v8498_v11 = vmul.f32 %v15617_v12, %v15406_v20 }
 0x3fb   : > { %v8709_v15 = vmul.f32 %v15773_v60, %v8634_v8 }
 0x3fc   : > { %8815 = vrot.lane.b32.xlu1 %v8710_v38, %s13071_s25  ;;  %v8497_v38 = vmul.f32 %v15619_v3, %v15384_v14 }
 0x3fd   : > { %v8640_v46 = vpop.permute.xlu1 %8639  ;;  %8813 = vrot.lane.b32.xlu0 %v8709_v15, %s13071_s25 }
 0x3fe   : > { %v8712_v21 = vmul.f32 %v15777_v1, %v8640_v46  ;;  %v15781_v39 = vpop.eup %12989  ;;  %v8500_v46 = vmul.f32 %v15626_v56, %v15396_v35  ;;  %v8501_v35 = vmul.f32 %v15638_v45, %v15419_v37  ;;  %v8503_v37 = vmul.f32 %v15648_v10, %v15439_v43 }
 0x3ff   : > { %v8638_v31 = vpop.permute.xlu0 %8637  ;;  %v8505_v43 = vmul.f32 %v15662_v7, %v15460_v51  ;;  %v8507_v51 = vmul.f32 %v15672_v61, %v15482_v17  ;;  %v8509_v17 = vmul.f32 %v15681_v52, %v15501_v25  ;;  %v8511_v25 = vmul.f32 %v15691_v57, %v15522_v34 }
 0x400   : > { %8819 = vrot.lane.b32.xlu1 %v8712_v21, %s13071_s25  ;;  %v8711_v63 = vmul.f32 %v15781_v39, %v8638_v31  ;;  %v8499_v31 = vmul.f32 %v15629_v30, %v15374_v47  ;;  %v8513_v34 = vmul.f32 %v15700_v24, %v15540_v28  ;;  %v8515_v28 = vmul.f32 %v15711_v62, %v15548_v23  ;;  %v16363_v23 = vld [vmem:[#allocation2_spill] sm:$0xff] }
 0x402   : > { %8817 = vrot.lane.b32.xlu0 %v8711_v63, %s13071_s25 }
 0x41f   : > { %v8752_v8 = vpop.permute.xlu1 %8751 }
 0x420   : > { %v8858_v60 = vadd.f32 %v8752_v8, %v8498_v11  ;;  %v8750_v15 = vpop.permute.xlu0 %8749  ;;  %v8502_v11 = vmul.f32 %v15635_v40, %v15417_v26 }
 0x421   : > { %v8857_v2 = vadd.f32 %v8750_v15, %v8497_v38 }
 0x422   : > { %12991 = vtanh.f32 %v8858_v60  ;;  %9147 = vrot.lane.b32.xlu1 %v8858_v60, %s13072_s8 }
 0x423   : > { %12993 = vtanh.f32 %v8857_v2  ;;  %v8756_v21 = vpop.permute.xlu1 %8755  ;;  %9145 = vrot.lane.b32.xlu0 %v8857_v2, %s13072_s8 }
 0x424   : > { %v8860_v20 = vadd.f32 %v8756_v21, %v8500_v46  ;;  %v8754_v14 = vpop.permute.xlu0 %8753  ;;  %v8504_v46 = vmul.f32 %v15644_v18, %v15437_v41  ;;  %v8506_v41 = vmul.f32 %v15656_v5, %v15458_v59  ;;  %v8508_v59 = vmul.f32 %v15665_v0, %v15480_v19 }
 0x425   : > { %v8859_v63 = vadd.f32 %v8754_v14, %v8499_v31  ;;  %v8510_v19 = vmul.f32 %v15676_v55, %v15499_v48  ;;  %v16362_v48 = vld [vmem:[#allocation18_spill] sm:$0xff] }
 0x426   : > { %9151 = vrot.lane.b32.xlu1 %v8860_v20, %s13072_s8  ;;  %12995 = vtanh.f32 %v8860_v20 }
 0x427   : > { %v8760_v38 = vpop.permute.xlu1 %8759  ;;  %9149 = vrot.lane.b32.xlu0 %v8859_v63, %s13072_s8  ;;  %12997 = vtanh.f32 %v8859_v63 }
 0x428   : > { %v8862_v60 = vadd.f32 %v8760_v38, %v8502_v11  ;;  %v8758_v47 = vpop.permute.xlu0 %8757 }
 0x429   : > { %v8861_v8 = vadd.f32 %v8758_v47, %v8501_v35 }
 0x42a   : > { %9155 = vrot.lane.b32.xlu1 %v8862_v60, %s13072_s8  ;;  %12999 = vtanh.f32 %v8862_v60 }
 0x42b   : > { %9153 = vrot.lane.b32.xlu0 %v8861_v8, %s13072_s8  ;;  %v8764_v26 = vpop.permute.xlu1 %8763  ;;  %13001 = vtanh.f32 %v8861_v8 }
 0x42c   : > { %v12992_v2 = vpop.eup %12991  ;;  %v8762_v31 = vpop.permute.xlu0 %8761  ;;  %v8864_v21 = vadd.f32 %v8764_v26, %v8504_v46 }
 0x42d   : > { %v12994_v15 = vpop.eup %12993  ;;  %v8863_v14 = vadd.f32 %v8762_v31, %v8503_v37 }
 0x42e   : > { %8967 = vrot.lane.b32.xlu1 %v12992_v2, %s13071_s25  ;;  %13003 = vtanh.f32 %v8864_v21 }
 0x42f   : > { %8965 = vrot.lane.b32.xlu0 %v12994_v15, %s13071_s25  ;;  %13005 = vtanh.f32 %v8863_v14 }
 0x430   : > { %v12996_v20 = vpop.eup %12995 }
 0x431   : > { %v12998_v11 = vpop.eup %12997 }
 0x432   : > { %9159 = vrot.lane.b32.xlu1 %v8864_v21, %s13072_s8  ;;  %v8768_v63 = vpop.permute.xlu1 %8767 }
 0x433   : > { %9157 = vrot.lane.b32.xlu0 %v8863_v14, %s13072_s8  ;;  %v8866_v35 = vadd.f32 %v8768_v63, %v8506_v41  ;;  %v8766_v38 = vpop.permute.xlu0 %8765 }
 0x434   : > { %v8865_v47 = vadd.f32 %v8766_v38, %v8505_v43  ;;  %v13000_v60 = vpop.eup %12999 }
 0x435   : > { %v13002_v2 = vpop.eup %13001  ;;  %13007 = vtanh.f32 %v8866_v35 }
 0x436   : > { %8971 = vrot.lane.b32.xlu1 %v12996_v20, %s13071_s25  ;;  %v8772_v8 = vpop.permute.xlu1 %8771  ;;  %13009 = vtanh.f32 %v8865_v47 }
 0x437   : > { %8969 = vrot.lane.b32.xlu0 %v12998_v11, %s13071_s25  ;;  %v8770_v15 = vpop.permute.xlu0 %8769  ;;  %v8868_v26 = vadd.f32 %v8772_v8, %v8508_v59 }
 0x438   : > { %v8867_v46 = vadd.f32 %v8770_v15, %v8507_v51  ;;  %v13004_v31 = vpop.eup %13003  ;;  %v8514_v51 = vmul.f32 %v15695_v4, %v15536_v58  ;;  %v8516_v58 = vmul.f32 %v15707_v42, %v15546_v16  ;;  %v8518_v16 = vmul.f32 %v15716_v50, %v15554_v49 }
 0x439   : > { %v13006_v21 = vpop.eup %13005  ;;  %13011 = vtanh.f32 %v8868_v26 }
 0x43a   : > { %9163 = vrot.lane.b32.xlu1 %v8866_v35, %s13072_s8  ;;  %13013 = vtanh.f32 %v8867_v46  ;;  %v8512_v35 = vmul.f32 %v15686_v13, %v16362_v48 }
 0x43b   : > { %9161 = vrot.lane.b32.xlu0 %v8865_v47, %s13072_s8  ;;  %v8776_v37 = vpop.permute.xlu1 %8775 }
 0x43c   : > { %v8870_v20 = vadd.f32 %v8776_v37, %v8510_v19 }
 0x43e   : > { %8975 = vrot.lane.b32.xlu1 %v13000_v60, %s13071_s25  ;;  %v8774_v14 = vpop.permute.xlu0 %8773  ;;  %13015 = vtanh.f32 %v8870_v20 }
 0x43f   : > { %8973 = vrot.lane.b32.xlu0 %v13002_v2, %s13071_s25  ;;  %v8869_v63 = vadd.f32 %v8774_v14, %v8509_v17  ;;  %v13008_v11 = vpop.eup %13007 }
 0x440   : > { %v13010_v43 = vpop.eup %13009 }
 0x441   : > { %13017 = vtanh.f32 %v8869_v63 }
 0x442   : > { %9167 = vrot.lane.b32.xlu1 %v8868_v26, %s13072_s8  ;;  %v8780_v41 = vpop.permute.xlu1 %8779 }
 0x443   : > { %9165 = vrot.lane.b32.xlu0 %v8867_v46, %s13072_s8  ;;  %v8872_v47 = vadd.f32 %v8780_v41, %v8512_v35  ;;  %v13012_v8 = vpop.eup %13011 }
 0x444   : > { %v13014_v59 = vpop.eup %13013 }
 0x445   : > { %13019 = vtanh.f32 %v8872_v47 }
 0x446   : > { %8979 = vrot.lane.b32.xlu1 %v13004_v31, %s13071_s25  ;;  %v8778_v38 = vpop.permute.xlu0 %8777 }
 0x447   : > { %8977 = vrot.lane.b32.xlu0 %v13006_v21, %s13071_s25  ;;  %v8871_v60 = vadd.f32 %v8778_v38, %v8511_v25  ;;  %v8784_v2 = vpop.permute.xlu1 %8783 }
 0x448   : > { %v8874_v26 = vadd.f32 %v8784_v2, %v8514_v51  ;;  %v13016_v31 = vpop.eup %13015  ;;  %v16365_v2 = vld [vmem:[#allocation4_spill] sm:$0xff] }
 0x449   : > { %13021 = vtanh.f32 %v8871_v60 }
 0x44a   : > { %9171 = vrot.lane.b32.xlu1 %v8870_v20, %s13072_s8  ;;  %v8782_v15 = vpop.permute.xlu0 %8781  ;;  %13023 = vtanh.f32 %v8874_v26 }
 0x44b   : > { %9169 = vrot.lane.b32.xlu0 %v8869_v63, %s13072_s8  ;;  %v8873_v46 = vadd.f32 %v8782_v15, %v8513_v34  ;;  %v13018_v21 = vpop.eup %13017 }
 0x44d   : > { %13025 = vtanh.f32 %v8873_v46 }
 0x44e   : > { %8983 = vrot.lane.b32.xlu1 %v13008_v11, %s13071_s25  ;;  %v8788_v37 = vpop.permute.xlu1 %8787 }
 0x44f   : > { %8981 = vrot.lane.b32.xlu0 %v13010_v43, %s13071_s25  ;;  %v8786_v19 = vpop.permute.xlu0 %8785  ;;  %v8876_v14 = vadd.f32 %v8788_v37, %v8516_v58  ;;  %v13020_v20 = vpop.eup %13019  ;;  %v8517_v43 = vmul.f32 %v15721_v29, %v16363_v23  ;;  %v16366_v37 = vld [vmem:[#allocation5_spill] sm:$0xff]  ;;  %v16367_v58 = vld [vmem:[#allocation6_spill] sm:$0xff] }
 0x450   : > { %v8875_v17 = vadd.f32 %v8786_v19, %v8515_v28  ;;  %v8521_v19 = vmul.f32 %v15741_v44, %v16367_v58  ;;  %v16372_v58 = vld [vmem:[#allocation11_spill] sm:$0xff] }
 0x451   : > { %13027 = vtanh.f32 %v8876_v14 }
 0x452   : > { %9175 = vrot.lane.b32.xlu1 %v8872_v47, %s13072_s8  ;;  %13029 = vtanh.f32 %v8875_v17 }
 0x453   : > { %9173 = vrot.lane.b32.xlu0 %v8871_v60, %s13072_s8  ;;  %v13022_v11 = vpop.eup %13021  ;;  %v16364_v60 = vld [vmem:[#allocation3_spill] sm:$0xff] }
 0x454   : > { %v13024_v25 = vpop.eup %13023 }
 0x456   : > { %8987 = vrot.lane.b32.xlu1 %v13012_v8, %s13071_s25  ;;  %v8792_v63 = vpop.permute.xlu1 %8791  ;;  %v8520_v8 = vmul.f32 %v15726_v32, %v16364_v60 }
 0x457   : > { %8985 = vrot.lane.b32.xlu0 %v13014_v59, %s13071_s25  ;;  %v8790_v41 = vpop.permute.xlu0 %8789  ;;  %v8878_v48 = vadd.f32 %v8792_v63, %v8518_v16  ;;  %v13026_v49 = vpop.eup %13025  ;;  %v8519_v59 = vmul.f32 %v15731_v27, %v16365_v2  ;;  %v16368_v16 = vld [vmem:[#allocation7_spill] sm:$0xff]  ;;  %v16370_v2 = vld [vmem:[#allocation9_spill] sm:$0xff] }
 0x458   : > { %v8877_v35 = vadd.f32 %v8790_v41, %v8517_v43  ;;  %v8524_v41 = vmul.f32 %v15745_v53, %v16368_v16  ;;  %v16369_v43 = vld [vmem:[#allocation8_spill] sm:$0xff] }
 0x459   : > { %13031 = vtanh.f32 %v8878_v48 }
 0x45a   : > { %9179 = vrot.lane.b32.xlu1 %v8874_v26, %s13072_s8  ;;  %v8796_v38 = vpop.permute.xlu1 %8795  ;;  %13033 = vtanh.f32 %v8877_v35 }
 0x45b   : > { %9177 = vrot.lane.b32.xlu0 %v8873_v46, %s13072_s8  ;;  %v8794_v47 = vpop.permute.xlu0 %8793  ;;  %v8880_v51 = vadd.f32 %v8796_v38, %v8520_v8  ;;  %v13028_v46 = vpop.eup %13027 }
 0x45c   : > { %v8879_v15 = vadd.f32 %v8794_v47, %v8519_v59  ;;  %v8526_v59 = vmul.f32 %v15753_v9, %v16370_v2 }
 0x45d   : > { %13035 = vtanh.f32 %v8880_v51 }
 0x45e   : > { %8991 = vrot.lane.b32.xlu1 %v13016_v31, %s13071_s25  ;;  %v8800_v34 = vpop.permute.xlu1 %8799  ;;  %v13030_v31 = vpop.eup %13029  ;;  %13037 = vtanh.f32 %v8879_v15 }
 0x45f   : > { %8989 = vrot.lane.b32.xlu0 %v13018_v21, %s13071_s25  ;;  %v8798_v26 = vpop.permute.xlu0 %8797  ;;  %v8522_v21 = vmul.f32 %v15736_v6, %v16366_v37 }
 0x461   : > { %v8882_v28 = vadd.f32 %v8800_v34, %v8522_v21 }
 0x462   : > { %9183 = vrot.lane.b32.xlu1 %v8876_v14, %s13072_s8  ;;  %v8804_v14 = vpop.permute.xlu1 %8803 }
 0x463   : > { %9181 = vrot.lane.b32.xlu0 %v8875_v17, %s13072_s8  ;;  %v8881_v17 = vadd.f32 %v8798_v26, %v8521_v19  ;;  %v13032_v63 = vpop.eup %13031  ;;  %v8884_v38 = vadd.f32 %v8804_v14, %v8524_v41  ;;  %13039 = vtanh.f32 %v8882_v28  ;;  %v8528_v19 = vmul.f32 %v15761_v22, %v16372_v58 }
 0x465   : > { %13041 = vtanh.f32 %v8881_v17 }
 0x466   : > { %8995 = vrot.lane.b32.xlu1 %v13020_v20, %s13071_s25  ;;  %v8802_v20 = vpop.permute.xlu0 %8801  ;;  %v8808_v23 = vpop.permute.xlu1 %8807  ;;  %13043 = vtanh.f32 %v8884_v38 }
 0x467   : > { %8993 = vrot.lane.b32.xlu0 %v13022_v11, %s13071_s25  ;;  %v13034_v11 = vpop.eup %13033  ;;  %v8886_v34 = vadd.f32 %v8808_v23, %v8526_v59 }
 0x46a   : > { %9187 = vrot.lane.b32.xlu1 %v8878_v48, %s13072_s8  ;;  %v8523_v48 = vmul.f32 %v15749_v36, %v16369_v43  ;;  %v8812_v47 = vpop.permute.xlu1 %8811 }
 0x46b   : > { %9185 = vrot.lane.b32.xlu0 %v8877_v35, %s13072_s8  ;;  %v8806_v35 = vpop.permute.xlu0 %8805 }
 0x46e   : > { %8999 = vrot.lane.b32.xlu1 %v13024_v25, %s13071_s25  ;;  %v8883_v25 = vadd.f32 %v8802_v20, %v8523_v48  ;;  %v16374_v48 = vld [vmem:[#allocation13_spill] sm:$0xff] }
 0x46f   : > { %8997 = vrot.lane.b32.xlu0 %v13026_v49, %s13071_s25  ;;  %v13036_v49 = vpop.eup %13035  ;;  %v8810_v60 = vpop.permute.xlu0 %8809 }
 0x470   : > { %v13038_v8 = vpop.eup %13037  ;;  %13045 = vtanh.f32 %v8883_v25 }
 0x471   : > { %v13040_v37 = vpop.eup %13039  ;;  %13047 = vtanh.f32 %v8886_v34 }
 0x472   : > { %9191 = vrot.lane.b32.xlu1 %v8880_v51, %s13072_s8  ;;  %v16371_v51 = vld [vmem:[#allocation10_spill] sm:$0xff]  ;;  %v13042_v21 = vpop.eup %13041 }
 0x473   : > { %9189 = vrot.lane.b32.xlu0 %v8879_v15, %s13072_s8  ;;  %v8525_v15 = vmul.f32 %v15757_v54, %v16371_v51  ;;  %v13044_v41 = vpop.eup %13043 }
 0x475   : > { %v8885_v26 = vadd.f32 %v8806_v35, %v8525_v15  ;;  %v16375_v35 = vld [vmem:[#allocation17_spill] sm:$0xff] }
 0x476   : > { %9003 = vrot.lane.b32.xlu1 %v13028_v46, %s13071_s25  ;;  %v8816_v46 = vpop.permute.xlu1 %8815 }
 0x477   : > { %9001 = vrot.lane.b32.xlu0 %v13030_v31, %s13071_s25  ;;  %v8814_v31 = vpop.permute.xlu0 %8813  ;;  %13049 = vtanh.f32 %v8885_v26 }
 0x47a   : > { %9195 = vrot.lane.b32.xlu1 %v8882_v28, %s13072_s8  ;;  %v16373_v28 = vld [vmem:[#allocation12_spill] sm:$0xff]  ;;  %v8820_v20 = vpop.permute.xlu1 %8819  ;;  %v13046_v43 = vpop.eup %13045 }
 0x47b   : > { %9193 = vrot.lane.b32.xlu0 %v8881_v17, %s13072_s8  ;;  %v8527_v14 = vmul.f32 %v15765_v33, %v16373_v28  ;;  %v8888_v17 = vadd.f32 %v8812_v47, %v8528_v19  ;;  %v16377_v47 = vld [vmem:[#allocation19_spill] sm:$0xff]  ;;  %v13048_v15 = vpop.eup %13047 }
 0x47d   : > { %13051 = vtanh.f32 %v8888_v17 }
 0x47e   : > { %9007 = vrot.lane.b32.xlu1 %v13032_v63, %s13071_s25  ;;  %v8887_v63 = vadd.f32 %v8810_v60, %v8527_v14 }
 0x47f   : > { %9005 = vrot.lane.b32.xlu0 %v13034_v11, %s13071_s25  ;;  %v8818_v11 = vpop.permute.xlu0 %8817 }
 0x480   : > { %13053 = vtanh.f32 %v8887_v63 }
 0x482   : > { %9199 = vrot.lane.b32.xlu1 %v8884_v38, %s13072_s8  ;;  %v8530_v38 = vmul.f32 %v16375_v35, %v16374_v48 }
 0x483   : > { %9197 = vrot.lane.b32.xlu0 %v8883_v25, %s13072_s8  ;;  %v16376_v25 = vld [vmem:[#allocation14_spill] sm:$0xff] }
 0x484   : > { %v8890_v60 = vadd.f32 %v8816_v46, %v8530_v38 }
 0x486   : > { %9011 = vrot.lane.b32.xlu1 %v13036_v49, %s13071_s25  ;;  %v8529_v49 = vmul.f32 %v16377_v47, %v16376_v25  ;;  %13055 = vtanh.f32 %v8890_v60 }
 0x487   : > { %9009 = vrot.lane.b32.xlu0 %v13038_v8, %s13071_s25 }
 0x488   : > { %v8889_v2 = vadd.f32 %v8814_v31, %v8529_v49  ;;  %v13050_v31 = vpop.eup %13049 }
 0x48a   : > { %9203 = vrot.lane.b32.xlu1 %v8886_v34, %s13072_s8  ;;  %v16378_v34 = vld [vmem:[#allocation15_spill] sm:$0xff]  ;;  %13057 = vtanh.f32 %v8889_v2 }
 0x48b   : > { %9201 = vrot.lane.b32.xlu0 %v8885_v26, %s13072_s8  ;;  %v8532_v26 = vmul.f32 %v15777_v1, %v16378_v34 }
 0x48d   : > { %v8892_v58 = vadd.f32 %v8820_v20, %v8532_v26 }
 0x48e   : > { %9015 = vrot.lane.b32.xlu1 %v13040_v37, %s13071_s25  ;;  %v16379_v37 = vld [vmem:[#allocation16_spill] sm:$0xff] }
 0x48f   : > { %9013 = vrot.lane.b32.xlu0 %v13042_v21, %s13071_s25  ;;  %v8531_v21 = vmul.f32 %v15781_v39, %v16379_v37  ;;  %13059 = vtanh.f32 %v8892_v58 }
 0x491   : > { %v8891_v19 = vadd.f32 %v8818_v11, %v8531_v21 }
 0x492   : > { %9207 = vrot.lane.b32.xlu1 %v8888_v17, %s13072_s8 }
 0x493   : > { %9205 = vrot.lane.b32.xlu0 %v8887_v63, %s13072_s8  ;;  %13061 = vtanh.f32 %v8891_v19  ;;  %v13052_v63 = vpop.eup %13051 }
 0x494   : > { %v9148_v16 = vpop.permute.xlu1 %9147  ;;  %v13054_v20 = vpop.eup %13053 }
 0x495   : > { %9254 = vst.msk [vmem:[%s15911_s10 + $0x8] sm:$0xff] %vm811_vm2, %v9148_v16  ;;  %v9146_v23 = vpop.permute.xlu0 %9145 }
 0x496   : > { %9253 = vst.msk [vmem:[%s15911_s10] sm:$0xff] %vm811_vm2, %v9146_v23  ;;  %9019 = vrot.lane.b32.xlu1 %v13044_v41, %s13071_s25  ;;  %v13056_v41 = vpop.eup %13055 }
 0x497   : > { %9017 = vrot.lane.b32.xlu0 %v13046_v43, %s13071_s25  ;;  %v13058_v43 = vpop.eup %13057 }
 0x498   : > { %v9152_v8 = vpop.permute.xlu1 %9151 }
 0x499   : > { %9256 = vst.msk [vmem:[%s15911_s10 + $0x18] sm:$0xff] %vm811_vm2, %v9152_v8  ;;  %v9150_v59 = vpop.permute.xlu0 %9149  ;;  %v13060_v38 = vpop.eup %13059 }
 0x49a   : > { %9255 = vst.msk [vmem:[%s15911_s10 + $0x10] sm:$0xff] %vm811_vm2, %v9150_v59  ;;  %9211 = vrot.lane.b32.xlu1 %v8890_v60, %s13072_s8 }
 0x49b   : > { %9209 = vrot.lane.b32.xlu0 %v8889_v2, %s13072_s8 }
 0x49c   : > { %v9156_v51 = vpop.permute.xlu1 %9155 }
 0x49d   : > { %9258 = vst.msk [vmem:[%s15911_s10 + $0x28] sm:$0xff] %vm811_vm2, %v9156_v51  ;;  %v9154_v46 = vpop.permute.xlu0 %9153  ;;  %v13062_v49 = vpop.eup %13061 }
 0x49e   : > { %9257 = vst.msk [vmem:[%s15911_s10 + $0x20] sm:$0xff] %vm811_vm2, %v9154_v46  ;;  %9023 = vrot.lane.b32.xlu1 %v13048_v15, %s13071_s25 }
 0x49f   : > { %9021 = vrot.lane.b32.xlu0 %v13050_v31, %s13071_s25 }
 0x4a0   : > { %v8968_v28 = vpop.permute.xlu1 %8967 }
 0x4a1   : > { %v8966_v14 = vpop.permute.xlu0 %8965  ;;  %v9074_v60 = vmul.f32 %v15617_v12, %v8968_v28 }
 0x4a2   : > { %9215 = vrot.lane.b32.xlu1 %v8892_v58, %s13072_s8  ;;  %v9073_v2 = vmul.f32 %v15619_v3, %v8966_v14 }
 0x4a3   : > { %9213 = vrot.lane.b32.xlu0 %v8891_v19, %s13072_s8 }
 0x4a4   : > { %v9160_v17 = vpop.permute.xlu1 %9159 }
 0x4a5   : > { %9260 = vst.msk [vmem:[%s15911_s10 + $0x38] sm:$0xff] %vm811_vm2, %v9160_v17  ;;  %v9158_v16 = vpop.permute.xlu0 %9157 }
 0x4a6   : > { %9259 = vst.msk [vmem:[%s15911_s10 + $0x30] sm:$0xff] %vm811_vm2, %v9158_v16  ;;  %9027 = vrot.lane.b32.xlu1 %v13052_v63, %s13071_s25 }
 0x4a7   : > { %9025 = vrot.lane.b32.xlu0 %v13054_v20, %s13071_s25 }
 0x4a8   : > { %v8972_v11 = vpop.permute.xlu1 %8971 }
 0x4a9   : > { %v8970_v23 = vpop.permute.xlu0 %8969  ;;  %v9076_v51 = vmul.f32 %v15626_v56, %v8972_v11 }
 0x4aa   : > { %9031 = vrot.lane.b32.xlu1 %v13056_v41, %s13071_s25  ;;  %v9075_v34 = vmul.f32 %v15629_v30, %v8970_v23 }
 0x4ab   : > { %9029 = vrot.lane.b32.xlu0 %v13058_v43, %s13071_s25 }
 0x4ac   : > { %v9164_v48 = vpop.permute.xlu1 %9163 }
 0x4ad   : > { %9262 = vst.msk [vmem:[%s15911_s10 + $0x48] sm:$0xff] %vm811_vm2, %v9164_v48  ;;  %v9162_v25 = vpop.permute.xlu0 %9161 }
 0x4ae   : > { %9261 = vst.msk [vmem:[%s15911_s10 + $0x40] sm:$0xff] %vm811_vm2, %v9162_v25  ;;  %9035 = vrot.lane.b32.xlu1 %v13060_v38, %s13071_s25 }
 0x4af   : > { %9033 = vrot.lane.b32.xlu0 %v13062_v49, %s13071_s25 }
 0x4b0   : > { %v8976_v8 = vpop.permute.xlu1 %8975 }
 0x4b1   : > { %v8974_v59 = vpop.permute.xlu0 %8973  ;;  %v9078_v12 = vmul.f32 %v15635_v40, %v8976_v8 }
 0x4b2   : > { %9327 = vrot.lane.b32.xlu1 %v9074_v60, %s13073_s11  ;;  %v9077_v46 = vmul.f32 %v15638_v45, %v8974_v59 }
 0x4b3   : > { %9325 = vrot.lane.b32.xlu0 %v9073_v2, %s13073_s11 }
 0x4b4   : > { %v9168_v15 = vpop.permute.xlu1 %9167 }
 0x4b5   : > { %9264 = vst.msk [vmem:[%s15911_s10 + $0x58] sm:$0xff] %vm811_vm2, %v9168_v15  ;;  %v9166_v26 = vpop.permute.xlu0 %9165 }
 0x4b6   : > { %9263 = vst.msk [vmem:[%s15911_s10 + $0x50] sm:$0xff] %vm811_vm2, %v9166_v26  ;;  %9331 = vrot.lane.b32.xlu1 %v9076_v51, %s13073_s11 }
 0x4b7   : > { %9329 = vrot.lane.b32.xlu0 %v9075_v34, %s13073_s11 }
 0x4b8   : > { %v8980_v3 = vpop.permute.xlu1 %8979 }
 0x4b9   : > { %v8978_v56 = vpop.permute.xlu0 %8977  ;;  %v9080_v30 = vmul.f32 %v15644_v18, %v8980_v3 }
 0x4ba   : > { %9335 = vrot.lane.b32.xlu1 %v9078_v12, %s13073_s11  ;;  %v9079_v37 = vmul.f32 %v15648_v10, %v8978_v56 }
 0x4bb   : > { %9333 = vrot.lane.b32.xlu0 %v9077_v46, %s13073_s11 }
 0x4bc   : > { %v9172_v31 = vpop.permute.xlu1 %9171 }
 0x4bd   : > { %9266 = vst.msk [vmem:[%s15911_s10 + $0x68] sm:$0xff] %vm811_vm2, %v9172_v31  ;;  %v9170_v21 = vpop.permute.xlu0 %9169 }
 0x4be   : > { %9265 = vst.msk [vmem:[%s15911_s10 + $0x60] sm:$0xff] %vm811_vm2, %v9170_v21  ;;  %9339 = vrot.lane.b32.xlu1 %v9080_v30, %s13073_s11 }
 0x4bf   : > { %9337 = vrot.lane.b32.xlu0 %v9079_v37, %s13073_s11 }
 0x4c0   : > { %v8984_v40 = vpop.permute.xlu1 %8983 }
 0x4c1   : > { %v9082_v45 = vmul.f32 %v15656_v5, %v8984_v40  ;;  %v8982_v58 = vpop.permute.xlu0 %8981 }
 0x4c2   : > { %v9081_v18 = vmul.f32 %v15662_v7, %v8982_v58 }
 0x4c3   : > { %9343 = vrot.lane.b32.xlu1 %v9082_v45, %s13073_s11 }
 0x4c4   : > { %v9176_v10 = vpop.permute.xlu1 %9175  ;;  %9341 = vrot.lane.b32.xlu0 %v9081_v18, %s13073_s11 }
 0x4c5   : > { %9268 = vst.msk [vmem:[%s15911_s10 + $0x78] sm:$0xff] %vm811_vm2, %v9176_v10  ;;  %v9174_v19 = vpop.permute.xlu0 %9173 }
 0x4c6   : > { %9267 = vst.msk [vmem:[%s15911_s10 + $0x70] sm:$0xff] %vm811_vm2, %v9174_v19 }
 0x4c8   : > { %v8988_v28 = vpop.permute.xlu1 %8987 }
 0x4c9   : > { %v9084_v14 = vmul.f32 %v15665_v0, %v8988_v28  ;;  %v8986_v5 = vpop.permute.xlu0 %8985 }
 0x4ca   : > { %v9083_v17 = vmul.f32 %v15672_v61, %v8986_v5 }
 0x4cb   : > { %9347 = vrot.lane.b32.xlu1 %v9084_v14, %s13073_s11 }
 0x4cc   : > { %v9180_v7 = vpop.permute.xlu1 %9179  ;;  %9345 = vrot.lane.b32.xlu0 %v9083_v17, %s13073_s11 }
 0x4cd   : > { %9270 = vst.msk [vmem:[%s15911_s10 + $0x88] sm:$0xff] %vm811_vm2, %v9180_v7  ;;  %v9178_v63 = vpop.permute.xlu0 %9177 }
 0x4ce   : > { %9269 = vst.msk [vmem:[%s15911_s10 + $0x80] sm:$0xff] %vm811_vm2, %v9178_v63 }
 0x4d0   : > { %v8992_v16 = vpop.permute.xlu1 %8991 }
 0x4d1   : > { %v9086_v20 = vmul.f32 %v15676_v55, %v8992_v16  ;;  %v8990_v0 = vpop.permute.xlu0 %8989 }
 0x4d2   : > { %v9085_v11 = vmul.f32 %v15681_v52, %v8990_v0 }
 0x4d3   : > { %9351 = vrot.lane.b32.xlu1 %v9086_v20, %s13073_s11 }
 0x4d4   : > { %v9184_v61 = vpop.permute.xlu1 %9183  ;;  %9349 = vrot.lane.b32.xlu0 %v9085_v11, %s13073_s11 }
 0x4d5   : > { %9272 = vst.msk [vmem:[%s15911_s10 + $0x98] sm:$0xff] %vm811_vm2, %v9184_v61  ;;  %v9182_v41 = vpop.permute.xlu0 %9181 }
 0x4d6   : > { %9271 = vst.msk [vmem:[%s15911_s10 + $0x90] sm:$0xff] %vm811_vm2, %v9182_v41 }
 0x4d8   : > { %v8996_v23 = vpop.permute.xlu1 %8995 }
 0x4d9   : > { %v9088_v43 = vmul.f32 %v15686_v13, %v8996_v23  ;;  %v8994_v55 = vpop.permute.xlu0 %8993 }
 0x4da   : > { %v9087_v48 = vmul.f32 %v15691_v57, %v8994_v55 }
 0x4db   : > { %9355 = vrot.lane.b32.xlu1 %v9088_v43, %s13073_s11 }
 0x4dc   : > { %v9188_v52 = vpop.permute.xlu1 %9187  ;;  %9353 = vrot.lane.b32.xlu0 %v9087_v48, %s13073_s11 }
 0x4dd   : > { %9274 = vst.msk [vmem:[%s15911_s10 + $0xa8] sm:$0xff] %vm811_vm2, %v9188_v52  ;;  %v9186_v38 = vpop.permute.xlu0 %9185 }
 0x4de   : > { %9273 = vst.msk [vmem:[%s15911_s10 + $0xa0] sm:$0xff] %vm811_vm2, %v9186_v38 }
 0x4e0   : > { %v9000_v25 = vpop.permute.xlu1 %8999 }
 0x4e1   : > { %v9090_v49 = vmul.f32 %v15695_v4, %v9000_v25  ;;  %v8998_v13 = vpop.permute.xlu0 %8997 }
 0x4e2   : > { %v9089_v60 = vmul.f32 %v15700_v24, %v8998_v13 }
 0x4e3   : > { %9359 = vrot.lane.b32.xlu1 %v9090_v49, %s13073_s11 }
 0x4e4   : > { %v9192_v57 = vpop.permute.xlu1 %9191  ;;  %9357 = vrot.lane.b32.xlu0 %v9089_v60, %s13073_s11 }
 0x4e5   : > { %9276 = vst.msk [vmem:[%s15911_s10 + $0xb8] sm:$0xff] %vm811_vm2, %v9192_v57  ;;  %v9190_v8 = vpop.permute.xlu0 %9189 }
 0x4e6   : > { %9275 = vst.msk [vmem:[%s15911_s10 + $0xb0] sm:$0xff] %vm811_vm2, %v9190_v8 }
 0x4e8   : > { %v9004_v2 = vpop.permute.xlu1 %9003 }
 0x4e9   : > { %v9092_v59 = vmul.f32 %v15707_v42, %v9004_v2  ;;  %v9002_v4 = vpop.permute.xlu0 %9001 }
 0x4ea   : > { %v9091_v51 = vmul.f32 %v15711_v62, %v9002_v4 }
 0x4eb   : > { %9363 = vrot.lane.b32.xlu1 %v9092_v59, %s13073_s11 }
 0x4ec   : > { %v9196_v24 = vpop.permute.xlu1 %9195  ;;  %9361 = vrot.lane.b32.xlu0 %v9091_v51, %s13073_s11 }
 0x4ed   : > { %9278 = vst.msk [vmem:[%s15911_s10 + $0xc8] sm:$0xff] %vm811_vm2, %v9196_v24  ;;  %v9194_v15 = vpop.permute.xlu0 %9193 }
 0x4ee   : > { %9277 = vst.msk [vmem:[%s15911_s10 + $0xc0] sm:$0xff] %vm811_vm2, %v9194_v15 }
 0x4f0   : > { %v9008_v34 = vpop.permute.xlu1 %9007 }
 0x4f1   : > { %v9094_v26 = vmul.f32 %v15716_v50, %v9008_v34  ;;  %v9006_v42 = vpop.permute.xlu0 %9005 }
 0x4f2   : > { %v9093_v12 = vmul.f32 %v15721_v29, %v9006_v42 }
 0x4f3   : > { %9367 = vrot.lane.b32.xlu1 %v9094_v26, %s13073_s11 }
 0x4f4   : > { %v9200_v62 = vpop.permute.xlu1 %9199  ;;  %9365 = vrot.lane.b32.xlu0 %v9093_v12, %s13073_s11 }
 0x4f5   : > { %9280 = vst.msk [vmem:[%s15911_s10 + $0xd8] sm:$0xff] %vm811_vm2, %v9200_v62  ;;  %v9198_v3 = vpop.permute.xlu0 %9197 }
 0x4f6   : > { %9279 = vst.msk [vmem:[%s15911_s10 + $0xd0] sm:$0xff] %vm811_vm2, %v9198_v3 }
 0x4f8   : > { %v9012_v46 = vpop.permute.xlu1 %9011 }
 0x4f9   : > { %v9096_v56 = vmul.f32 %v15726_v32, %v9012_v46  ;;  %v9010_v50 = vpop.permute.xlu0 %9009 }
 0x4fa   : > { %v9095_v30 = vmul.f32 %v15731_v27, %v9010_v50 }
 0x4fb   : > { %9371 = vrot.lane.b32.xlu1 %v9096_v56, %s13073_s11 }
 0x4fc   : > { %v9204_v29 = vpop.permute.xlu1 %9203  ;;  %9369 = vrot.lane.b32.xlu0 %v9095_v30, %s13073_s11 }
 0x4fd   : > { %9282 = vst.msk [vmem:[%s15911_s10 + $0xe8] sm:$0xff] %vm811_vm2, %v9204_v29  ;;  %v9202_v31 = vpop.permute.xlu0 %9201 }
 0x4fe   : > { %9281 = vst.msk [vmem:[%s15911_s10 + $0xe0] sm:$0xff] %vm811_vm2, %v9202_v31 }
 0x500   : > { %v9016_v37 = vpop.permute.xlu1 %9015 }
 0x501   : > { %v9098_v21 = vmul.f32 %v15736_v6, %v9016_v37  ;;  %v9014_v32 = vpop.permute.xlu0 %9013 }
 0x502   : > { %v9097_v40 = vmul.f32 %v15741_v44, %v9014_v32 }
 0x503   : > { %9375 = vrot.lane.b32.xlu1 %v9098_v21, %s13073_s11 }
 0x504   : > { %v9208_v27 = vpop.permute.xlu1 %9207  ;;  %9373 = vrot.lane.b32.xlu0 %v9097_v40, %s13073_s11 }
 0x505   : > { %9284 = vst.msk [vmem:[%s15911_s10 + $0xf8] sm:$0xff] %vm811_vm2, %v9208_v27  ;;  %v9206_v45 = vpop.permute.xlu0 %9205 }
 0x506   : > { %9283 = vst.msk [vmem:[%s15911_s10 + $0xf0] sm:$0xff] %vm811_vm2, %v9206_v45 }
 0x508   : > { %v9020_v58 = vpop.permute.xlu1 %9019 }
 0x509   : > { %v9100_v18 = vmul.f32 %v15745_v53, %v9020_v58  ;;  %v9018_v6 = vpop.permute.xlu0 %9017 }
 0x50a   : > { %v9099_v10 = vmul.f32 %v15749_v36, %v9018_v6 }
 0x50b   : > { %9379 = vrot.lane.b32.xlu1 %v9100_v18, %s13073_s11 }
 0x50c   : > { %v9212_v44 = vpop.permute.xlu1 %9211  ;;  %9377 = vrot.lane.b32.xlu0 %v9099_v10, %s13073_s11 }
 0x50d   : > { %9286 = vst.msk [vmem:[%s15911_s10 + $0x108] sm:$0xff] %vm811_vm2, %v9212_v44  ;;  %v9210_v19 = vpop.permute.xlu0 %9209 }
 0x50e   : > { %9285 = vst.msk [vmem:[%s15911_s10 + $0x100] sm:$0xff] %vm811_vm2, %v9210_v19 }
 0x510   : > { %v9024_v28 = vpop.permute.xlu1 %9023 }
 0x511   : > { %v9102_v14 = vmul.f32 %v15753_v9, %v9024_v28  ;;  %v9022_v5 = vpop.permute.xlu0 %9021 }
 0x512   : > { %v9101_v53 = vmul.f32 %v15757_v54, %v9022_v5 }
 0x513   : > { %9383 = vrot.lane.b32.xlu1 %v9102_v14, %s13073_s11 }
 0x514   : > { %v9216_v36 = vpop.permute.xlu1 %9215  ;;  %9381 = vrot.lane.b32.xlu0 %v9101_v53, %s13073_s11 }
 0x515   : > { %9288 = vst.msk [vmem:[%s15911_s10 + $0x118] sm:$0xff] %vm811_vm2, %v9216_v36  ;;  %v9214_v17 = vpop.permute.xlu0 %9213 }
 0x516   : > { %9287 = vst.msk [vmem:[%s15911_s10 + $0x110] sm:$0xff] %vm811_vm2, %v9214_v17 }
 0x518   : > { %v9028_v7 = vpop.permute.xlu1 %9027 }
 0x519   : > { %v9104_v63 = vmul.f32 %v15761_v22, %v9028_v7  ;;  %v9026_v16 = vpop.permute.xlu0 %9025 }
 0x51a   : > { %v9103_v9 = vmul.f32 %v15765_v33, %v9026_v16 }
 0x51b   : > { %9387 = vrot.lane.b32.xlu1 %v9104_v63, %s13073_s11 }
 0x51c   : > { %v9032_v54 = vpop.permute.xlu1 %9031  ;;  %9385 = vrot.lane.b32.xlu0 %v9103_v9, %s13073_s11 }
 0x51d   : > { %v9106_v20 = vmul.f32 %v16375_v35, %v9032_v54  ;;  %v9030_v0 = vpop.permute.xlu0 %9029 }
 0x51e   : > { %v9105_v11 = vmul.f32 %v16377_v47, %v9030_v0 }
 0x51f   : > { %9391 = vrot.lane.b32.xlu1 %v9106_v20, %s13073_s11 }
 0x520   : > { %v9036_v61 = vpop.permute.xlu1 %9035  ;;  %9389 = vrot.lane.b32.xlu0 %v9105_v11, %s13073_s11 }
 0x521   : > { %v9108_v22 = vmul.f32 %v15777_v1, %v9036_v61  ;;  %v9034_v41 = vpop.permute.xlu0 %9033 }
 0x522   : > { %v9107_v33 = vmul.f32 %v15781_v39, %v9034_v41 }
 0x523   : > { %9395 = vrot.lane.b32.xlu1 %v9108_v22, %s13073_s11 }
 0x524   : > { %v9328_v35 = vpop.permute.xlu1 %9327  ;;  %9393 = vrot.lane.b32.xlu0 %v9107_v33, %s13073_s11 }
 0x525   : > { %9434 = vst.msk [vmem:[%s16082_s14 + $0x8] sm:$0xff] %vm811_vm2, %v9328_v35  ;;  %v9326_v1 = vpop.permute.xlu0 %9325 }
 0x526   : > { %9433 = vst.msk [vmem:[%s16082_s14] sm:$0xff] %vm811_vm2, %v9326_v1 }
 0x528   : > { %v9332_v39 = vpop.permute.xlu1 %9331 }
 0x529   : > { %9436 = vst.msk [vmem:[%s16082_s14 + $0x18] sm:$0xff] %vm811_vm2, %v9332_v39  ;;  %v9330_v47 = vpop.permute.xlu0 %9329 }
 0x52a   : > { %9435 = vst.msk [vmem:[%s16082_s14 + $0x10] sm:$0xff] %vm811_vm2, %v9330_v47 }
 0x52c   : > { %v9336_v23 = vpop.permute.xlu1 %9335 }
 0x52d   : > { %9438 = vst.msk [vmem:[%s16082_s14 + $0x28] sm:$0xff] %vm811_vm2, %v9336_v23  ;;  %v9334_v43 = vpop.permute.xlu0 %9333 }
 0x52e   : > { %9437 = vst.msk [vmem:[%s16082_s14 + $0x20] sm:$0xff] %vm811_vm2, %v9334_v43 }
 0x530   : > { %v9340_v55 = vpop.permute.xlu1 %9339 }
 0x531   : > { %9440 = vst.msk [vmem:[%s16082_s14 + $0x38] sm:$0xff] %vm811_vm2, %v9340_v55  ;;  %v9338_v48 = vpop.permute.xlu0 %9337 }
 0x532   : > { %9439 = vst.msk [vmem:[%s16082_s14 + $0x30] sm:$0xff] %vm811_vm2, %v9338_v48 }
 0x535   : > { %v9344_v52 = vpop.permute.xlu1 %9343 }
 0x536   : > { %9442 = vst.msk [vmem:[%s16082_s14 + $0x48] sm:$0xff] %vm811_vm2, %v9344_v52  ;;  %v9342_v38 = vpop.permute.xlu0 %9341 }
 0x537   : > { %9441 = vst.msk [vmem:[%s16082_s14 + $0x40] sm:$0xff] %vm811_vm2, %v9342_v38 }
 0x53d   : > { %v9348_v25 = vpop.permute.xlu1 %9347 }
 0x53e   : > { %9444 = vst.msk [vmem:[%s16082_s14 + $0x58] sm:$0xff] %vm811_vm2, %v9348_v25  ;;  %v9346_v49 = vpop.permute.xlu0 %9345 }
 0x53f   : > { %9443 = vst.msk [vmem:[%s16082_s14 + $0x50] sm:$0xff] %vm811_vm2, %v9346_v49 }
 0x545   : > { %v9352_v13 = vpop.permute.xlu1 %9351 }
 0x546   : > { %9446 = vst.msk [vmem:[%s16082_s14 + $0x68] sm:$0xff] %vm811_vm2, %v9352_v13  ;;  %v9350_v60 = vpop.permute.xlu0 %9349 }
 0x547   : > { %9445 = vst.msk [vmem:[%s16082_s14 + $0x60] sm:$0xff] %vm811_vm2, %v9350_v60 }
 0x54d   : > { %v9356_v57 = vpop.permute.xlu1 %9355 }
 0x54e   : > { %9448 = vst.msk [vmem:[%s16082_s14 + $0x78] sm:$0xff] %vm811_vm2, %v9356_v57  ;;  %v9354_v8 = vpop.permute.xlu0 %9353 }
 0x54f   : > { %9447 = vst.msk [vmem:[%s16082_s14 + $0x70] sm:$0xff] %vm811_vm2, %v9354_v8 }
 0x555   : > { %v9360_v2 = vpop.permute.xlu1 %9359 }
 0x556   : > { %9450 = vst.msk [vmem:[%s16082_s14 + $0x88] sm:$0xff] %vm811_vm2, %v9360_v2  ;;  %v9358_v59 = vpop.permute.xlu0 %9357 }
 0x557   : > { %9449 = vst.msk [vmem:[%s16082_s14 + $0x80] sm:$0xff] %vm811_vm2, %v9358_v59 }
 0x55d   : > { %v9364_v4 = vpop.permute.xlu1 %9363 }
 0x55e   : > { %9452 = vst.msk [vmem:[%s16082_s14 + $0x98] sm:$0xff] %vm811_vm2, %v9364_v4  ;;  %v9362_v51 = vpop.permute.xlu0 %9361 }
 0x55f   : > { %9451 = vst.msk [vmem:[%s16082_s14 + $0x90] sm:$0xff] %vm811_vm2, %v9362_v51 }
 0x565   : > { %v9368_v24 = vpop.permute.xlu1 %9367 }
 0x566   : > { %9454 = vst.msk [vmem:[%s16082_s14 + $0xa8] sm:$0xff] %vm811_vm2, %v9368_v24  ;;  %v9366_v15 = vpop.permute.xlu0 %9365 }
 0x567   : > { %9453 = vst.msk [vmem:[%s16082_s14 + $0xa0] sm:$0xff] %vm811_vm2, %v9366_v15 }
 0x56d   : > { %v9372_v34 = vpop.permute.xlu1 %9371 }
 0x56e   : > { %9456 = vst.msk [vmem:[%s16082_s14 + $0xb8] sm:$0xff] %vm811_vm2, %v9372_v34  ;;  %v9370_v26 = vpop.permute.xlu0 %9369 }
 0x56f   : > { %9455 = vst.msk [vmem:[%s16082_s14 + $0xb0] sm:$0xff] %vm811_vm2, %v9370_v26 }
 0x575   : > { %v9376_v42 = vpop.permute.xlu1 %9375 }
 0x576   : > { %9458 = vst.msk [vmem:[%s16082_s14 + $0xc8] sm:$0xff] %vm811_vm2, %v9376_v42  ;;  %v9374_v12 = vpop.permute.xlu0 %9373 }
 0x577   : > { %9457 = vst.msk [vmem:[%s16082_s14 + $0xc0] sm:$0xff] %vm811_vm2, %v9374_v12 }
 0x57d   : > { %v9380_v62 = vpop.permute.xlu1 %9379 }
 0x57e   : > { %9460 = vst.msk [vmem:[%s16082_s14 + $0xd8] sm:$0xff] %vm811_vm2, %v9380_v62  ;;  %v9378_v3 = vpop.permute.xlu0 %9377 }
 0x57f   : > { %9459 = vst.msk [vmem:[%s16082_s14 + $0xd0] sm:$0xff] %vm811_vm2, %v9378_v3 }
 0x585   : > { %v9384_v46 = vpop.permute.xlu1 %9383 }
 0x586   : > { %9462 = vst.msk [vmem:[%s16082_s14 + $0xe8] sm:$0xff] %vm811_vm2, %v9384_v46  ;;  %v9382_v56 = vpop.permute.xlu0 %9381 }
 0x587   : > { %9461 = vst.msk [vmem:[%s16082_s14 + $0xe0] sm:$0xff] %vm811_vm2, %v9382_v56 }
 0x58d   : > { %v9388_v50 = vpop.permute.xlu1 %9387 }
 0x58e   : > { %9464 = vst.msk [vmem:[%s16082_s14 + $0xf8] sm:$0xff] %vm811_vm2, %v9388_v50  ;;  %v9386_v30 = vpop.permute.xlu0 %9385 }
 0x58f   : > { %9463 = vst.msk [vmem:[%s16082_s14 + $0xf0] sm:$0xff] %vm811_vm2, %v9386_v30 }
 0x591   : > { %v9392_v29 = vpop.permute.xlu1 %9391 }
 0x592   : > { %9466 = vst.msk [vmem:[%s16082_s14 + $0x108] sm:$0xff] %vm811_vm2, %v9392_v29  ;;  %v9390_v31 = vpop.permute.xlu0 %9389 }
 0x593   : > { %9465 = vst.msk [vmem:[%s16082_s14 + $0x100] sm:$0xff] %vm811_vm2, %v9390_v31 }
 0x595   : > { %v9396_v37 = vpop.permute.xlu1 %9395 }
 0x596   : > { %9468 = vst.msk [vmem:[%s16082_s14 + $0x118] sm:$0xff] %vm811_vm2, %v9396_v37  ;;  %v9394_v21 = vpop.permute.xlu0 %9393 }
 0x597   : > { %9467 = vst.msk [vmem:[%s16082_s14 + $0x110] sm:$0xff] %vm811_vm2, %v9394_v21 }
 0x598 PF: > { %s18_s24 = sadd.s32 1, %s13069_s24  }
 0x599   : > { %p15_p4 = scmp.ge.s32.totalorder %s18_s24, 4  }
 0x59b   :  { %17 = sbr.rel (!%p15_p4) target bundleno = 1 (0x1), region = 92 }

</bundles_post_ra>
